<compile_context>
chip_gen: v5e
topology: v5e:2x2
jax: 0.10.0
libtpu: 0.0.40
codegen_flags: <defaults>
</compile_context>

<pallas_src>
import math

import jax
import jax.numpy as jnp
from jax.experimental import pallas as pl
from jax.experimental.pallas import tpu as pltpu

LANE = 128          # TPU lane width (last-dim alignment)
TM = 128            # batch-tile rows per grid step (safe on v5e/v6e/v7x VMEM)


def _round_up(n, m):
    return ((n + m - 1) // m) * m


# --------------------------------------------------------------------------
# Kernel: fused 5-layer MLP on one [TM, F_pad] batch tile.
# --------------------------------------------------------------------------
def mlp_kernel(x_ref,
               w1_ref, b1_ref,
               w2_ref, b2_ref,
               w3_ref, b3_ref,
               w4_ref, b4_ref,
               w5_ref, b5_ref,
               out_ref):
    def layer(h_bf16, w_ref, b_ref):
        acc = jnp.dot(h_bf16, w_ref[...], preferred_element_type=jnp.float32)
        acc = acc + b_ref[...]                       # f32 bias add (VPU)
        return jnp.maximum(acc, 0.0).astype(jnp.bfloat16)

    h = x_ref[...]                                   # bf16 [TM, F_pad]
    h = layer(h, w1_ref, b1_ref)
    h = layer(h, w2_ref, b2_ref)
    h = layer(h, w3_ref, b3_ref)
    h = layer(h, w4_ref, b4_ref)

    out = jnp.dot(h, w5_ref[...], preferred_element_type=jnp.float32)
    out = out + b5_ref[...]
    out_ref[...] = out.astype(out_ref.dtype)


# --------------------------------------------------------------------------
# Parameter construction (PyTorch-style init) and one-time padding / bf16 cast.
# --------------------------------------------------------------------------
def init_mlp_params(key, in_channel, out_channel, hidden=200):
    """Deterministic PyTorch-style init: U(-1/sqrt(fan_in), 1/sqrt(fan_in)).

    Weights stored as [in_features, out_features] (transposed vs torch)."""
    dims = [in_channel, hidden, hidden, hidden, hidden, out_channel]
    params = []
    for i in range(5):
        key, wk, bk = jax.random.split(key, 3)
        fan_in, fan_out = dims[i], dims[i + 1]
        bound = 1.0 / math.sqrt(fan_in)
        w = jax.random.uniform(wk, (fan_in, fan_out), jnp.float32, -bound, bound)
        b = jax.random.uniform(bk, (fan_out,), jnp.float32, -bound, bound)
        params.append((w, b))
    return params


def prepare_params(params):
    """Pad every dim to a multiple of 128 and cast weights to bf16 (once)."""
    prepped = []
    for w, b in params:
        fi, fo = w.shape
        fi_p, fo_p = _round_up(fi, LANE), _round_up(fo, LANE)
        w_p = jnp.zeros((fi_p, fo_p), jnp.bfloat16).at[:fi, :fo].set(
            w.astype(jnp.bfloat16))
        b_p = jnp.zeros((1, fo_p), jnp.float32).at[0, :fo].set(b)
        prepped.append((w_p, b_p))
    return prepped


# --------------------------------------------------------------------------
# Wrapper: flatten, pad batch, run the batch-tiled grid, slice back.
# --------------------------------------------------------------------------
def mlp_forward(x_nchw, prepped_params, out_dim):
    """x_nchw: [B, C, H, W] f32. prepped_params from prepare_params().
    Returns [B, out_dim] f32."""
    B = x_nchw.shape[0]
    x_flat = x_nchw.reshape(B, -1)                   # nn.Flatten(): row-major
    F = x_flat.shape[1]

    (w1, b1), (w2, b2), (w3, b3), (w4, b4), (w5, b5) = prepped_params
    F_pad = w1.shape[0]
    H_pad = w1.shape[1]
    O_pad = w5.shape[1]
    assert F <= F_pad

    B_pad = _round_up(max(B, TM), TM)
    x_p = jnp.zeros((B_pad, F_pad), jnp.bfloat16).at[:B, :F].set(
        x_flat.astype(jnp.bfloat16))

    grid = (pl.cdiv(B_pad, TM),)

    x_spec = pl.BlockSpec((TM, F_pad), lambda i: (i, 0))
    out_spec = pl.BlockSpec((TM, O_pad), lambda i: (i, 0))

    def const_spec(arr):
        # Weights/biases: constant block index -> stay VMEM-resident across
        # batch tiles (no re-DMA per grid step).
        return pl.BlockSpec(arr.shape, lambda i: (0,) * arr.ndim)

    flat_args = []
    in_specs = [x_spec]
    for w, b in prepped_params:
        flat_args += [w, b]
        in_specs += [const_spec(w), const_spec(b)]

    flops = 2 * B_pad * (F_pad * H_pad + 3 * H_pad * H_pad + H_pad * O_pad)
    bytes_accessed = (
        x_p.size * x_p.dtype.itemsize
        + sum(a.size * a.dtype.itemsize for a in flat_args)
        + B_pad * O_pad * 4
    )

    out_padded = pl.pallas_call(
        mlp_kernel,
        out_shape=jax.ShapeDtypeStruct((B_pad, O_pad), jnp.float32),
        grid=grid,
        in_specs=in_specs,
        out_specs=out_spec,
        compiler_params=pltpu.CompilerParams(
            dimension_semantics=("parallel",),
            vmem_limit_bytes=32 * 1024 * 1024,
        ),
        cost_estimate=pl.CostEstimate(
            flops=flops, transcendentals=0, bytes_accessed=bytes_accessed),
    )(x_p, *flat_args)

    return out_padded[:B, :out_dim]


# --------------------------------------------------------------------------
# Pure-JAX reference with identical numerics (bf16 weights, f32 accumulate).
# --------------------------------------------------------------------------
def mlp_reference(x_nchw, params):
    h = x_nchw.reshape(x_nchw.shape[0], -1).astype(jnp.bfloat16)
    n = len(params)
    for i, (w, b) in enumerate(params):
        acc = jnp.dot(h, w.astype(jnp.bfloat16),
                      preferred_element_type=jnp.float32) + b
        if i < n - 1:
            h = jnp.maximum(acc, 0.0).astype(jnp.bfloat16)
        else:
            h = acc
    return h


if __name__ == "__main__":
    key = jax.random.PRNGKey(0)
    kx, kp = jax.random.split(key)

    # Small example: batch=2, NCHW input [2, 4, 16, 16] -> in_channel = 1024
    B, C, H, W = 2, 4, 16, 16
    in_channel = C * H * W
    out_channel = 10
    hidden = 200  # PyTorch default hidden_channels_dim

    x = jax.random.normal(kx, (B, C, H, W), dtype=jnp.float32)
    params = init_mlp_params(kp, in_channel, out_channel, hidden)
    prepped = prepare_params(params)          # one-time pad + bf16 cast

    out = mlp_forward(x, prepped, out_channel)
    out = jax.block_until_ready(out)

    ref = mlp_reference(x, params)
    assert out.shape == (B, out_channel)
    assert jnp.allclose(out, ref, atol=1e-3, rtol=1e-3), (
        f"max abs err {jnp.max(jnp.abs(out - ref))}")

    print("KERNEL_OK")
</pallas_src>

<mosaic_0001>
module attributes {stable_mosaic.version = 11 : i64} {
  func.func @mlp_kernel(%arg0: i32, %arg1: memref<128x1024xbf16, #tpu.memory_space<vmem>>, %arg2: memref<1024x256xbf16, #tpu.memory_space<vmem>>, %arg3: memref<1x256xf32, #tpu.memory_space<vmem>>, %arg4: memref<256x256xbf16, #tpu.memory_space<vmem>>, %arg5: memref<1x256xf32, #tpu.memory_space<vmem>>, %arg6: memref<256x256xbf16, #tpu.memory_space<vmem>>, %arg7: memref<1x256xf32, #tpu.memory_space<vmem>>, %arg8: memref<256x256xbf16, #tpu.memory_space<vmem>>, %arg9: memref<1x256xf32, #tpu.memory_space<vmem>>, %arg10: memref<256x128xbf16, #tpu.memory_space<vmem>>, %arg11: memref<1x128xf32, #tpu.memory_space<vmem>>, %arg12: memref<128x128xf32, #tpu.memory_space<vmem>>) attributes {dimension_semantics = [#tpu.dimension_semantics<parallel>], iteration_bounds = array<i64: 1>, scalar_prefetch = 0 : i64, scratch_operands = 0 : i64, tpu.core_type = #tpu.core_type<tc>, window_params = [{transform_indices = @transform_0, window_bounds = array<i64: 128, 1024>}, {pipeline_mode = #tpu.pipeline_mode<synchronous>, transform_indices = @transform_1, window_bounds = array<i64: 1024, 256>}, {pipeline_mode = #tpu.pipeline_mode<synchronous>, transform_indices = @transform_2, window_bounds = array<i64: 1, 256>}, {pipeline_mode = #tpu.pipeline_mode<synchronous>, transform_indices = @transform_3, window_bounds = array<i64: 256, 256>}, {pipeline_mode = #tpu.pipeline_mode<synchronous>, transform_indices = @transform_4, window_bounds = array<i64: 1, 256>}, {pipeline_mode = #tpu.pipeline_mode<synchronous>, transform_indices = @transform_5, window_bounds = array<i64: 256, 256>}, {pipeline_mode = #tpu.pipeline_mode<synchronous>, transform_indices = @transform_6, window_bounds = array<i64: 1, 256>}, {pipeline_mode = #tpu.pipeline_mode<synchronous>, transform_indices = @transform_7, window_bounds = array<i64: 256, 256>}, {pipeline_mode = #tpu.pipeline_mode<synchronous>, transform_indices = @transform_8, window_bounds = array<i64: 1, 256>}, {pipeline_mode = #tpu.pipeline_mode<synchronous>, transform_indices = @transform_9, window_bounds = array<i64: 256, 128>}, {pipeline_mode = #tpu.pipeline_mode<synchronous>, transform_indices = @transform_10, window_bounds = array<i64: 1, 128>}, {transform_indices = @transform_11, window_bounds = array<i64: 128, 128>}]} {
    %c0 = arith.constant 0 : index
    %c0_0 = arith.constant 0 : index
    %0 = vector.load %arg1[%c0, %c0_0] : memref<128x1024xbf16, #tpu.memory_space<vmem>>, vector<128x1024xbf16>
    %c0_1 = arith.constant 0 : index
    %c0_2 = arith.constant 0 : index
    %1 = vector.load %arg2[%c0_1, %c0_2] : memref<1024x256xbf16, #tpu.memory_space<vmem>>, vector<1024x256xbf16>
    %cst = arith.constant dense<0.000000e+00> : vector<128x256xf32>
    %2 = tpu.matmul %0, %1, %cst {dimension_numbers = #tpu.dot_dimension_numbers<[1], [0], [0], [1], [0, 0, 1, 1], [], []>} : vector<128x1024xbf16>, vector<1024x256xbf16>, vector<128x256xf32> -> vector<128x256xf32>
    %c0_3 = arith.constant 0 : index
    %c0_4 = arith.constant 0 : index
    %3 = vector.load %arg3[%c0_3, %c0_4] : memref<1x256xf32, #tpu.memory_space<vmem>>, vector<1x256xf32>
    %4 = vector.broadcast %3 : vector<1x256xf32> to vector<128x256xf32>
    %5 = arith.addf %2, %4 : vector<128x256xf32>
    %cst_5 = arith.constant 0.000000e+00 : f32
    %6 = vector.broadcast %cst_5 : f32 to vector<128x256xf32>
    %7 = arith.maximumf %5, %6 : vector<128x256xf32>
    %8 = arith.truncf %7 : vector<128x256xf32> to vector<128x256xbf16>
    %c0_6 = arith.constant 0 : index
    %c0_7 = arith.constant 0 : index
    %9 = vector.load %arg4[%c0_6, %c0_7] : memref<256x256xbf16, #tpu.memory_space<vmem>>, vector<256x256xbf16>
    %cst_8 = arith.constant dense<0.000000e+00> : vector<128x256xf32>
    %10 = tpu.matmul %8, %9, %cst_8 {dimension_numbers = #tpu.dot_dimension_numbers<[1], [0], [0], [1], [0, 0, 1, 1], [], []>} : vector<128x256xbf16>, vector<256x256xbf16>, vector<128x256xf32> -> vector<128x256xf32>
    %c0_9 = arith.constant 0 : index
    %c0_10 = arith.constant 0 : index
    %11 = vector.load %arg5[%c0_9, %c0_10] : memref<1x256xf32, #tpu.memory_space<vmem>>, vector<1x256xf32>
    %12 = vector.broadcast %11 : vector<1x256xf32> to vector<128x256xf32>
    %13 = arith.addf %10, %12 : vector<128x256xf32>
    %cst_11 = arith.constant 0.000000e+00 : f32
    %14 = vector.broadcast %cst_11 : f32 to vector<128x256xf32>
    %15 = arith.maximumf %13, %14 : vector<128x256xf32>
    %16 = arith.truncf %15 : vector<128x256xf32> to vector<128x256xbf16>
    %c0_12 = arith.constant 0 : index
    %c0_13 = arith.constant 0 : index
    %17 = vector.load %arg6[%c0_12, %c0_13] : memref<256x256xbf16, #tpu.memory_space<vmem>>, vector<256x256xbf16>
    %cst_14 = arith.constant dense<0.000000e+00> : vector<128x256xf32>
    %18 = tpu.matmul %16, %17, %cst_14 {dimension_numbers = #tpu.dot_dimension_numbers<[1], [0], [0], [1], [0, 0, 1, 1], [], []>} : vector<128x256xbf16>, vector<256x256xbf16>, vector<128x256xf32> -> vector<128x256xf32>
    %c0_15 = arith.constant 0 : index
    %c0_16 = arith.constant 0 : index
    %19 = vector.load %arg7[%c0_15, %c0_16] : memref<1x256xf32, #tpu.memory_space<vmem>>, vector<1x256xf32>
    %20 = vector.broadcast %19 : vector<1x256xf32> to vector<128x256xf32>
    %21 = arith.addf %18, %20 : vector<128x256xf32>
    %cst_17 = arith.constant 0.000000e+00 : f32
    %22 = vector.broadcast %cst_17 : f32 to vector<128x256xf32>
    %23 = arith.maximumf %21, %22 : vector<128x256xf32>
    %24 = arith.truncf %23 : vector<128x256xf32> to vector<128x256xbf16>
    %c0_18 = arith.constant 0 : index
    %c0_19 = arith.constant 0 : index
    %25 = vector.load %arg8[%c0_18, %c0_19] : memref<256x256xbf16, #tpu.memory_space<vmem>>, vector<256x256xbf16>
    %cst_20 = arith.constant dense<0.000000e+00> : vector<128x256xf32>
    %26 = tpu.matmul %24, %25, %cst_20 {dimension_numbers = #tpu.dot_dimension_numbers<[1], [0], [0], [1], [0, 0, 1, 1], [], []>} : vector<128x256xbf16>, vector<256x256xbf16>, vector<128x256xf32> -> vector<128x256xf32>
    %c0_21 = arith.constant 0 : index
    %c0_22 = arith.constant 0 : index
    %27 = vector.load %arg9[%c0_21, %c0_22] : memref<1x256xf32, #tpu.memory_space<vmem>>, vector<1x256xf32>
    %28 = vector.broadcast %27 : vector<1x256xf32> to vector<128x256xf32>
    %29 = arith.addf %26, %28 : vector<128x256xf32>
    %cst_23 = arith.constant 0.000000e+00 : f32
    %30 = vector.broadcast %cst_23 : f32 to vector<128x256xf32>
    %31 = arith.maximumf %29, %30 : vector<128x256xf32>
    %32 = arith.truncf %31 : vector<128x256xf32> to vector<128x256xbf16>
    %c0_24 = arith.constant 0 : index
    %c0_25 = arith.constant 0 : index
    %33 = vector.load %arg10[%c0_24, %c0_25] : memref<256x128xbf16, #tpu.memory_space<vmem>>, vector<256x128xbf16>
    %cst_26 = arith.constant dense<0.000000e+00> : vector<128x128xf32>
    %34 = tpu.matmul %32, %33, %cst_26 {dimension_numbers = #tpu.dot_dimension_numbers<[1], [0], [0], [1], [0, 0, 1, 1], [], []>} : vector<128x256xbf16>, vector<256x128xbf16>, vector<128x128xf32> -> vector<128x128xf32>
    %c0_27 = arith.constant 0 : index
    %c0_28 = arith.constant 0 : index
    %35 = vector.load %arg11[%c0_27, %c0_28] : memref<1x128xf32, #tpu.memory_space<vmem>>, vector<1x128xf32>
    %36 = vector.broadcast %35 : vector<1x128xf32> to vector<128x128xf32>
    %37 = arith.addf %34, %36 : vector<128x128xf32>
    %c0_29 = arith.constant 0 : index
    %c0_30 = arith.constant 0 : index
    %38 = vector.load %arg12[%c0_29, %c0_30] : memref<128x128xf32, #tpu.memory_space<vmem>>, vector<128x128xf32>
    tpu.vector_store %arg12[%c0_29, %c0_30], %37 {strides = array<i32>} : memref<128x128xf32, #tpu.memory_space<vmem>>, vector<128x128xf32>,
    return
  }
  func.func @transform_0(%arg0: i32) -> (i32, i32) {
    %c0_i32 = arith.constant 0 : i32
    %c0_i32_0 = arith.constant 0 : i32
    return %arg0, %c0_i32 : i32, i32
  }
  func.func @transform_1(%arg0: i32) -> (i32, i32) {
    %c0_i32 = arith.constant 0 : i32
    %c0_i32_0 = arith.constant 0 : i32
    %c0_i32_1 = arith.constant 0 : i32
    return %c0_i32, %c0_i32_0 : i32, i32
  }
  func.func @transform_2(%arg0: i32) -> (i32, i32) {
    %c0_i32 = arith.constant 0 : i32
    %c0_i32_0 = arith.constant 0 : i32
    %c0_i32_1 = arith.constant 0 : i32
    return %c0_i32, %c0_i32_0 : i32, i32
  }
  func.func @transform_3(%arg0: i32) -> (i32, i32) {
    %c0_i32 = arith.constant 0 : i32
    %c0_i32_0 = arith.constant 0 : i32
    %c0_i32_1 = arith.constant 0 : i32
    return %c0_i32, %c0_i32_0 : i32, i32
  }
  func.func @transform_4(%arg0: i32) -> (i32, i32) {
    %c0_i32 = arith.constant 0 : i32
    %c0_i32_0 = arith.constant 0 : i32
    %c0_i32_1 = arith.constant 0 : i32
    return %c0_i32, %c0_i32_0 : i32, i32
  }
  func.func @transform_5(%arg0: i32) -> (i32, i32) {
    %c0_i32 = arith.constant 0 : i32
    %c0_i32_0 = arith.constant 0 : i32
    %c0_i32_1 = arith.constant 0 : i32
    return %c0_i32, %c0_i32_0 : i32, i32
  }
  func.func @transform_6(%arg0: i32) -> (i32, i32) {
    %c0_i32 = arith.constant 0 : i32
    %c0_i32_0 = arith.constant 0 : i32
    %c0_i32_1 = arith.constant 0 : i32
    return %c0_i32, %c0_i32_0 : i32, i32
  }
  func.func @transform_7(%arg0: i32) -> (i32, i32) {
    %c0_i32 = arith.constant 0 : i32
    %c0_i32_0 = arith.constant 0 : i32
    %c0_i32_1 = arith.constant 0 : i32
    return %c0_i32, %c0_i32_0 : i32, i32
  }
  func.func @transform_8(%arg0: i32) -> (i32, i32) {
    %c0_i32 = arith.constant 0 : i32
    %c0_i32_0 = arith.constant 0 : i32
    %c0_i32_1 = arith.constant 0 : i32
    return %c0_i32, %c0_i32_0 : i32, i32
  }
  func.func @transform_9(%arg0: i32) -> (i32, i32) {
    %c0_i32 = arith.constant 0 : i32
    %c0_i32_0 = arith.constant 0 : i32
    %c0_i32_1 = arith.constant 0 : i32
    return %c0_i32, %c0_i32_0 : i32, i32
  }
  func.func @transform_10(%arg0: i32) -> (i32, i32) {
    %c0_i32 = arith.constant 0 : i32
    %c0_i32_0 = arith.constant 0 : i32
    %c0_i32_1 = arith.constant 0 : i32
    return %c0_i32, %c0_i32_0 : i32, i32
  }
  func.func @transform_11(%arg0: i32) -> (i32, i32) {
    %c0_i32 = arith.constant 0 : i32
    %c0_i32_0 = arith.constant 0 : i32
    return %arg0, %c0_i32 : i32, i32
  }
}

</mosaic_0001>

<bundles_post_ra>
// kernel: tpu_custom_call.1
= control target key start
LH: loop header
LB: loop body
LE: loop exit
PB: predicated region body
PF: predicated region fallthrough
CT: control target
= control target key end

     0   :  { %16 = vsyncpa [#allocation3], 0  ;;  %s6293_s0 = inlined_call_operand.hbm [shape: bf16[128,1024], index: 0, kind: input, shape index: {}]   ;;  %s6294_s1 = inlined_call_operand.hbm [shape: bf16[1024,256], index: 1, kind: input, shape index: {}]   ;;  %s6295_s2 = inlined_call_operand.hbm [shape: f32[1,256], index: 2, kind: input, shape index: {}]   ;;  %s6296_s3 = inlined_call_operand.hbm [shape: bf16[256,256], index: 3, kind: input, shape index: {}]   ;;  %s6297_s4 = inlined_call_operand.vmem [shape: f32[1,256], index: 4, kind: input, shape index: {}]   ;;  %s6298_s5 = inlined_call_operand.hbm [shape: bf16[256,256], index: 5, kind: input, shape index: {}]   ;;  %s6299_s6 = inlined_call_operand.vmem [shape: f32[1,256], index: 6, kind: input, shape index: {}]   ;;  %s6300_s7 = inlined_call_operand.hbm [shape: bf16[256,256], index: 7, kind: input, shape index: {}]   ;;  %s6301_s8 = inlined_call_operand.vmem [shape: f32[1,256], index: 8, kind: input, shape index: {}]   ;;  %s6302_s9 = inlined_call_operand.hbm [shape: bf16[256,128], index: 9, kind: input, shape index: {}]   ;;  %s6303_s10 = inlined_call_operand.vmem [shape: f32[1,128], index: 10, kind: input, shape index: {}]   ;;  %s6304_s11 = inlined_call_operand.hbm [shape: f32[128,128], index: 11, kind: output, shape index: {}]  }
   0x1   :  { %17 = vsyncpa [#allocation6], 0 }
   0x2   :  { %18 = vsyncpa [#allocation9], 0 }
   0x3   :  { %19 = vsyncpa [#allocation12], 0  ;;  %s38_s19 = sshll.u32 %s6294_s1, 4  ;;  %s39_s19 = int_to_ptr.hbm [resolvable:$true] %s38_s19 }
   0x4   :  { %20 = vsyncpa [#allocation4], 0  ;;  %s5484_s20 = smov [#allocation5]   ;;  %s62_s24 = sshll.u32 %s6296_s3, 4  ;;  %s63_s24 = int_to_ptr.hbm [resolvable:$true] %s62_s24 }
   0x5   :  { %s40_s21 = sshll.u32 %s5484_s20, 4  ;;  %s5485_s25 = smov 128   ;;  %s41_s21 = int_to_ptr.vmem [resolvable:$true] %s40_s21 }
   0x6   :  { %s5486_s26 = smov 8   ;;  %s5487_s27 = smov [#allocation8]  }
   0x7   :  { %46 = dma.hbm_to_vmem [thread:$0]  %s39_s19, 16384, %s41_s21, [#allocation6], %s5485_s25, %s5485_s25, %s5486_s26  }
   0x8   :  { %s64_s28 = sshll.u32 %s5487_s27, 4  ;;  %s92_s30 = sshll.u32 %s6300_s7, 4  ;;  %s65_s28 = int_to_ptr.vmem [resolvable:$true] %s64_s28  ;;  %s93_s30 = int_to_ptr.hbm [resolvable:$true] %s92_s30 }
   0x9   :  { %70 = dma.hbm_to_vmem [thread:$0]  %s63_s24, 4096, %s65_s28, [#allocation9], %s5485_s25, %s5485_s25, %s5486_s26  }
   0xa   :  { %s25_s13 = sshll.u32 %s6293_s0, 4  ;;  %s5488_s14 = smov [#allocation11]   ;;  %s26_s13 = int_to_ptr.hbm [resolvable:$true] %s25_s13 }
   0xb   :  { %s94_s15 = sshll.u32 %s5488_s14, 4  ;;  %s5489_s16 = smov [#allocation2]   ;;  %s95_s15 = int_to_ptr.vmem [resolvable:$true] %s94_s15 }
   0xc   :  { %100 = dma.hbm_to_vmem [thread:$0]  %s93_s30, 4096, %s95_s15, [#allocation12], %s5485_s25, %s5485_s25, %s5486_s26  }
   0xd   :  { %s27_s7 = sshll.u32 %s5489_s16, 4  ;;  %s5490_s17 = smov 512   ;;  %s28_s7 = int_to_ptr.vmem [resolvable:$true] %s27_s7 }
   0xe   :  { %s5491_s18 = smov 32   ;;  %s52_s21 = sshll.u32 %s6295_s2, 4  ;;  %s53_s21 = int_to_ptr.hbm [resolvable:$true] %s52_s21 }
   0xf   :  { %33 = dma.hbm_to_vmem [thread:$0]  %s26_s13, 8192, %s28_s7, [#allocation3], %s5490_s17, %s5490_s17, %s5491_s18  }
  0x10   :  { %s5492_s0 = smov [#allocation7]   ;;  %s77_s27 = sshll.u32 %s6298_s5, 4  ;;  %s78_s27 = int_to_ptr.hbm [resolvable:$true] %s77_s27 }
  0x11   :  { %s54_s22 = sshll.u32 %s5492_s0, 4  ;;  %s5493_s28 = smov [#allocation10]   ;;  %s55_s22 = int_to_ptr.vmem [resolvable:$true] %s54_s22 }
  0x12   :  { %57 = dma.hbm_to_vmem [thread:$0]  %s53_s21, 32, %s55_s22, [#allocation6]  }
  0x13   :  { %s79_s29 = sshll.u32 %s5493_s28, 4  ;;  %s107_s3 = sshll.u32 %s6302_s9, 4  ;;  %s80_s29 = int_to_ptr.vmem [resolvable:$true] %s79_s29  ;;  %s108_s3 = int_to_ptr.hbm [resolvable:$true] %s107_s3 }
  0x14   :  { %85 = dma.hbm_to_vmem [thread:$0]  %s78_s27, 4096, %s80_s29, [#allocation9], %s5485_s25, %s5485_s25, %s5486_s26  }
  0x15   :  { %s5494_s2 = smov [#allocation13]   ;;  %s5495_s13 = smov 64  }
  0x16   :  { %s109_s12 = sshll.u32 %s5494_s2, 4  ;;  %s5496_s14 = smov 4   ;;  %s110_s12 = int_to_ptr.vmem [resolvable:$true] %s109_s12 }
  0x17   :  { %115 = dma.hbm_to_vmem [thread:$0]  %s108_s3, 2048, %s110_s12, [#allocation12], %s5495_s13, %s5495_s13, %s5496_s14  }
  0x18   :  { %5474 = dma.done.wait [#allocation3], 8192  }
  0x19   :  { %5475 = vsyncadd [#allocation3], 4294959104 }
  0x1a   :  { %5476 = dma.done.wait [#allocation6], 16416  }
  0x1b   :  { %5477 = vsyncadd [#allocation6], 4294950880 }
  0x1c   :  { %5478 = dma.done.wait [#allocation9], 8192  }
  0x1d   :  { %5479 = vsyncadd [#allocation9], 4294959104 }
  0x1e   :  { %5480 = dma.done.wait [#allocation12], 6144  }
  0x1f   :  { %5481 = vsyncadd [#allocation12], 4294961152  ;;  %v4044_v0 = vld [vmem:[#allocation5 + $0x70] sm:$0xf]  ;;  %v5025_v1 = vld [vmem:[#allocation5 + $0x74] sm:$0xf0] }
  0x20   :  { %v4108_v2 = vld [vmem:[#allocation5 + $0xf0] sm:$0xf]  ;;  %v4045_v3 = vor.u32 %v5025_v1, %v4044_v0  ;;  %v5041_v4 = vld [vmem:[#allocation5 + $0xf4] sm:$0xf0]  ;;  %v4036_v5 = vld [vmem:[#allocation5 + $0x60] sm:$0xf] }
  0x21   :  { %v5023_v6 = vld [vmem:[#allocation5 + $0x64] sm:$0xf0]  ;;  %v4109_v7 = vor.u32 %v5041_v4, %v4108_v2  ;;  %v4100_v8 = vld [vmem:[#allocation5 + $0xe0] sm:$0xf]  ;;  %v4028_v12 = vld [vmem:[#allocation5 + $0x50] sm:$0xf] }
  0x22   :  { %v5039_v9 = vld [vmem:[#allocation5 + $0xe4] sm:$0xf0]  ;;  %1304 = vmatpush.bf16.msra.mxu0 %v4045_v3  ;;  %5250 = vmatpush.bf16.msra.mxu2 %v4045_v3  ;;  %v4037_v10 = vor.u32 %v5023_v6, %v4036_v5  ;;  %v5021_v13 = vld [vmem:[#allocation5 + $0x54] sm:$0xf0]  ;;  %v4092_v14 = vld [vmem:[#allocation5 + $0xd0] sm:$0xf] }
  0x23   :  { %5258 = vmatpush.bf16.msra.mxu3 %v4109_v7  ;;  %v4101_v11 = vor.u32 %v5039_v9, %v4100_v8  ;;  %1353 = vmatpush.bf16.msra.mxu1 %v4109_v7  ;;  %v5037_v15 = vld [vmem:[#allocation5 + $0xd4] sm:$0xf0]  ;;  %v4029_v16 = vor.u32 %v5021_v13, %v4028_v12  ;;  %v4020_v18 = vld [vmem:[#allocation5 + $0x40] sm:$0xf]  ;;  %v5019_v19 = vld [vmem:[#allocation5 + $0x44] sm:$0xf0] }
  0x24   :  { %v4093_v17 = vor.u32 %v5037_v15, %v4092_v14  ;;  %v4084_v20 = vld [vmem:[#allocation5 + $0xc0] sm:$0xf]  ;;  %v5035_v21 = vld [vmem:[#allocation5 + $0xc4] sm:$0xf0]  ;;  %v4021_v22 = vor.u32 %v5019_v19, %v4020_v18  ;;  %v4012_v24 = vld [vmem:[#allocation5 + $0x30] sm:$0xf] }
  0x25   :  { %v4085_v23 = vor.u32 %v5035_v21, %v4084_v20  ;;  %v5017_v25 = vld [vmem:[#allocation5 + $0x34] sm:$0xf0]  ;;  %v4076_v26 = vld [vmem:[#allocation5 + $0xb0] sm:$0xf]  ;;  %v4004_v30 = vld [vmem:[#allocation5 + $0x20] sm:$0xf] }
  0x26   :  { %1305 = vmatpush.bf16.msra.mxu0 %v4037_v10  ;;  %5251 = vmatpush.bf16.msra.mxu2 %v4037_v10  ;;  %v5033_v27 = vld [vmem:[#allocation5 + $0xb4] sm:$0xf0]  ;;  %v4013_v28 = vor.u32 %v5017_v25, %v4012_v24  ;;  %v5015_v31 = vld [vmem:[#allocation5 + $0x24] sm:$0xf0]  ;;  %v4068_v32 = vld [vmem:[#allocation5 + $0xa0] sm:$0xf] }
  0x27   :  { %5259 = vmatpush.bf16.msra.mxu3 %v4101_v11  ;;  %1354 = vmatpush.bf16.msra.mxu1 %v4101_v11  ;;  %v4077_v29 = vor.u32 %v5033_v27, %v4076_v26  ;;  %v5031_v33 = vld [vmem:[#allocation5 + $0xa4] sm:$0xf0]  ;;  %v4005_v34 = vor.u32 %v5015_v31, %v4004_v30  ;;  %v3996_v36 = vld [vmem:[#allocation5 + $0x10] sm:$0xf]  ;;  %v5013_v37 = vld [vmem:[#allocation5 + $0x14] sm:$0xf0] }
  0x28   :  { %v4069_v35 = vor.u32 %v5031_v33, %v4068_v32  ;;  %v4060_v38 = vld [vmem:[#allocation5 + $0x90] sm:$0xf]  ;;  %v5029_v39 = vld [vmem:[#allocation5 + $0x94] sm:$0xf0]  ;;  %v3997_v40 = vor.u32 %v5013_v37, %v3996_v36  ;;  %v3988_v42 = vld [vmem:[#allocation5] sm:$0xf] }
  0x29   :  { %v4061_v41 = vor.u32 %v5029_v39, %v4060_v38  ;;  %v5011_v43 = vld [vmem:[#allocation5 + $0x4] sm:$0xf0]  ;;  %v4052_v44 = vld [vmem:[#allocation5 + $0x80] sm:$0xf]  ;;  %v4172_v46 = vld [vmem:[#allocation5 + $0x170] sm:$0xf] }
  0x2a   :  { %1306 = vmatpush.bf16.msra.mxu0 %v4029_v16  ;;  %5252 = vmatpush.bf16.msra.mxu2 %v4029_v16  ;;  %v5027_v45 = vld [vmem:[#allocation5 + $0x84] sm:$0xf0]  ;;  %v5057_v47 = vld [vmem:[#allocation5 + $0x174] sm:$0xf0]  ;;  %v3732_v48 = vld [vmem:[#allocation2] sm:$0xf]  ;;  %v3989_v51 = vor.u32 %v5011_v43, %v3988_v42 }
  0x2b   :  { %5260 = vmatpush.bf16.msra.mxu3 %v4093_v17  ;;  %1355 = vmatpush.bf16.msra.mxu1 %v4093_v17  ;;  %v4236_v49 = vld [vmem:[#allocation5 + $0x1f0] sm:$0xf]  ;;  %v5073_v50 = vld [vmem:[#allocation5 + $0x1f4] sm:$0xf0]  ;;  %v4950_v52 = vld [vmem:[#allocation2 + $0x1c] sm:$0xf0]  ;;  %v4053_v55 = vor.u32 %v5027_v45, %v4052_v44  ;;  %v4173_v58 = vor.u32 %v5057_v47, %v4172_v46 }
  0x2c   :  { %v3860_v53 = vld [vmem:[#allocation2 + $0x100] sm:$0xf]  ;;  %v4978_v56 = vld [vmem:[#allocation2 + $0x104] sm:$0xf]  ;;  %v4237_v60 = vor.u32 %v5073_v50, %v4236_v49  ;;  %v5055_v61 = vld [vmem:[#allocation5 + $0x164] sm:$0xf0]  ;;  %v5591_v0 = vor.u32 %v4950_v52, %v3732_v48 }
  0x2d   :  { %v4982_v54 = vld [vmem:[#allocation2 + $0x11c] sm:$0xf0]  ;;  %v3862_v57 = vld [vmem:[#allocation2 + $0x120] sm:$0xf0]  ;;  %v5071_v3 = vld [vmem:[#allocation5 + $0x1e4] sm:$0xf0] }
  0x2e   :  { %1307 = vmatpush.bf16.msra.mxu0 %v4021_v22  ;;  %5253 = vmatpush.bf16.msra.mxu2 %v4021_v22  ;;  %v4164_v59 = vld [vmem:[#allocation5 + $0x160] sm:$0xf]  ;;  %v4946_v62 = vld [vmem:[#allocation2 + $0x4] sm:$0xf]  ;;  %v5593_v1 = vor.u32 %v4982_v54, %v3860_v53  ;;  %v5595_v4 = vor.u32 %v4978_v56, %v3862_v57  ;;  %v4156_v7 = vld [vmem:[#allocation5 + $0x150] sm:$0xf] }
  0x2f   :  { %5261 = vmatpush.bf16.msra.mxu3 %v4085_v23  ;;  %1356 = vmatpush.bf16.msra.mxu1 %v4085_v23  ;;  %v3734_v63 = vld [vmem:[#allocation2 + $0x20] sm:$0xf0]  ;;  %v4228_v2 = vld [vmem:[#allocation5 + $0x1e0] sm:$0xf]  ;;  %v4165_v5 = vor.u32 %v5055_v61, %v4164_v59  ;;  %v5053_v9 = vld [vmem:[#allocation5 + $0x154] sm:$0xf0] }
  0x30   :  { %v5597_v6 = vor.u32 %v4946_v62, %v3734_v63  ;;  %v4229_v8 = vor.u32 %v5071_v3, %v4228_v2  ;;  %v4300_v10 = vld [vmem:[#allocation5 + $0x270] sm:$0xf]  ;;  %v5089_v11 = vld [vmem:[#allocation5 + $0x274] sm:$0xf0]  ;;  %v4157_v15 = vor.u32 %v5053_v9, %v4156_v7  ;;  %v4292_v16 = vld [vmem:[#allocation5 + $0x260] sm:$0xf] }
  0x31   :  { %v4220_v12 = vld [vmem:[#allocation5 + $0x1d0] sm:$0xf]  ;;  %v5069_v13 = vld [vmem:[#allocation5 + $0x1d4] sm:$0xf0]  ;;  %v4301_v14 = vor.u32 %v5089_v11, %v4300_v10  ;;  %v5087_v17 = vld [vmem:[#allocation5 + $0x264] sm:$0xf0] }
  0x32   :  { %1308 = vmatpush.bf16.msra.mxu0 %v4013_v28  ;;  %5254 = vmatpush.bf16.msra.mxu2 %v4013_v28  ;;  %v4221_v18 = vor.u32 %v5069_v13, %v4220_v12  ;;  %v4148_v19 = vld [vmem:[#allocation5 + $0x140] sm:$0xf]  ;;  %v5051_v20 = vld [vmem:[#allocation5 + $0x144] sm:$0xf0]  ;;  %v4293_v22 = vor.u32 %v5087_v17, %v4292_v16  ;;  %v4284_v24 = vld [vmem:[#allocation5 + $0x250] sm:$0xf] }
  0x33   :  { %5262 = vmatpush.bf16.msra.mxu3 %v4077_v29  ;;  %1357 = vmatpush.bf16.msra.mxu1 %v4077_v29  ;;  %v4212_v21 = vld [vmem:[#allocation5 + $0x1c0] sm:$0xf]  ;;  %v5067_v23 = vld [vmem:[#allocation5 + $0x1c4] sm:$0xf0]  ;;  %v5085_v25 = vld [vmem:[#allocation5 + $0x254] sm:$0xf0]  ;;  %v4149_v26 = vor.u32 %v5051_v20, %v4148_v19 }
  0x34   :  { %v4364_v27 = vld [vmem:[#allocation5 + $0x2f0] sm:$0xf]  ;;  %v5105_v28 = vld [vmem:[#allocation5 + $0x2f4] sm:$0xf0]  ;;  %v3764_v29 = vld [vmem:[#allocation2 + $0x40] sm:$0xf]  ;;  %v4213_v30 = vor.u32 %v5067_v23, %v4212_v21 }
  0x35   :  { %v4140_v31 = vld [vmem:[#allocation5 + $0x130] sm:$0xf]  ;;  %v5049_v32 = vld [vmem:[#allocation5 + $0x134] sm:$0xf0]  ;;  %v4276_v37 = vld [vmem:[#allocation5 + $0x240] sm:$0xf] }
  0x36   :  { %1309 = vmatpush.bf16.msra.mxu0 %v4005_v34  ;;  %5255 = vmatpush.bf16.msra.mxu2 %v4005_v34  ;;  %v4204_v33 = vld [vmem:[#allocation5 + $0x1b0] sm:$0xf]  ;;  %v4285_v34 = vor.u32 %v5085_v25, %v4284_v24  ;;  %v5065_v36 = vld [vmem:[#allocation5 + $0x1b4] sm:$0xf0]  ;;  %v5083_v38 = vld [vmem:[#allocation5 + $0x244] sm:$0xf0]  ;;  %v4141_v45 = vor.u32 %v5049_v32, %v4140_v31 }
  0x37   :  { %5263 = vmatpush.bf16.msra.mxu3 %v4069_v35  ;;  %1358 = vmatpush.bf16.msra.mxu1 %v4069_v35  ;;  %v4365_v35 = vor.u32 %v5105_v28, %v4364_v27  ;;  %v4958_v39 = vld [vmem:[#allocation2 + $0x5c] sm:$0xf0]  ;;  %v4986_v42 = vld [vmem:[#allocation2 + $0x144] sm:$0xf]  ;;  %v4205_v47 = vor.u32 %v5065_v36, %v4204_v33  ;;  %v5047_v49 = vld [vmem:[#allocation5 + $0x124] sm:$0xf0]  ;;  %v4277_v50 = vor.u32 %v5083_v38, %v4276_v37 }
  0x38   :  { %v3894_v43 = vld [vmem:[#allocation2 + $0x160] sm:$0xf0]  ;;  %v4132_v48 = vld [vmem:[#allocation5 + $0x120] sm:$0xf]  ;;  %v5063_v54 = vld [vmem:[#allocation5 + $0x1a4] sm:$0xf0] }
  0x39   :  { %v4954_v44 = vld [vmem:[#allocation2 + $0x44] sm:$0xf]  ;;  %v4196_v53 = vld [vmem:[#allocation5 + $0x1a0] sm:$0xf]  ;;  %v4133_v57 = vor.u32 %v5047_v49, %v4132_v48  ;;  %v4268_v59 = vld [vmem:[#allocation5 + $0x230] sm:$0xf] }
  0x3a   :  { %1310 = vmatpush.bf16.msra.mxu0 %v3997_v40  ;;  %5256 = vmatpush.bf16.msra.mxu2 %v3997_v40  ;;  %v3892_v40 = vld [vmem:[#allocation2 + $0x140] sm:$0xf]  ;;  %v3766_v46 = vld [vmem:[#allocation2 + $0x60] sm:$0xf0]  ;;  %v5103_v63 = vld [vmem:[#allocation5 + $0x2e4] sm:$0xf0] }
  0x3b   :  { %5264 = vmatpush.bf16.msra.mxu3 %v4061_v41  ;;  %1359 = vmatpush.bf16.msra.mxu1 %v4061_v41  ;;  %v4990_v41 = vld [vmem:[#allocation2 + $0x15c] sm:$0xf0]  ;;  %v5609_v56 = vor.u32 %v4954_v44, %v3766_v46  ;;  %v4124_v2 = vld [vmem:[#allocation5 + $0x110] sm:$0xf]  ;;  %v5045_v3 = vld [vmem:[#allocation5 + $0x114] sm:$0xf0] }
  0x3c   :  { %v5605_v52 = vor.u32 %v4990_v41, %v3892_v40  ;;  %v4356_v62 = vld [vmem:[#allocation5 + $0x2e0] sm:$0xf]  ;;  %v4188_v7 = vld [vmem:[#allocation5 + $0x190] sm:$0xf]  ;;  %v5061_v9 = vld [vmem:[#allocation5 + $0x194] sm:$0xf0] }
  0x3d   :  { %v4260_v10 = vld [vmem:[#allocation5 + $0x220] sm:$0xf]  ;;  %v5079_v11 = vld [vmem:[#allocation5 + $0x224] sm:$0xf0]  ;;  %v4189_v12 = vor.u32 %v5061_v9, %v4188_v7  ;;  %v4252_v19 = vld [vmem:[#allocation5 + $0x210] sm:$0xf] }
  0x3e   :  { %1311 = vmatpush.bf16.msra.mxu0 %v3989_v51  ;;  %5257 = vmatpush.bf16.msra.mxu2 %v3989_v51  ;;  %v5603_v51 = vor.u32 %v4958_v39, %v3764_v29  ;;  %v4261_v13 = vor.u32 %v5079_v11, %v4260_v10  ;;  %v4116_v16 = vld [vmem:[#allocation5 + $0x100] sm:$0xf]  ;;  %v5077_v20 = vld [vmem:[#allocation5 + $0x214] sm:$0xf0]  ;;  %v5059_v25 = vld [vmem:[#allocation5 + $0x184] sm:$0xf0] }
  0x3f   :  { %5265 = vmatpush.bf16.msra.mxu3 %v4053_v55  ;;  %1360 = vmatpush.bf16.msra.mxu1 %v4053_v55  ;;  %v5607_v55 = vor.u32 %v4986_v42, %v3894_v43  ;;  %v4340_v21 = vld [vmem:[#allocation5 + $0x2c0] sm:$0xf]  ;;  %v4253_v27 = vor.u32 %v5077_v20, %v4252_v19  ;;  %v5075_v32 = vld [vmem:[#allocation5 + $0x204] sm:$0xf0]  ;;  %v3926_v36 = vld [vmem:[#allocation2 + $0x1a0] sm:$0xf0] }
  0x40   :  { %v4180_v23 = vld [vmem:[#allocation5 + $0x180] sm:$0xf]  ;;  %v4332_v37 = vld [vmem:[#allocation5 + $0x2b0] sm:$0xf]  ;;  %v5097_v38 = vld [vmem:[#allocation5 + $0x2b4] sm:$0xf0] }
  0x41   :  { %1312 = vmatmul.bf16.vlgmr.msra.gmra.mxu0 %v5591_v0  ;;  %1332 = vmatmul.bf16.vlgmr.msra.gmra.mxu2 %v5593_v1  ;;  %v4181_v28 = vor.u32 %v5059_v25, %v4180_v23  ;;  %v4966_v29 = vld [vmem:[#allocation2 + $0x9c] sm:$0xf0]  ;;  %v4962_v39 = vld [vmem:[#allocation2 + $0x84] sm:$0xf]  ;;  %v5095_v48 = vld [vmem:[#allocation5 + $0x2a4] sm:$0xf0] }
  0x42   :  { %1402 = vmatpush.bf16.msrb.mxu2 %v4173_v58  ;;  %1381 = vmatmul.bf16.vlgmr.msra.gmra.mxu3 %v5595_v4  ;;  %v4197_v58 = vor.u32 %v5063_v54, %v4196_v53  ;;  %v4244_v31 = vld [vmem:[#allocation5 + $0x200] sm:$0xf]  ;;  %v3798_v40 = vld [vmem:[#allocation2 + $0xa0] sm:$0xf0]  ;;  %v4428_v49 = vld [vmem:[#allocation5 + $0x370] sm:$0xf] }
  0x43   :  { %1451 = vmatpush.bf16.msrb.mxu3 %v4237_v60  ;;  %1361 = vmatmul.bf16.vlgmr.msra.gmra.mxu1 %v5597_v6  ;;  %v5081_v60 = vld [vmem:[#allocation5 + $0x234] sm:$0xf0]  ;;  %v3924_v33 = vld [vmem:[#allocation2 + $0x180] sm:$0xf]  ;;  %v4245_v41 = vor.u32 %v5075_v32, %v4244_v31  ;;  %v5621_v46 = vor.u32 %v4962_v39, %v3798_v40  ;;  %v4492_v54 = vld [vmem:[#allocation5 + $0x3f0] sm:$0xf] }
  0x44   :  { %1500 = vmatpush.bf16.msrb.mxu0 %v4301_v14  ;;  %1549 = vmatpush.bf16.msrb.mxu1 %v4365_v35  ;;  %v4269_v61 = vor.u32 %v5081_v60, %v4268_v59  ;;  %v4348_v14 = vld [vmem:[#allocation5 + $0x2d0] sm:$0xf]  ;;  %v4994_v35 = vld [vmem:[#allocation2 + $0x184] sm:$0xf]  ;;  %v5093_v60 = vld [vmem:[#allocation5 + $0x294] sm:$0xf0] }
  0x45   :  { %v5619_v44 = vor.u32 %v4994_v35, %v3926_v36  ;;  %v4316_v59 = vld [vmem:[#allocation5 + $0x290] sm:$0xf]  ;;  %v3956_v7 = vld [vmem:[#allocation2 + $0x1c0] sm:$0xf]  ;;  %v5002_v10 = vld [vmem:[#allocation2 + $0x1c4] sm:$0xf] }
  0x46   :  { %1403 = vmatpush.bf16.msrb.mxu2 %v4165_v5  ;;  %v4357_v5 = vor.u32 %v5103_v63, %v4356_v62  ;;  %v4317_v62 = vor.u32 %v5093_v60, %v4316_v59  ;;  %v4308_v63 = vld [vmem:[#allocation5 + $0x280] sm:$0xf]  ;;  %v3958_v11 = vld [vmem:[#allocation2 + $0x1e0] sm:$0xf0]  ;;  %v5119_v19 = vld [vmem:[#allocation5 + $0x364] sm:$0xf0] }
  0x47   :  { %1452 = vmatpush.bf16.msrb.mxu3 %v4229_v8  ;;  %v4125_v8 = vor.u32 %v5045_v3, %v4124_v2  ;;  %v5091_v2 = vld [vmem:[#allocation5 + $0x284] sm:$0xf0]  ;;  %v3828_v3 = vld [vmem:[#allocation2 + $0xc0] sm:$0xf]  ;;  %v3750_v31 = vld [vmem:[#allocation2 + $0x30] sm:$0xf0] }
  0x48   :  { %1501 = vmatpush.bf16.msrb.mxu0 %v4293_v22  ;;  %1550 = vmatpush.bf16.msrb.mxu1 %v4357_v5  ;;  %v5099_v22 = vld [vmem:[#allocation5 + $0x2c4] sm:$0xf0]  ;;  %v4974_v5 = vld [vmem:[#allocation2 + $0xdc] sm:$0xf0]  ;;  %v4309_v9 = vor.u32 %v5091_v2, %v4308_v63  ;;  %v4412_v36 = vld [vmem:[#allocation5 + $0x350] sm:$0xf] }
  0x49   :  { %v4484_v20 = vld [vmem:[#allocation5 + $0x3e0] sm:$0xf]  ;;  %v4951_v25 = vld [vmem:[#allocation2 + $0x24] sm:$0xf0]  ;;  %v5133_v40 = vld [vmem:[#allocation5 + $0x3d4] sm:$0xf0] }
  0x4a   :  { %1404 = vmatpush.bf16.msrb.mxu2 %v4157_v15  ;;  %v5101_v15 = vld [vmem:[#allocation5 + $0x2d4] sm:$0xf0]  ;;  %v5115_v63 = vld [vmem:[#allocation5 + $0x344] sm:$0xf0]  ;;  %v4468_v2 = vld [vmem:[#allocation5 + $0x3c0] sm:$0xf] }
  0x4b   :  { %1453 = vmatpush.bf16.msrb.mxu3 %v4221_v18  ;;  %v4349_v17 = vor.u32 %v5101_v15, %v4348_v14  ;;  %v5043_v18 = vld [vmem:[#allocation5 + $0x104] sm:$0xf0]  ;;  %v5627_v14 = vor.u32 %v4974_v5, %v3828_v3  ;;  %s3714_s20 = sshll.u32 %s6304_s11, 4  ;;  %s3715_s20 = int_to_ptr.hbm [resolvable:$true] %s3714_s20 }
  0x4c   :  { %1502 = vmatpush.bf16.msrb.mxu0 %v4285_v34  ;;  %v4117_v24 = vor.u32 %v5043_v18, %v4116_v16  ;;  %v4998_v34 = vld [vmem:[#allocation2 + $0x19c] sm:$0xf0]  ;;  %v5631_v16 = vor.u32 %v5002_v10, %v3958_v11  ;;  %v5131_v5 = vld [vmem:[#allocation5 + $0x3c4] sm:$0xf0]  ;;  %v3812_v10 = vld [vmem:[#allocation2 + $0x90] sm:$0xf] }
  0x4d   :  { %1551 = vmatpush.bf16.msrb.mxu1 %v4349_v17  ;;  %v5617_v43 = vor.u32 %v4998_v34, %v3924_v33  ;;  %v4420_v18 = vld [vmem:[#allocation5 + $0x360] sm:$0xf]  ;;  %v4968_v11 = vld [vmem:[#allocation2 + $0xac] sm:$0xf0] }
  0x4e   :  { %1405 = vmatpush.bf16.msrb.mxu2 %v4149_v26  ;;  %v3796_v26 = vld [vmem:[#allocation2 + $0x80] sm:$0xf] }
  0x4f   :  { %1454 = vmatpush.bf16.msrb.mxu3 %v4213_v30  ;;  %v4341_v30 = vor.u32 %v5099_v22, %v4340_v21  ;;  %v5615_v42 = vor.u32 %v4966_v29, %v3796_v26  ;;  %v4421_v21 = vor.u32 %v5119_v19, %v4420_v18  ;;  %v5135_v22 = vld [vmem:[#allocation5 + $0x3e4] sm:$0xf0]  ;;  %v3748_v26 = vld [vmem:[#allocation2 + $0x10] sm:$0xf]  ;;  %v3742_v29 = vld [vmem:[#allocation2 + $0x28] sm:$0xf0] }
  0x50   :  { %1503 = vmatpush.bf16.msrb.mxu0 %v4277_v50  ;;  %v5121_v50 = vld [vmem:[#allocation5 + $0x374] sm:$0xf0]  ;;  %v4485_v23 = vor.u32 %v5135_v22, %v4484_v20  ;;  %v4964_v18 = vld [vmem:[#allocation2 + $0x94] sm:$0xf] }
  0x51   :  { %1317 = vmatmul.bf16.gmra.mxu0 %v5603_v51  ;;  %1337 = vmatmul.bf16.gmra.mxu2 %v5605_v52  ;;  %v3814_v19 = vld [vmem:[#allocation2 + $0xb0] sm:$0xf0] }
  0x52   :  { %1406 = vmatpush.bf16.msrb.mxu2 %v4141_v45  ;;  %1386 = vmatmul.bf16.gmra.mxu3 %v5607_v55  ;;  %v4333_v45 = vor.u32 %v5097_v38, %v4332_v37  ;;  %v5117_v37 = vld [vmem:[#allocation5 + $0x354] sm:$0xf0]  ;;  %v4476_v38 = vld [vmem:[#allocation5 + $0x3d0] sm:$0xf] }
  0x53   :  { %1455 = vmatpush.bf16.msrb.mxu3 %v4205_v47  ;;  %1366 = vmatmul.bf16.gmra.mxu1 %v5609_v56  ;;  %v4324_v47 = vld [vmem:[#allocation5 + $0x2a0] sm:$0xf]  ;;  %v4413_v39 = vor.u32 %v5117_v37, %v4412_v36  ;;  %v3844_v36 = vld [vmem:[#allocation2 + $0xd0] sm:$0xf] }
  0x54   :  { %1504 = vmatpush.bf16.msrb.mxu0 %v4269_v61  ;;  %1552 = vmatpush.bf16.msrb.mxu1 %v4341_v30  ;;  %v4325_v53 = vor.u32 %v5095_v48, %v4324_v47  ;;  %v4948_v30 = vld [vmem:[#allocation2 + $0x14] sm:$0xf]  ;;  %v4959_v47 = vld [vmem:[#allocation2 + $0x64] sm:$0xf0]  ;;  %v3780_v48 = vld [vmem:[#allocation2 + $0x50] sm:$0xf] }
  0x55   :  { %v5645_v35 = vor.u32 %v4948_v30, %v3750_v31  ;;  %v3836_v30 = vld [vmem:[#allocation2 + $0xc8] sm:$0xf]  ;;  %v4976_v37 = vld [vmem:[#allocation2 + $0xec] sm:$0xf0] }
  0x56   :  { %1407 = vmatpush.bf16.msrb.mxu2 %v4133_v57  ;;  %v4429_v57 = vor.u32 %v5121_v50, %v4428_v49  ;;  %v4960_v49 = vld [vmem:[#allocation2 + $0x6c] sm:$0xf0]  ;;  %v4955_v50 = vld [vmem:[#allocation2 + $0x4c] sm:$0xf]  ;;  %v4975_v31 = vld [vmem:[#allocation2 + $0xe4] sm:$0xf0] }
  0x57   :  { %1456 = vmatpush.bf16.msrb.mxu3 %v4197_v58  ;;  %v5137_v58 = vld [vmem:[#allocation5 + $0x3f4] sm:$0xf0]  ;;  %v5653_v59 = vor.u32 %v4960_v49, %v3780_v48 }
  0x58   :  { %1505 = vmatpush.bf16.msrb.mxu0 %v4261_v13  ;;  %1553 = vmatpush.bf16.msrb.mxu1 %v4333_v45  ;;  %v4493_v61 = vor.u32 %v5137_v58, %v4492_v54  ;;  %v3830_v13 = vld [vmem:[#allocation2 + $0xe0] sm:$0xf0]  ;;  %v3772_v45 = vld [vmem:[#allocation2 + $0x48] sm:$0xf]  ;;  %v4956_v54 = vld [vmem:[#allocation2 + $0x54] sm:$0xf] }
  0x59   :  { %v5651_v58 = vor.u32 %v4959_v47, %v3772_v45  ;;  %v5675_v45 = vor.u32 %v4975_v31, %v3836_v30  ;;  %v5677_v47 = vor.u32 %v4976_v37, %v3844_v36  ;;  %v5024_v30 = vld [vmem:[#allocation5 + $0x74] sm:$0xf]  ;;  %v4046_v31 = vld [vmem:[#allocation5 + $0x78] sm:$0xf0]  ;;  %v4380_v36 = vld [vmem:[#allocation5 + $0x310] sm:$0xf] }
  0x5a   :  { %1408 = vmatpush.bf16.msrb.mxu2 %v4125_v8  ;;  %v5006_v8 = vld [vmem:[#allocation2 + $0x1dc] sm:$0xf0]  ;;  %v5109_v37 = vld [vmem:[#allocation5 + $0x314] sm:$0xf0] }
  0x5b   :  { %1457 = vmatpush.bf16.msrb.mxu3 %v4189_v12  ;;  %v4970_v12 = vld [vmem:[#allocation2 + $0xc4] sm:$0xf]  ;;  %v5629_v15 = vor.u32 %v5006_v8, %v3956_v7  ;;  %v4469_v7 = vor.u32 %v5131_v5, %v4468_v2  ;;  %v3804_v8 = vld [vmem:[#allocation2 + $0x88] sm:$0xf]  ;;  %6329 = vst [vmem:[#allocation20_spill] sm:$0xff] %v5677_v47 }
  0x5c   :  { %1506 = vmatpush.bf16.msrb.mxu0 %v4253_v27  ;;  %1554 = vmatpush.bf16.msrb.mxu1 %v4325_v53  ;;  %v5633_v17 = vor.u32 %v4970_v12, %v3830_v13  ;;  %v4952_v27 = vld [vmem:[#allocation2 + $0x2c] sm:$0xf0]  ;;  %v3774_v53 = vld [vmem:[#allocation2 + $0x68] sm:$0xf0]  ;;  %v338_v2 = vld [vmem:[#allocation7] sm:$0x3] }
  0x5d   :  { %v5641_v33 = vor.u32 %v4952_v27, %v3748_v26  ;;  %v5655_v60 = vor.u32 %v4955_v50, %v3774_v53  ;;  %v4963_v12 = vld [vmem:[#allocation2 + $0x8c] sm:$0xf]  ;;  %v4460_v26 = vld [vmem:[#allocation5 + $0x3b0] sm:$0xf]  ;;  %v4388_v50 = vld [vmem:[#allocation5 + $0x320] sm:$0xf] }
  0x5e   :  { %1409 = vmatpush.bf16.msrb.mxu2 %v4117_v24  ;;  %v3740_v24 = vld [vmem:[#allocation2 + $0x8] sm:$0xf]  ;;  %v3806_v13 = vld [vmem:[#allocation2 + $0xa8] sm:$0xf0] }
  0x5f   :  { %1458 = vmatpush.bf16.msrb.mxu3 %v4181_v28  ;;  %v4947_v28 = vld [vmem:[#allocation2 + $0xc] sm:$0xf]  ;;  %v5639_v32 = vor.u32 %v4951_v25, %v3740_v24  ;;  %v5667_v22 = vor.u32 %v4963_v12, %v3806_v13  ;;  %v4396_v24 = vld [vmem:[#allocation5 + $0x330] sm:$0xf]  ;;  %v5113_v25 = vld [vmem:[#allocation5 + $0x334] sm:$0xf0] }
  0x60   :  { %1507 = vmatpush.bf16.msrb.mxu0 %v4245_v41  ;;  %1555 = vmatpush.bf16.msrb.mxu1 %v4317_v62  ;;  %v5643_v34 = vor.u32 %v4947_v28, %v3742_v29  ;;  %v4477_v41 = vor.u32 %v5133_v40, %v4476_v38  ;;  %v4404_v62 = vld [vmem:[#allocation5 + $0x340] sm:$0xf]  ;;  %v4397_v27 = vor.u32 %v5113_v25, %v4396_v24  ;;  %v5129_v28 = vld [vmem:[#allocation5 + $0x3b4] sm:$0xf0]  ;;  %v4971_v38 = vld [vmem:[#allocation2 + $0xcc] sm:$0xf] }
  0x61   :  { %1322 = vmatmul.bf16.gmra.mxu0 %v5615_v42  ;;  %1342 = vmatmul.bf16.gmra.mxu2 %v5617_v43  ;;  %v4405_v3 = vor.u32 %v5115_v63, %v4404_v62  ;;  %v4461_v29 = vor.u32 %v5129_v28, %v4460_v26  ;;  %v4972_v40 = vld [vmem:[#allocation2 + $0xd4] sm:$0xf]  ;;  %v5111_v53 = vld [vmem:[#allocation5 + $0x324] sm:$0xf0]  ;;  %v5687_v13 = vperm.slane %v338_v2, 0 }
  0x62   :  { %1391 = vmatmul.bf16.gmra.mxu3 %v5619_v44  ;;  %1598 = vmatpush.bf16.msra.mxu2 %v4429_v57  ;;  %v3782_v57 = vld [vmem:[#allocation2 + $0x70] sm:$0xf0]  ;;  %v5127_v62 = vld [vmem:[#allocation5 + $0x3a4] sm:$0xf0] }
  0x63   :  { %1371 = vmatmul.bf16.gmra.mxu1 %v5621_v46  ;;  %1647 = vmatpush.bf16.msra.mxu3 %v4493_v61  ;;  %v5657_v61 = vor.u32 %v4956_v54, %v3782_v57  ;;  %v4452_v54 = vld [vmem:[#allocation5 + $0x3a0] sm:$0xf]  ;;  %v4389_v57 = vor.u32 %v5111_v53, %v4388_v50  ;;  %v4983_v5 = vld [vmem:[#allocation2 + $0x124] sm:$0xf0]  ;;  %v3878_v12 = vld [vmem:[#allocation2 + $0x130] sm:$0xf0] }
  0x64   :  { %1556 = vmatpush.bf16.msrb.mxu1 %v4309_v9  ;;  %v4967_v9 = vld [vmem:[#allocation2 + $0xa4] sm:$0xf0]  ;;  %v4453_v63 = vor.u32 %v5127_v62, %v4452_v54  ;;  %v5022_v54 = vld [vmem:[#allocation5 + $0x64] sm:$0xf] }
  0x65   :  { %v5663_v20 = vor.u32 %v4967_v9, %v3804_v8  ;;  %v4984_v8 = vld [vmem:[#allocation2 + $0x12c] sm:$0xf0]  ;;  %v4979_v9 = vld [vmem:[#allocation2 + $0x10c] sm:$0xf] }
  0x66   :  { %1599 = vmatpush.bf16.msra.mxu2 %v4421_v21  ;;  %v5665_v21 = vor.u32 %v4968_v11, %v3812_v10  ;;  %v3870_v10 = vld [vmem:[#allocation2 + $0x128] sm:$0xf0]  ;;  %v4980_v11 = vld [vmem:[#allocation2 + $0x114] sm:$0xf] }
  0x67   :  { %1648 = vmatpush.bf16.msra.mxu3 %v4485_v23  ;;  %v5669_v23 = vor.u32 %v4964_v18, %v3814_v19  ;;  %v5693_v25 = vor.u32 %v4979_v9, %v3870_v10  ;;  %v4030_v9 = vld [vmem:[#allocation5 + $0x58] sm:$0xf0] }
  0x69   :  { %6334 = vst [vmem:[#allocation25_spill] sm:$0xff] %v5693_v25 }
  0x6a   :  { %1600 = vmatpush.bf16.msra.mxu2 %v4413_v39  ;;  %v3838_v39 = vld [vmem:[#allocation2 + $0xe8] sm:$0xf0] }
  0x6b   :  { %1649 = vmatpush.bf16.msra.mxu3 %v4477_v41  ;;  %v3846_v41 = vld [vmem:[#allocation2 + $0xf0] sm:$0xf0]  ;;  %v5679_v48 = vor.u32 %v4971_v38, %v3838_v39  ;;  %v4049_v38 = vor.u32 %v5024_v30, %v4046_v31  ;;  %v4444_v39 = vld [vmem:[#allocation5 + $0x390] sm:$0xf] }
  0x6c   :  { %v5681_v49 = vor.u32 %v4972_v40, %v3846_v41  ;;  %v4381_v40 = vor.u32 %v5109_v37, %v4380_v36  ;;  %v5125_v41 = vld [vmem:[#allocation5 + $0x394] sm:$0xf0]  ;;  %v3908_v30 = vld [vmem:[#allocation2 + $0x150] sm:$0xf]  ;;  %v3902_v36 = vld [vmem:[#allocation2 + $0x168] sm:$0xf0] }
  0x6d   :  { %6330 = vst [vmem:[#allocation21_spill] sm:$0xff] %v5679_v48  ;;  %1696 = vmatpush.bf16.msra.mxu0 %v4049_v38  ;;  %v4445_v53 = vor.u32 %v5125_v41, %v4444_v39  ;;  %v4992_v31 = vld [vmem:[#allocation2 + $0x16c] sm:$0xf0]  ;;  %v4988_v37 = vld [vmem:[#allocation2 + $0x154] sm:$0xf] }
  0x6e   :  { %1601 = vmatpush.bf16.msra.mxu2 %v4405_v3  ;;  %6331 = vst [vmem:[#allocation22_spill] sm:$0xff] %v5681_v49  ;;  %v3868_v3 = vld [vmem:[#allocation2 + $0x108] sm:$0xf]  ;;  %v3910_v38 = vld [vmem:[#allocation2 + $0x170] sm:$0xf0] }
  0x6f   :  { %1650 = vmatpush.bf16.msra.mxu3 %v4469_v7  ;;  %v3876_v7 = vld [vmem:[#allocation2 + $0x110] sm:$0xf]  ;;  %v5689_v18 = vor.u32 %v4983_v5, %v3868_v3  ;;  %v4022_v41 = vld [vmem:[#allocation5 + $0x48] sm:$0xf0] }
  0x70   :  { %v5691_v19 = vor.u32 %v4984_v8, %v3876_v7  ;;  %v5020_v8 = vld [vmem:[#allocation5 + $0x54] sm:$0xf] }
  0x71   :  { %1327 = vmatmul.bf16.gmra.mxu0 %v5627_v14  ;;  %1347 = vmatmul.bf16.gmra.mxu2 %v5629_v15  ;;  %6332 = vst [vmem:[#allocation23_spill] sm:$0xff] %v5689_v18 }
  0x72   :  { %1396 = vmatmul.bf16.gmra.mxu3 %v5631_v16  ;;  %1602 = vmatpush.bf16.msra.mxu2 %v4397_v27  ;;  %6333 = vst [vmem:[#allocation24_spill] sm:$0xff] %v5691_v19  ;;  %v5696_v27 = vor.u32 %v4980_v11, %v3878_v12  ;;  %v4033_v11 = vor.u32 %v5020_v8, %v4030_v9  ;;  %v3900_v12 = vld [vmem:[#allocation2 + $0x148] sm:$0xf] }
  0x73   :  { %1376 = vmatmul.bf16.gmra.mxu1 %v5633_v17  ;;  %1651 = vmatpush.bf16.msra.mxu3 %v4461_v29 }
  0x74   :  { %6335 = vst [vmem:[#allocation26_spill] sm:$0xff] %v5696_v27 }
  0x76   :  { %1603 = vmatpush.bf16.msra.mxu2 %v4389_v57  ;;  %v4038_v57 = vld [vmem:[#allocation5 + $0x68] sm:$0xf0] }
  0x77   :  { %1652 = vmatpush.bf16.msra.mxu3 %v4453_v63  ;;  %v4041_v2 = vor.u32 %v5022_v54, %v4038_v57 }
  0x79   :  { %1697 = vmatpush.bf16.msra.mxu0 %v4041_v2  ;;  %v4110_v2 = vld [vmem:[#allocation5 + $0xf8] sm:$0xf0] }
  0x7a   :  { %1604 = vmatpush.bf16.msra.mxu2 %v4381_v40  ;;  %v5018_v40 = vld [vmem:[#allocation5 + $0x44] sm:$0xf] }
  0x7b   :  { %1653 = vmatpush.bf16.msra.mxu3 %v4445_v53 }
  0x7d   :  { %1698 = vmatpush.bf16.msra.mxu0 %v4033_v11  ;;  %v5720_v11 = vor.u32 %v4988_v37, %v3910_v38 }
  0x7f   :  { %6339 = vst [vmem:[#allocation30_spill] sm:$0xff] %v5720_v11 }
  0x81   :  { %1410 = vmatmul.bf16.vlgmr.msrb.gmra.mxu2 %v5639_v32  ;;  %1508 = vmatmul.bf16.vlgmr.msrb.gmra.mxu0 %v5641_v33 }
  0x82   :  { %1459 = vmatmul.bf16.vlgmr.msrb.gmra.mxu3 %v5643_v34 }
  0x83   :  { %1557 = vmatmul.bf16.vlgmr.msrb.gmra.mxu1 %v5645_v35 }
  0x91   :  { %1415 = vmatmul.bf16.gmra.mxu2 %v5651_v58  ;;  %1513 = vmatmul.bf16.gmra.mxu0 %v5653_v59 }
  0x92   :  { %1464 = vmatmul.bf16.gmra.mxu3 %v5655_v60 }
  0x93   :  { %1562 = vmatmul.bf16.gmra.mxu1 %v5657_v61 }
  0xa1   :  { %1420 = vmatmul.bf16.gmra.mxu2 %v5663_v20  ;;  %1518 = vmatmul.bf16.gmra.mxu0 %v5665_v21 }
  0xa2   :  { %1469 = vmatmul.bf16.gmra.mxu3 %v5667_v22 }
  0xa3   :  { %1567 = vmatmul.bf16.gmra.mxu1 %v5669_v23 }
  0xb1   :  { %1425 = vmatmul.bf16.gmra.mxu2 %v5675_v45  ;;  %1523 = vmatmul.bf16.gmra.mxu0 %v5677_v47 }
  0xb2   :  { %1474 = vmatmul.bf16.gmra.mxu3 %v5679_v48 }
  0xb3   :  { %1572 = vmatmul.bf16.gmra.mxu1 %v5681_v49 }
  0xbe   :  { %v1313_v24 = vpop.f32.mrf.mxu0 }
  0xbf   :  { %v1314_v26 = vadd.f32 %v1313_v24, %v5687_v13  ;;  %v4991_v24 = vld [vmem:[#allocation2 + $0x164] sm:$0xf0] }
  0xc0   :  { %v1362_v28 = vpop.f32.mrf.mxu1  ;;  %v5711_v57 = vor.u32 %v4991_v24, %v3900_v12  ;;  %v5016_v24 = vld [vmem:[#allocation5 + $0x34] sm:$0xf] }
  0xc1   :  { %1430 = vmatmul.bf16.gmra.mxu2 %v5689_v18  ;;  %1528 = vmatmul.bf16.gmra.mxu0 %v5691_v19  ;;  %v5700_v29 = vadd.f32 %v1362_v28, %v1314_v26  ;;  %v4987_v28 = vld [vmem:[#allocation2 + $0x14c] sm:$0xf] }
  0xc2   :  { %1479 = vmatmul.bf16.gmra.mxu3 %v5693_v25  ;;  %6336 = vst [vmem:[#allocation27_spill] sm:$0xff] %v5711_v57  ;;  %v5032_v25 = vld [vmem:[#allocation5 + $0xb4] sm:$0xf] }
  0xc3   :  { %1577 = vmatmul.bf16.gmra.mxu1 %v5696_v27 }
  0xc4   :  { %v1333_v50 = vpop.f32.mrf.mxu2 }
  0xc5   :  { %v1334_v62 = vadd.f32 %v1333_v50, %v5687_v13  ;;  %v1382_v63 = vpop.f32.mrf.mxu3  ;;  %v5040_v50 = vld [vmem:[#allocation5 + $0xf4] sm:$0xf] }
  0xc6   :  { %v1315_v3 = vpop.f32.mrf.mxu0  ;;  %v4113_v8 = vor.u32 %v5040_v50, %v4110_v2  ;;  %v5123_v50 = vld [vmem:[#allocation5 + $0x384] sm:$0xf0]  ;;  %v5036_v2 = vld [vmem:[#allocation5 + $0xd4] sm:$0xf] }
  0xc7   :  { %v5705_v5 = vadd.f32 %v1382_v63, %v1334_v62  ;;  %v1316_v7 = vadd.f32 %v1315_v3, %v5687_v13  ;;  %v5713_v62 = vor.u32 %v4992_v31, %v3908_v30  ;;  %v4025_v63 = vor.u32 %v5018_v40, %v4022_v41  ;;  %v4014_v30 = vld [vmem:[#allocation5 + $0x38] sm:$0xf0]  ;;  %v4372_v31 = vld [vmem:[#allocation5 + $0x300] sm:$0xf]  ;;  %v4102_v40 = vld [vmem:[#allocation5 + $0xe8] sm:$0xf0] }
  0xc8   :  { %v1364_v10 = vpop.f32.mrf.mxu1  ;;  %1745 = vmatpush.bf16.msra.mxu1 %v4113_v8  ;;  %v4436_v41 = vld [vmem:[#allocation5 + $0x380] sm:$0xf] }
  0xc9   :  { %v5708_v26 = vadd.f32 %v1364_v10, %v1316_v7  ;;  %6337 = vst [vmem:[#allocation28_spill] sm:$0xff] %v5713_v62  ;;  %v5715_v7 = vor.u32 %v4987_v28, %v3902_v36  ;;  %1699 = vmatpush.bf16.msra.mxu0 %v4025_v63  ;;  %v5038_v28 = vld [vmem:[#allocation5 + $0xe4] sm:$0xf]  ;;  %v5107_v36 = vld [vmem:[#allocation5 + $0x304] sm:$0xf0] }
  0xca   :  { %v4373_v37 = vor.u32 %v5107_v36, %v4372_v31  ;;  %v4105_v38 = vor.u32 %v5038_v28, %v4102_v40  ;;  %v4006_v63 = vld [vmem:[#allocation5 + $0x28] sm:$0xf0]  ;;  %v5012_v36 = vld [vmem:[#allocation5 + $0x14] sm:$0xf]  ;;  %v5034_v40 = vld [vmem:[#allocation5 + $0xc4] sm:$0xf] }
  0xcb   :  { %6338 = vst [vmem:[#allocation29_spill] sm:$0xff] %v5715_v7 }
  0xcc   :  { %v1335_v39 = vpop.f32.mrf.mxu2  ;;  %1605 = vmatpush.bf16.msra.mxu2 %v4373_v37  ;;  %1746 = vmatpush.bf16.msra.mxu1 %v4105_v38 }
  0xcd   :  { %v1336_v53 = vadd.f32 %v1335_v39, %v5687_v13  ;;  %v1384_v54 = vpop.f32.mrf.mxu3  ;;  %v4017_v39 = vor.u32 %v5016_v24, %v4014_v30  ;;  %v4094_v24 = vld [vmem:[#allocation5 + $0xd8] sm:$0xf0] }
  0xce   :  { %v1318_v3 = vpop.f32.mrf.mxu0 }
  0xcf   :  { %v5717_v9 = vadd.f32 %v1384_v54, %v1336_v53  ;;  %v1319_v10 = vadd.f32 %v1318_v3, %v5687_v13  ;;  %1700 = vmatpush.bf16.msra.mxu0 %v4017_v39  ;;  %v4437_v54 = vor.u32 %v5123_v50, %v4436_v41  ;;  %v3998_v39 = vld [vmem:[#allocation5 + $0x18] sm:$0xf0] }
  0xd0   :  { %v1367_v27 = vpop.f32.mrf.mxu1  ;;  %v4001_v50 = vor.u32 %v5012_v36, %v3998_v39 }
  0xd1   :  { %1435 = vmatmul.bf16.gmra.mxu2 %v5711_v57  ;;  %1533 = vmatmul.bf16.gmra.mxu0 %v5713_v62  ;;  %v5724_v12 = vadd.f32 %v1367_v27, %v1319_v10  ;;  %v5014_v27 = vld [vmem:[#allocation5 + $0x24] sm:$0xf]  ;;  %v4999_v62 = vld [vmem:[#allocation2 + $0x1a4] sm:$0xf0]  ;;  %v3990_v57 = vld [vmem:[#allocation5 + $0x8] sm:$0xf0] }
  0xd2   :  { %1484 = vmatmul.bf16.gmra.mxu3 %v5715_v7  ;;  %v4009_v10 = vor.u32 %v5014_v27, %v4006_v63  ;;  %v4086_v7 = vld [vmem:[#allocation5 + $0xc8] sm:$0xf0]  ;;  %v5000_v63 = vld [vmem:[#allocation2 + $0x1ac] sm:$0xf0] }
  0xd3   :  { %1582 = vmatmul.bf16.gmra.mxu1 %v5720_v11  ;;  %1654 = vmatpush.bf16.msra.mxu3 %v4437_v54  ;;  %v4097_v11 = vor.u32 %v5036_v2, %v4094_v24  ;;  %v4089_v38 = vor.u32 %v5034_v40, %v4086_v7  ;;  %v4995_v27 = vld [vmem:[#allocation2 + $0x18c] sm:$0xf]  ;;  %v3940_v54 = vld [vmem:[#allocation2 + $0x190] sm:$0xf] }
  0xd4   :  { %v1338_v53 = vpop.f32.mrf.mxu2  ;;  %1701 = vmatpush.bf16.msra.mxu0 %v4009_v10  ;;  %v3934_v2 = vld [vmem:[#allocation2 + $0x1a8] sm:$0xf0] }
  0xd5   :  { %v1339_v3 = vadd.f32 %v1338_v53, %v5687_v13  ;;  %v1387_v8 = vpop.f32.mrf.mxu3  ;;  %v3932_v53 = vld [vmem:[#allocation2 + $0x188] sm:$0xf]  ;;  %1747 = vmatpush.bf16.msra.mxu1 %v4097_v11  ;;  %v4078_v11 = vld [vmem:[#allocation5 + $0xb8] sm:$0xf0] }
  0xd6   :  { %v1320_v30 = vpop.f32.mrf.mxu0  ;;  %v5735_v39 = vor.u32 %v4999_v62, %v3932_v53  ;;  %v4081_v19 = vor.u32 %v5032_v25, %v4078_v11  ;;  %v4070_v62 = vld [vmem:[#allocation5 + $0xa8] sm:$0xf0]  ;;  %v5056_v25 = vld [vmem:[#allocation5 + $0x174] sm:$0xf]  ;;  %v4174_v53 = vld [vmem:[#allocation5 + $0x178] sm:$0xf0] }
  0xd7   :  { %v5729_v31 = vadd.f32 %v1387_v8, %v1339_v3  ;;  %v1321_v28 = vadd.f32 %v1320_v30, %v5687_v13  ;;  %v4996_v3 = vld [vmem:[#allocation2 + $0x194] sm:$0xf]  ;;  %v5010_v30 = vld [vmem:[#allocation5 + $0x4] sm:$0xf] }
  0xd8   :  { %v1369_v41 = vpop.f32.mrf.mxu1  ;;  %v3942_v8 = vld [vmem:[#allocation2 + $0x1b0] sm:$0xf0]  ;;  %1702 = vmatpush.bf16.msra.mxu0 %v4001_v50  ;;  %6340 = vst [vmem:[#allocation31_spill] sm:$0xff] %v5735_v39  ;;  %v3993_v7 = vor.u32 %v5010_v30, %v3990_v57  ;;  %v4062_v30 = vld [vmem:[#allocation5 + $0x98] sm:$0xf0] }
  0xd9   :  { %v5732_v37 = vadd.f32 %v1369_v41, %v1321_v28  ;;  %v5737_v28 = vor.u32 %v5000_v63, %v3940_v54  ;;  %1748 = vmatpush.bf16.msra.mxu1 %v4089_v38  ;;  %v5739_v41 = vor.u32 %v4995_v27, %v3934_v2  ;;  %v5744_v49 = vor.u32 %v4996_v3, %v3942_v8  ;;  %v5072_v27 = vld [vmem:[#allocation5 + $0x1f4] sm:$0xf]  ;;  %v4238_v63 = vld [vmem:[#allocation5 + $0x1f8] sm:$0xf0] }
  0xda   :  { %v4177_v54 = vor.u32 %v5056_v25, %v4174_v53  ;;  %v4241_v3 = vor.u32 %v5072_v27, %v4238_v63  ;;  %v5028_v8 = vld [vmem:[#allocation5 + $0x94] sm:$0xf]  ;;  %v5007_v53 = vld [vmem:[#allocation2 + $0x1e4] sm:$0xf0]  ;;  %v3972_v27 = vld [vmem:[#allocation2 + $0x1d0] sm:$0xf] }
  0xdb   :  { %6341 = vst [vmem:[#allocation32_spill] sm:$0xff] %v5737_v28  ;;  %v5008_v63 = vld [vmem:[#allocation2 + $0x1ec] sm:$0xf0] }
  0xdc   :  { %v1340_v24 = vpop.f32.mrf.mxu2  ;;  %6342 = vst [vmem:[#allocation33_spill] sm:$0xff] %v5739_v41  ;;  %1703 = vmatpush.bf16.msra.mxu0 %v3993_v7  ;;  %1794 = vmatpush.bf16.msrb.mxu2 %v4177_v54  ;;  %v5003_v54 = vld [vmem:[#allocation2 + $0x1cc] sm:$0xf] }
  0xdd   :  { %v1341_v10 = vadd.f32 %v1340_v24, %v5687_v13  ;;  %v1389_v36 = vpop.f32.mrf.mxu3  ;;  %6343 = vst [vmem:[#allocation34_spill] sm:$0xff] %v5744_v49  ;;  %v5030_v24 = vld [vmem:[#allocation5 + $0xa4] sm:$0xf]  ;;  %1749 = vmatpush.bf16.msra.mxu1 %v4081_v19  ;;  %1843 = vmatpush.bf16.msrb.mxu3 %v4241_v3  ;;  %v4065_v19 = vor.u32 %v5028_v8, %v4062_v30  ;;  %v5004_v3 = vld [vmem:[#allocation2 + $0x1d4] sm:$0xf] }
  0xde   :  { %v1323_v40 = vpop.f32.mrf.mxu0  ;;  %v4073_v38 = vor.u32 %v5030_v24, %v4070_v62  ;;  %v4054_v24 = vld [vmem:[#allocation5 + $0x88] sm:$0xf0]  ;;  %v3964_v62 = vld [vmem:[#allocation2 + $0x1c8] sm:$0xf]  ;;  %v3974_v8 = vld [vmem:[#allocation2 + $0x1f0] sm:$0xf0] }
  0xdf   :  { %v5741_v18 = vadd.f32 %v1389_v36, %v1341_v10  ;;  %v1324_v50 = vadd.f32 %v1323_v40, %v5687_v13 }
  0xe0   :  { %v1372_v48 = vpop.f32.mrf.mxu1 }
  0xe1   :  { %1440 = vmatmul.bf16.gmra.mxu2 %v5735_v39  ;;  %1538 = vmatmul.bf16.gmra.mxu0 %v5737_v28  ;;  %v5748_v57 = vadd.f32 %v1372_v48, %v1324_v50  ;;  %v5026_v50 = vld [vmem:[#allocation5 + $0x84] sm:$0xf]  ;;  %v4957_v39 = vld [vmem:[#allocation2 + $0x5c] sm:$0xf] }
  0xe2   :  { %1489 = vmatmul.bf16.gmra.mxu3 %v5739_v41  ;;  %1750 = vmatpush.bf16.msra.mxu1 %v4073_v38 }
  0xe3   :  { %1587 = vmatmul.bf16.gmra.mxu1 %v5744_v49  ;;  %v3966_v49 = vld [vmem:[#allocation2 + $0x1e8] sm:$0xf0] }
  0xe4   :  { %v1343_v2 = vpop.f32.mrf.mxu2 }
  0xe5   :  { %v1344_v10 = vadd.f32 %v1343_v2, %v5687_v13  ;;  %v1392_v36 = vpop.f32.mrf.mxu3  ;;  %v4057_v2 = vor.u32 %v5026_v50, %v4054_v24  ;;  %v5768_v50 = vor.u32 %v5004_v3, %v3974_v8 }
  0xe6   :  { %v1325_v48 = vpop.f32.mrf.mxu0  ;;  %1751 = vmatpush.bf16.msra.mxu1 %v4065_v19 }
  0xe7   :  { %v5753_v7 = vadd.f32 %v1392_v36, %v1344_v10  ;;  %v1326_v11 = vadd.f32 %v1325_v48, %v5687_v13  ;;  %v5759_v36 = vor.u32 %v5007_v53, %v3964_v62  ;;  %v5761_v48 = vor.u32 %v5008_v63, %v3972_v27  ;;  %6347 = vst [vmem:[#allocation38_spill] sm:$0xff] %v5768_v50  ;;  %v5054_v62 = vld [vmem:[#allocation5 + $0x164] sm:$0xf]  ;;  %v4166_v53 = vld [vmem:[#allocation5 + $0x168] sm:$0xf0] }
  0xe8   :  { %v1374_v40 = vpop.f32.mrf.mxu1  ;;  %v5070_v27 = vld [vmem:[#allocation5 + $0x1e4] sm:$0xf]  ;;  %v4230_v63 = vld [vmem:[#allocation5 + $0x1e8] sm:$0xf0] }
  0xe9   :  { %v5756_v25 = vadd.f32 %v1374_v40, %v1326_v11  ;;  %6344 = vst [vmem:[#allocation35_spill] sm:$0xff] %v5759_v36  ;;  %v5763_v11 = vor.u32 %v5003_v54, %v3966_v49  ;;  %v4169_v49 = vor.u32 %v5054_v62, %v4166_v53  ;;  %v4949_v62 = vld [vmem:[#allocation2 + $0x1c] sm:$0xf] }
  0xea   :  { %6345 = vst [vmem:[#allocation36_spill] sm:$0xff] %v5761_v48  ;;  %1752 = vmatpush.bf16.msra.mxu1 %v4057_v2  ;;  %v3758_v53 = vld [vmem:[#allocation2 + $0x38] sm:$0xf0] }
  0xeb   :  { %6346 = vst [vmem:[#allocation37_spill] sm:$0xff] %v5763_v11  ;;  %1795 = vmatpush.bf16.msrb.mxu2 %v4169_v49 }
  0xec   :  { %v1345_v38 = vpop.f32.mrf.mxu2 }
  0xed   :  { %v1346_v30 = vadd.f32 %v1345_v38, %v5687_v13  ;;  %v1394_v10 = vpop.f32.mrf.mxu3 }
  0xee   :  { %v1328_v41 = vpop.f32.mrf.mxu0 }
  0xef   :  { %v5765_v40 = vadd.f32 %v1394_v10, %v1346_v30  ;;  %v1329_v19 = vadd.f32 %v1328_v41, %v5687_v13  ;;  %v4233_v41 = vor.u32 %v5070_v27, %v4230_v63 }
  0xf0   :  { %v1377_v24 = vpop.f32.mrf.mxu1 }
  0xf1   :  { %1445 = vmatmul.bf16.gmra.mxu2 %v5759_v36  ;;  %1543 = vmatmul.bf16.gmra.mxu0 %v5761_v48  ;;  %v5772_v38 = vadd.f32 %v1377_v24, %v1329_v19  ;;  %v5785_v36 = vor.u32 %v4949_v62, %v3758_v53 }
  0xf2   :  { %1494 = vmatmul.bf16.gmra.mxu3 %v5763_v11  ;;  %v3756_v11 = vld [vmem:[#allocation2 + $0x18] sm:$0xf] }
  0xf3   :  { %1592 = vmatmul.bf16.gmra.mxu1 %v5768_v50  ;;  %1844 = vmatpush.bf16.msrb.mxu3 %v4233_v41  ;;  %v4953_v50 = vld [vmem:[#allocation2 + $0x34] sm:$0xf0]  ;;  %6349 = vst [vmem:[#allocation40_spill] sm:$0xff] %v5785_v36 }
  0xf4   :  { %v1348_v2 = vpop.f32.mrf.mxu2 }
  0xf5   :  { %v1349_v54 = vadd.f32 %v1348_v2, %v5687_v13  ;;  %v1397_v3 = vpop.f32.mrf.mxu3  ;;  %v5783_v2 = vor.u32 %v4953_v50, %v3756_v11  ;;  %v4222_v11 = vld [vmem:[#allocation5 + $0x1d8] sm:$0xf0] }
  0xf6   :  { %v1330_v8 = vpop.f32.mrf.mxu0 }
  0xf7   :  { %v5777_v30 = vadd.f32 %v1397_v3, %v1349_v54  ;;  %v1331_v10 = vadd.f32 %v1330_v8, %v5687_v13  ;;  %6348 = vst [vmem:[#allocation39_spill] sm:$0xff] %v5783_v2  ;;  %v5052_v3 = vld [vmem:[#allocation5 + $0x154] sm:$0xf]  ;;  %v4158_v8 = vld [vmem:[#allocation5 + $0x158] sm:$0xf0] }
  0xf8   :  { %v1379_v19 = vpop.f32.mrf.mxu1 }
  0xf9   :  { %v5780_v24 = vadd.f32 %v1379_v19, %v1331_v10 }
  0xfc   :  { %v1350_v48 = vpop.f32.mrf.mxu2 }
  0xfd   :  { %v1351_v27 = vadd.f32 %v1350_v48, %v5687_v13  ;;  %v1399_v63 = vpop.f32.mrf.mxu3  ;;  %v4161_v13 = vor.u32 %v5052_v3, %v4158_v8  ;;  %v5068_v48 = vld [vmem:[#allocation5 + $0x1d4] sm:$0xf] }
  0xfe   :  { %v1509_v49 = vpop.f32.mrf.mxu0  ;;  %v4225_v10 = vor.u32 %v5068_v48, %v4222_v11 }
  0xff   :  { %v5787_v41 = vadd.f32 %v1399_v63, %v1351_v27  ;;  %1796 = vmatpush.bf16.msrb.mxu2 %v4161_v13 }
 0x100   :  { %v1558_v54 = vpop.f32.mrf.mxu1  ;;  %1845 = vmatpush.bf16.msrb.mxu3 %v4225_v10  ;;  %v4150_v10 = vld [vmem:[#allocation5 + $0x148] sm:$0xf0] }
 0x101   :  { %1606 = vmatmul.bf16.vlgmr.msra.gmra.mxu2 %v5783_v2  ;;  %1704 = vmatmul.bf16.vlgmr.msra.gmra.mxu0 %v5591_v0  ;;  %v3788_v2 = vld [vmem:[#allocation2 + $0x58] sm:$0xf] }
 0x102   :  { %1655 = vmatmul.bf16.vlgmr.msra.gmra.mxu3 %v5785_v36  ;;  %v4961_v36 = vld [vmem:[#allocation2 + $0x74] sm:$0xf0] }
 0x103   :  { %1753 = vmatmul.bf16.vlgmr.msra.gmra.mxu1 %v5597_v6  ;;  %v3790_v6 = vld [vmem:[#allocation2 + $0x78] sm:$0xf0]  ;;  %v5797_v48 = vor.u32 %v4961_v36, %v3788_v2  ;;  %v5066_v36 = vld [vmem:[#allocation5 + $0x1c4] sm:$0xf]  ;;  %v4214_v2 = vld [vmem:[#allocation5 + $0x1c8] sm:$0xf0] }
 0x104   :  { %v1411_v50 = vpop.f32.mrf.mxu2  ;;  %v5799_v11 = vor.u32 %v4957_v39, %v3790_v6 }
 0x105   :  { %v1412_v19 = vadd.f32 %v1411_v50, %v5700_v29  ;;  %v1460_v62 = vpop.f32.mrf.mxu3 }
 0x106   :  { %v1511_v53 = vpop.f32.mrf.mxu0 }
 0x107   :  { %v1461_v27 = vadd.f32 %v1460_v62, %v1412_v19  ;;  %v4217_v62 = vor.u32 %v5066_v36, %v4214_v2 }
 0x108   :  { %v1560_v63 = vpop.f32.mrf.mxu1 }
 0x109   :  { %v1510_v0 = vadd.f32 %v1509_v49, %v1461_v27  ;;  %1846 = vmatpush.bf16.msrb.mxu3 %v4217_v62  ;;  %v4142_v62 = vld [vmem:[#allocation5 + $0x138] sm:$0xf0] }
 0x10b   :  { %v5794_v28 = vadd.f32 %v1558_v54, %v1510_v0  ;;  %v5050_v54 = vld [vmem:[#allocation5 + $0x144] sm:$0xf] }
 0x10c   :  { %v1413_v3 = vpop.f32.mrf.mxu2 }
 0x10d   :  { %v1414_v8 = vadd.f32 %v1413_v3, %v5708_v26  ;;  %v1462_v47 = vpop.f32.mrf.mxu3  ;;  %v4153_v26 = vor.u32 %v5050_v54, %v4150_v10  ;;  %v3820_v3 = vld [vmem:[#allocation2 + $0x98] sm:$0xf] }
 0x10e   :  { %v1514_v29 = vpop.f32.mrf.mxu0 }
 0x10f   :  { %v1463_v13 = vadd.f32 %v1462_v47, %v1414_v8  ;;  %1797 = vmatpush.bf16.msrb.mxu2 %v4153_v26  ;;  %v4969_v8 = vld [vmem:[#allocation2 + $0xb4] sm:$0xf0] }
 0x110   :  { %v1563_v50 = vpop.f32.mrf.mxu1  ;;  %v5811_v36 = vor.u32 %v4969_v8, %v3820_v3 }
 0x111   :  { %1611 = vmatmul.bf16.gmra.mxu2 %v5797_v48  ;;  %1709 = vmatmul.bf16.gmra.mxu0 %v5603_v51  ;;  %v1512_v49 = vadd.f32 %v1511_v53, %v1463_v13  ;;  %v4965_v13 = vld [vmem:[#allocation2 + $0x9c] sm:$0xf] }
 0x112   :  { %1660 = vmatmul.bf16.gmra.mxu3 %v5799_v11 }
 0x113   :  { %v5804_v19 = vadd.f32 %v1560_v63, %v1512_v49  ;;  %1758 = vmatmul.bf16.gmra.mxu1 %v5609_v56  ;;  %v3822_v56 = vld [vmem:[#allocation2 + $0xb8] sm:$0xf0] }
 0x114   :  { %v1416_v39 = vpop.f32.mrf.mxu2  ;;  %v5813_v2 = vor.u32 %v4965_v13, %v3822_v56 }
 0x115   :  { %v1417_v47 = vadd.f32 %v1416_v39, %v5724_v12  ;;  %v1465_v27 = vpop.f32.mrf.mxu3 }
 0x116   :  { %v1516_v0 = vpop.f32.mrf.mxu0 }
 0x117   :  { %v1466_v51 = vadd.f32 %v1465_v27, %v1417_v47  ;;  %v5064_v27 = vld [vmem:[#allocation5 + $0x1b4] sm:$0xf] }
 0x118   :  { %v1565_v53 = vpop.f32.mrf.mxu1 }
 0x119   :  { %v1515_v6 = vadd.f32 %v1514_v29, %v1466_v51  ;;  %v4206_v51 = vld [vmem:[#allocation5 + $0x1b8] sm:$0xf0] }
 0x11a   :  { %v4209_v3 = vor.u32 %v5064_v27, %v4206_v51 }
 0x11b   :  { %v5808_v63 = vadd.f32 %v1563_v50, %v1515_v6  ;;  %v5048_v50 = vld [vmem:[#allocation5 + $0x134] sm:$0xf] }
 0x11c   :  { %v1418_v49 = vpop.f32.mrf.mxu2  ;;  %1847 = vmatpush.bf16.msrb.mxu3 %v4209_v3  ;;  %v4134_v3 = vld [vmem:[#allocation5 + $0x128] sm:$0xf0] }
 0x11d   :  { %v1419_v54 = vadd.f32 %v1418_v49, %v5732_v37  ;;  %v1467_v10 = vpop.f32.mrf.mxu3  ;;  %v4145_v37 = vor.u32 %v5048_v50, %v4142_v62 }
 0x11e   :  { %v1519_v12 = vpop.f32.mrf.mxu0 }
 0x11f   :  { %v1468_v26 = vadd.f32 %v1467_v10, %v1419_v54  ;;  %1798 = vmatpush.bf16.msrb.mxu2 %v4145_v37  ;;  %v3852_v54 = vld [vmem:[#allocation2 + $0xd8] sm:$0xf] }
 0x120   :  { %v1568_v39 = vpop.f32.mrf.mxu1  ;;  %v4977_v10 = vld [vmem:[#allocation2 + $0xf4] sm:$0xf0] }
 0x121   :  { %1616 = vmatmul.bf16.gmra.mxu2 %v5811_v36  ;;  %1714 = vmatmul.bf16.gmra.mxu0 %v5615_v42  ;;  %v1517_v29 = vadd.f32 %v1516_v0, %v1468_v26  ;;  %v4973_v26 = vld [vmem:[#allocation2 + $0xdc] sm:$0xf]  ;;  %v5825_v27 = vor.u32 %v4977_v10, %v3852_v54 }
 0x122   :  { %1665 = vmatmul.bf16.gmra.mxu3 %v5813_v2 }
 0x123   :  { %v5818_v47 = vadd.f32 %v1565_v53, %v1517_v29  ;;  %1763 = vmatmul.bf16.gmra.mxu1 %v5621_v46  ;;  %v3854_v46 = vld [vmem:[#allocation2 + $0xf8] sm:$0xf0] }
 0x124   :  { %v1421_v6 = vpop.f32.mrf.mxu2  ;;  %v5827_v51 = vor.u32 %v4973_v26, %v3854_v46 }
 0x125   :  { %v1422_v8 = vadd.f32 %v1421_v6, %v5748_v57  ;;  %v1470_v13 = vpop.f32.mrf.mxu3 }
 0x126   :  { %v1521_v56 = vpop.f32.mrf.mxu0 }
 0x127   :  { %v1471_v42 = vadd.f32 %v1470_v13, %v1422_v8  ;;  %v5062_v13 = vld [vmem:[#allocation5 + $0x1a4] sm:$0xf] }
 0x128   :  { %v1570_v0 = vpop.f32.mrf.mxu1 }
 0x129   :  { %v1520_v49 = vadd.f32 %v1519_v12, %v1471_v42  ;;  %v4198_v42 = vld [vmem:[#allocation5 + $0x1a8] sm:$0xf0] }
 0x12a   :  { %v4201_v54 = vor.u32 %v5062_v13, %v4198_v42 }
 0x12b   :  { %v5822_v53 = vadd.f32 %v1568_v39, %v1520_v49  ;;  %v5046_v39 = vld [vmem:[#allocation5 + $0x124] sm:$0xf] }
 0x12c   :  { %v1423_v29 = vpop.f32.mrf.mxu2  ;;  %1848 = vmatpush.bf16.msrb.mxu3 %v4201_v54  ;;  %v5088_v54 = vld [vmem:[#allocation5 + $0x274] sm:$0xf] }
 0x12d   :  { %v1424_v50 = vadd.f32 %v1423_v29, %v5756_v25  ;;  %v1472_v62 = vpop.f32.mrf.mxu3  ;;  %v4137_v25 = vor.u32 %v5046_v39, %v4134_v3 }
 0x12e   :  { %v1524_v57 = vpop.f32.mrf.mxu0 }
 0x12f   :  { %v1473_v37 = vadd.f32 %v1472_v62, %v1424_v50  ;;  %1799 = vmatpush.bf16.msrb.mxu2 %v4137_v25  ;;  %v3884_v50 = vld [vmem:[#allocation2 + $0x118] sm:$0xf] }
 0x130   :  { %v1573_v6 = vpop.f32.mrf.mxu1  ;;  %v4985_v62 = vld [vmem:[#allocation2 + $0x134] sm:$0xf0] }
 0x131   :  { %1621 = vmatmul.bf16.gmra.mxu2 %v5825_v27  ;;  %1719 = vmatmul.bf16.gmra.mxu0 %v5627_v14  ;;  %v1522_v12 = vadd.f32 %v1521_v56, %v1473_v37  ;;  %v4981_v37 = vld [vmem:[#allocation2 + $0x11c] sm:$0xf]  ;;  %v5839_v13 = vor.u32 %v4985_v62, %v3884_v50  ;;  %v5060_v50 = vld [vmem:[#allocation5 + $0x194] sm:$0xf] }
 0x132   :  { %1670 = vmatmul.bf16.gmra.mxu3 %v5827_v51  ;;  %v4190_v62 = vld [vmem:[#allocation5 + $0x198] sm:$0xf0] }
 0x133   :  { %v5832_v8 = vadd.f32 %v1570_v0, %v1522_v12  ;;  %1768 = vmatmul.bf16.gmra.mxu1 %v5633_v17  ;;  %v3886_v17 = vld [vmem:[#allocation2 + $0x138] sm:$0xf0] }
 0x134   :  { %v1426_v49 = vpop.f32.mrf.mxu2  ;;  %v5841_v42 = vor.u32 %v4981_v37, %v3886_v17  ;;  %v4193_v17 = vor.u32 %v5060_v50, %v4190_v62  ;;  %v4989_v50 = vld [vmem:[#allocation2 + $0x15c] sm:$0xf] }
 0x135   :  { %v1427_v10 = vadd.f32 %v1426_v49, %v5772_v38  ;;  %v1475_v26 = vpop.f32.mrf.mxu3  ;;  %v3918_v62 = vld [vmem:[#allocation2 + $0x178] sm:$0xf0] }
 0x136   :  { %v1526_v46 = vpop.f32.mrf.mxu0  ;;  %6350 = vst [vmem:[#allocation41_spill] sm:$0xff] %v5841_v42  ;;  %1849 = vmatpush.bf16.msrb.mxu3 %v4193_v17 }
 0x137   :  { %v1476_v14 = vadd.f32 %v1475_v26, %v1427_v10  ;;  %v4302_v10 = vld [vmem:[#allocation5 + $0x278] sm:$0xf0]  ;;  %v5044_v26 = vld [vmem:[#allocation5 + $0x114] sm:$0xf] }
 0x138   :  { %v1575_v56 = vpop.f32.mrf.mxu1 }
 0x139   :  { %v1525_v29 = vadd.f32 %v1524_v57, %v1476_v14 }
 0x13b   :  { %v5836_v0 = vadd.f32 %v1573_v6, %v1525_v29  ;;  %v4305_v6 = vor.u32 %v5088_v54, %v4302_v10  ;;  %v5084_v10 = vld [vmem:[#allocation5 + $0x254] sm:$0xf] }
 0x13c   :  { %v1428_v12 = vpop.f32.mrf.mxu2 }
 0x13d   :  { %v1429_v39 = vadd.f32 %v1428_v12, %v5780_v24  ;;  %v1477_v3 = vpop.f32.mrf.mxu3  ;;  %v4126_v24 = vld [vmem:[#allocation5 + $0x118] sm:$0xf0]  ;;  %1892 = vmatpush.bf16.msrb.mxu0 %v4305_v6  ;;  %v5086_v12 = vld [vmem:[#allocation5 + $0x264] sm:$0xf] }
 0x13e   :  { %v1529_v38 = vpop.f32.mrf.mxu0  ;;  %v4129_v29 = vor.u32 %v5044_v26, %v4126_v24  ;;  %v3916_v26 = vld [vmem:[#allocation2 + $0x158] sm:$0xf] }
 0x13f   :  { %v1478_v25 = vadd.f32 %v1477_v3, %v1429_v39  ;;  %v4294_v39 = vld [vmem:[#allocation5 + $0x268] sm:$0xf0]  ;;  %v4993_v24 = vld [vmem:[#allocation2 + $0x174] sm:$0xf0] }
 0x140   :  { %v1578_v49 = vpop.f32.mrf.mxu1  ;;  %1800 = vmatpush.bf16.msrb.mxu2 %v4129_v29  ;;  %v4297_v3 = vor.u32 %v5086_v12, %v4294_v39  ;;  %v4278_v29 = vld [vmem:[#allocation5 + $0x248] sm:$0xf0]  ;;  %v5104_v12 = vld [vmem:[#allocation5 + $0x2f4] sm:$0xf] }
 0x141   :  { %1626 = vmatmul.bf16.gmra.mxu2 %v5839_v13  ;;  %1724 = vmatmul.bf16.gmra.mxu0 %v5593_v1  ;;  %v1527_v57 = vadd.f32 %v1526_v46, %v1478_v25 }
 0x142   :  { %1675 = vmatmul.bf16.gmra.mxu3 %v5841_v42  ;;  %1893 = vmatpush.bf16.msrb.mxu0 %v4297_v3  ;;  %v4366_v3 = vld [vmem:[#allocation5 + $0x2f8] sm:$0xf0] }
 0x143   :  { %v5846_v14 = vadd.f32 %v1575_v56, %v1527_v57  ;;  %1773 = vmatmul.bf16.gmra.mxu1 %v5595_v4  ;;  %v4286_v4 = vld [vmem:[#allocation5 + $0x258] sm:$0xf0] }
 0x144   :  { %v1431_v37 = vpop.f32.mrf.mxu2  ;;  %v4289_v6 = vor.u32 %v5084_v10, %v4286_v4  ;;  %v4369_v10 = vor.u32 %v5104_v12, %v4366_v3  ;;  %v4262_v3 = vld [vmem:[#allocation5 + $0x228] sm:$0xf0] }
 0x145   :  { %v1432_v1 = vadd.f32 %v1431_v37, %v5705_v5  ;;  %v1480_v46 = vpop.f32.mrf.mxu3  ;;  %v5082_v37 = vld [vmem:[#allocation5 + $0x244] sm:$0xf] }
 0x146   :  { %v1531_v25 = vpop.f32.mrf.mxu0  ;;  %1894 = vmatpush.bf16.msrb.mxu0 %v4289_v6  ;;  %1941 = vmatpush.bf16.msrb.mxu1 %v4369_v10  ;;  %v4270_v6 = vld [vmem:[#allocation5 + $0x238] sm:$0xf0]  ;;  %v5100_v10 = vld [vmem:[#allocation5 + $0x2d4] sm:$0xf] }
 0x147   :  { %v1481_v54 = vadd.f32 %v1480_v46, %v1432_v1  ;;  %v5853_v1 = vor.u32 %v4993_v24, %v3916_v26  ;;  %v4281_v46 = vor.u32 %v5082_v37, %v4278_v29  ;;  %v5102_v26 = vld [vmem:[#allocation5 + $0x2e4] sm:$0xf]  ;;  %v4358_v24 = vld [vmem:[#allocation5 + $0x2e8] sm:$0xf0] }
 0x148   :  { %v1580_v56 = vpop.f32.mrf.mxu1  ;;  %v5042_v37 = vld [vmem:[#allocation5 + $0x104] sm:$0xf] }
 0x149   :  { %v1530_v57 = vadd.f32 %v1529_v38, %v1481_v54  ;;  %6351 = vst [vmem:[#allocation42_spill] sm:$0xff] %v5853_v1  ;;  %v5855_v54 = vor.u32 %v4989_v50, %v3918_v62  ;;  %v4118_v50 = vld [vmem:[#allocation5 + $0x108] sm:$0xf0]  ;;  %v4361_v62 = vor.u32 %v5102_v26, %v4358_v24  ;;  %v4350_v26 = vld [vmem:[#allocation5 + $0x2d8] sm:$0xf0] }
 0x14a   :  { %1895 = vmatpush.bf16.msrb.mxu0 %v4281_v46  ;;  %v4121_v12 = vor.u32 %v5042_v37, %v4118_v50  ;;  %v5076_v24 = vld [vmem:[#allocation5 + $0x214] sm:$0xf]  ;;  %v4254_v37 = vld [vmem:[#allocation5 + $0x218] sm:$0xf0]  ;;  %v5098_v50 = vld [vmem:[#allocation5 + $0x2c4] sm:$0xf] }
 0x14b   :  { %v5850_v42 = vadd.f32 %v1578_v49, %v1530_v57  ;;  %6352 = vst [vmem:[#allocation43_spill] sm:$0xff] %v5855_v54  ;;  %v5080_v57 = vld [vmem:[#allocation5 + $0x234] sm:$0xf]  ;;  %1942 = vmatpush.bf16.msrb.mxu1 %v4361_v62 }
 0x14c   :  { %v1433_v5 = vpop.f32.mrf.mxu2  ;;  %1801 = vmatpush.bf16.msrb.mxu2 %v4121_v12  ;;  %v4997_v12 = vld [vmem:[#allocation2 + $0x19c] sm:$0xf] }
 0x14d   :  { %v1434_v17 = vadd.f32 %v1433_v5, %v5717_v9  ;;  %v1482_v39 = vpop.f32.mrf.mxu3  ;;  %v4273_v5 = vor.u32 %v5080_v57, %v4270_v6 }
 0x14e   :  { %v1534_v38 = vpop.f32.mrf.mxu0 }
 0x14f   :  { %v1483_v49 = vadd.f32 %v1482_v39, %v1434_v17  ;;  %1896 = vmatpush.bf16.msrb.mxu0 %v4273_v5  ;;  %v5058_v17 = vld [vmem:[#allocation5 + $0x184] sm:$0xf]  ;;  %v4182_v39 = vld [vmem:[#allocation5 + $0x188] sm:$0xf0] }
 0x150   :  { %v1583_v4 = vpop.f32.mrf.mxu1 }
 0x151   :  { %1631 = vmatmul.bf16.gmra.mxu2 %v5853_v1  ;;  %1729 = vmatmul.bf16.gmra.mxu0 %v5605_v52  ;;  %v1532_v9 = vadd.f32 %v1531_v25, %v1483_v49  ;;  %v4185_v52 = vor.u32 %v5058_v17, %v4182_v39  ;;  %v5078_v25 = vld [vmem:[#allocation5 + $0x224] sm:$0xf]  ;;  %v4257_v17 = vor.u32 %v5076_v24, %v4254_v37  ;;  %v4342_v39 = vld [vmem:[#allocation5 + $0x2c8] sm:$0xf0]  ;;  %v5001_v1 = vld [vmem:[#allocation2 + $0x1b4] sm:$0xf0] }
 0x152   :  { %1680 = vmatmul.bf16.gmra.mxu3 %v5855_v54  ;;  %v4265_v6 = vor.u32 %v5078_v25, %v4262_v3  ;;  %v3948_v54 = vld [vmem:[#allocation2 + $0x198] sm:$0xf]  ;;  %v3950_v25 = vld [vmem:[#allocation2 + $0x1b8] sm:$0xf0]  ;;  %v5074_v3 = vld [vmem:[#allocation5 + $0x204] sm:$0xf] }
 0x153   :  { %v5860_v29 = vadd.f32 %v1580_v56, %v1532_v9  ;;  %1778 = vmatmul.bf16.gmra.mxu1 %v5607_v55  ;;  %1850 = vmatpush.bf16.msrb.mxu3 %v4185_v52  ;;  %v4353_v9 = vor.u32 %v5100_v10, %v4350_v26  ;;  %v4246_v10 = vld [vmem:[#allocation5 + $0x208] sm:$0xf0]  ;;  %v5867_v26 = vor.u32 %v5001_v1, %v3948_v54  ;;  %v5120_v1 = vld [vmem:[#allocation5 + $0x374] sm:$0xf]  ;;  %v4430_v54 = vld [vmem:[#allocation5 + $0x378] sm:$0xf0] }
 0x154   :  { %v1436_v46 = vpop.f32.mrf.mxu2  ;;  %1897 = vmatpush.bf16.msrb.mxu0 %v4265_v6  ;;  %v5869_v24 = vor.u32 %v4997_v12, %v3950_v25  ;;  %v4433_v12 = vor.u32 %v5120_v1, %v4430_v54  ;;  %v5136_v25 = vld [vmem:[#allocation5 + $0x3f4] sm:$0xf]  ;;  %v5005_v1 = vld [vmem:[#allocation2 + $0x1dc] sm:$0xf] }
 0x155   :  { %v1437_v49 = vadd.f32 %v1436_v46, %v5729_v31  ;;  %v1485_v57 = vpop.f32.mrf.mxu3  ;;  %1943 = vmatpush.bf16.msrb.mxu1 %v4353_v9  ;;  %v4345_v31 = vor.u32 %v5098_v50, %v4342_v39  ;;  %v4334_v9 = vld [vmem:[#allocation5 + $0x2b8] sm:$0xf0] }
 0x156   :  { %v1536_v56 = vpop.f32.mrf.mxu0  ;;  %1990 = vmatpush.bf16.msra.mxu2 %v4433_v12  ;;  %v3982_v54 = vld [vmem:[#allocation2 + $0x1f8] sm:$0xf0] }
 0x157   :  { %v1486_v55 = vadd.f32 %v1485_v57, %v1437_v49  ;;  %v5096_v49 = vld [vmem:[#allocation5 + $0x2b4] sm:$0xf] }
 0x158   :  { %v1585_v5 = vpop.f32.mrf.mxu1  ;;  %1898 = vmatpush.bf16.msrb.mxu0 %v4257_v17  ;;  %v4326_v17 = vld [vmem:[#allocation5 + $0x2a8] sm:$0xf0] }
 0x159   :  { %v1535_v62 = vadd.f32 %v1534_v38, %v1486_v55  ;;  %1944 = vmatpush.bf16.msrb.mxu1 %v4345_v31  ;;  %v4249_v38 = vor.u32 %v5074_v3, %v4246_v10 }
 0x15b   :  { %v5864_v46 = vadd.f32 %v1583_v4, %v1535_v62  ;;  %v4337_v4 = vor.u32 %v5096_v49, %v4334_v9  ;;  %v5094_v62 = vld [vmem:[#allocation5 + $0x2a4] sm:$0xf]  ;;  %v5092_v49 = vld [vmem:[#allocation5 + $0x294] sm:$0xf] }
 0x15c   :  { %v1438_v52 = vpop.f32.mrf.mxu2  ;;  %1899 = vmatpush.bf16.msrb.mxu0 %v4249_v38  ;;  %v4329_v39 = vor.u32 %v5094_v62, %v4326_v17  ;;  %v3980_v17 = vld [vmem:[#allocation2 + $0x1d8] sm:$0xf] }
 0x15d   :  { %v1439_v57 = vadd.f32 %v1438_v52, %v5741_v18  ;;  %v1487_v6 = vpop.f32.mrf.mxu3  ;;  %1945 = vmatpush.bf16.msrb.mxu1 %v4337_v4  ;;  %v4494_v52 = vld [vmem:[#allocation5 + $0x3f8] sm:$0xf0]  ;;  %v5090_v4 = vld [vmem:[#allocation5 + $0x284] sm:$0xf] }
 0x15e   :  { %v1539_v55 = vpop.f32.mrf.mxu0  ;;  %v4497_v10 = vor.u32 %v5136_v25, %v4494_v52 }
 0x15f   :  { %v1488_v37 = vadd.f32 %v1487_v6, %v1439_v57  ;;  %v4318_v57 = vld [vmem:[#allocation5 + $0x298] sm:$0xf0] }
 0x160   :  { %v1588_v50 = vpop.f32.mrf.mxu1  ;;  %v4321_v6 = vor.u32 %v5092_v49, %v4318_v57  ;;  %2039 = vmatpush.bf16.msra.mxu3 %v4497_v10  ;;  %v5883_v10 = vor.u32 %v5005_v1, %v3982_v54  ;;  %v5281_v1 = vld [vmem:[#allocation7] sm:$0x3] }
 0x161   :  { %1636 = vmatmul.bf16.gmra.mxu2 %v5867_v26  ;;  %1734 = vmatmul.bf16.gmra.mxu0 %v5617_v43  ;;  %v1537_v18 = vadd.f32 %v1536_v56, %v1488_v37 }
 0x162   :  { %1685 = vmatmul.bf16.gmra.mxu3 %v5869_v24  ;;  %1946 = vmatpush.bf16.msrb.mxu1 %v4329_v39 }
 0x163   :  { %v5874_v31 = vadd.f32 %v1585_v5, %v1537_v18  ;;  %1783 = vmatmul.bf16.gmra.mxu1 %v5619_v44  ;;  %v4310_v44 = vld [vmem:[#allocation5 + $0x288] sm:$0xf0]  ;;  %v5009_v18 = vld [vmem:[#allocation2 + $0x1f4] sm:$0xf0] }
 0x164   :  { %v1441_v3 = vpop.f32.mrf.mxu2  ;;  %v4313_v62 = vor.u32 %v5090_v4, %v4310_v44  ;;  %v5881_v52 = vor.u32 %v5009_v18, %v3980_v17  ;;  %v4486_v4 = vld [vmem:[#allocation5 + $0x3e8] sm:$0xf0] }
 0x165   :  { %v1442_v43 = vadd.f32 %v1441_v3, %v5753_v7  ;;  %v1490_v56 = vpop.f32.mrf.mxu3 }
 0x166   :  { %v1541_v38 = vpop.f32.mrf.mxu0  ;;  %1947 = vmatpush.bf16.msrb.mxu1 %v4321_v6 }
 0x167   :  { %v1491_v9 = vadd.f32 %v1490_v56, %v1442_v43  ;;  %v4422_v43 = vld [vmem:[#allocation5 + $0x368] sm:$0xf0]  ;;  %v5134_v56 = vld [vmem:[#allocation5 + $0x3e4] sm:$0xf] }
 0x168   :  { %v1590_v5 = vpop.f32.mrf.mxu1 }
 0x169   :  { %v1540_v37 = vadd.f32 %v1539_v55, %v1491_v9 }
 0x16a   :  { %1948 = vmatpush.bf16.msrb.mxu1 %v4313_v62  ;;  %v4489_v62 = vor.u32 %v5134_v56, %v4486_v4  ;;  %v5132_v56 = vld [vmem:[#allocation5 + $0x3d4] sm:$0xf] }
 0x16b   :  { %v5878_v39 = vadd.f32 %v1588_v50, %v1540_v37 }
 0x16c   :  { %v1443_v25 = vpop.f32.mrf.mxu2  ;;  %2040 = vmatpush.bf16.msra.mxu3 %v4489_v62 }
 0x16d   :  { %v1444_v7 = vadd.f32 %v1443_v25, %v5765_v40  ;;  %v1492_v12 = vpop.f32.mrf.mxu3  ;;  %v5118_v40 = vld [vmem:[#allocation5 + $0x364] sm:$0xf] }
 0x16e   :  { %v1544_v3 = vpop.f32.mrf.mxu0  ;;  %v4425_v9 = vor.u32 %v5118_v40, %v4422_v43  ;;  %v4414_v43 = vld [vmem:[#allocation5 + $0x358] sm:$0xf0] }
 0x16f   :  { %v1493_v49 = vadd.f32 %v1492_v12, %v1444_v7 }
 0x170   :  { %v1593_v57 = vpop.f32.mrf.mxu1  ;;  %1991 = vmatpush.bf16.msra.mxu2 %v4425_v9  ;;  %v4478_v9 = vld [vmem:[#allocation5 + $0x3d8] sm:$0xf0] }
 0x171   :  { %1641 = vmatmul.bf16.gmra.mxu2 %v5881_v52  ;;  %1739 = vmatmul.bf16.gmra.mxu0 %v5629_v15  ;;  %v1542_v55 = vadd.f32 %v1541_v38, %v1493_v49 }
 0x172   :  { %1690 = vmatmul.bf16.gmra.mxu3 %v5883_v10 }
 0x173   :  { %v5888_v50 = vadd.f32 %v1590_v5, %v1542_v55  ;;  %1788 = vmatmul.bf16.gmra.mxu1 %v5631_v16  ;;  %v5894_v16 = vperm.slane %v5281_v1, 1 }
 0x174   :  { %v1446_v6 = vpop.f32.mrf.mxu2 }
 0x175   :  { %v1447_v44 = vadd.f32 %v1446_v6, %v5777_v30  ;;  %v1495_v37 = vpop.f32.mrf.mxu3 }
 0x176   :  { %v1546_v17 = vpop.f32.mrf.mxu0 }
 0x177   :  { %v1496_v15 = vadd.f32 %v1495_v37, %v1447_v44  ;;  %v4481_v44 = vor.u32 %v5132_v56, %v4478_v9 }
 0x178   :  { %v1595_v38 = vpop.f32.mrf.mxu1 }
 0x179   :  { %v1545_v18 = vadd.f32 %v1544_v3, %v1496_v15  ;;  %2041 = vmatpush.bf16.msra.mxu3 %v4481_v44 }
 0x17b   :  { %v5892_v5 = vadd.f32 %v1593_v57, %v1545_v18  ;;  %v5116_v57 = vld [vmem:[#allocation5 + $0x354] sm:$0xf] }
 0x17c   :  { %v1448_v54 = vpop.f32.mrf.mxu2 }
 0x17d   :  { %v1449_v25 = vadd.f32 %v1448_v54, %v5787_v41  ;;  %v1497_v7 = vpop.f32.mrf.mxu3  ;;  %v4417_v41 = vor.u32 %v5116_v57, %v4414_v43  ;;  %v4470_v43 = vld [vmem:[#allocation5 + $0x3c8] sm:$0xf0] }
 0x17e   :  { %v1705_v12 = vpop.f32.mrf.mxu0 }
 0x17f   :  { %v1498_v49 = vadd.f32 %v1497_v7, %v1449_v25  ;;  %v1706_v30 = vadd.f32 %v1705_v12, %v5894_v16  ;;  %1992 = vmatpush.bf16.msra.mxu2 %v4417_v41 }
 0x180   :  { %v1754_v55 = vpop.f32.mrf.mxu1 }
 0x181   :  { %1802 = vmatmul.bf16.vlgmr.msrb.gmra.mxu2 %v5639_v32  ;;  %1900 = vmatmul.bf16.vlgmr.msrb.gmra.mxu0 %v5641_v33  ;;  %v1547_v40 = vadd.f32 %v1546_v17, %v1498_v49  ;;  %v5900_v3 = vadd.f32 %v1754_v55, %v1706_v30  ;;  %v5114_v30 = vld [vmem:[#allocation5 + $0x344] sm:$0xf]  ;;  %v4406_v55 = vld [vmem:[#allocation5 + $0x348] sm:$0xf0] }
 0x182   :  { %1851 = vmatmul.bf16.vlgmr.msrb.gmra.mxu3 %v5643_v34  ;;  %v4409_v57 = vor.u32 %v5114_v30, %v4406_v55 }
 0x183   :  { %v5903_v6 = vadd.f32 %v1595_v38, %v1547_v40  ;;  %1949 = vmatmul.bf16.vlgmr.msrb.gmra.mxu1 %v5645_v35  ;;  %v5130_v40 = vld [vmem:[#allocation5 + $0x3c4] sm:$0xf] }
 0x184   :  { %v1607_v4 = vpop.f32.mrf.mxu2  ;;  %v4473_v41 = vor.u32 %v5130_v40, %v4470_v43  ;;  %1993 = vmatpush.bf16.msra.mxu2 %v4409_v57 }
 0x185   :  { %v1608_v32 = vadd.f32 %v1607_v4, %v5794_v28  ;;  %v1656_v37 = vpop.f32.mrf.mxu3 }
 0x186   :  { %v1707_v33 = vpop.f32.mrf.mxu0  ;;  %2042 = vmatpush.bf16.msra.mxu3 %v4473_v41 }
 0x187   :  { %v1657_v62 = vadd.f32 %v1656_v37, %v1608_v32  ;;  %v1708_v34 = vadd.f32 %v1707_v33, %v5894_v16 }
 0x188   :  { %v1756_v17 = vpop.f32.mrf.mxu1 }
 0x189   :  { %v5908_v15 = vadd.f32 %v1756_v17, %v1708_v34  ;;  %v2088_v28 = vmax.f32 %v1657_v62, 0.0 }
 0x18c   :  { %v1609_v38 = vpop.f32.mrf.mxu2 }
 0x18d   :  { %v1610_v18 = vadd.f32 %v1609_v38, %v5804_v19  ;;  %v1658_v35 = vpop.f32.mrf.mxu3 }
 0x18e   :  { %v1710_v1 = vpop.f32.mrf.mxu0 }
 0x18f   :  { %v1659_v54 = vadd.f32 %v1658_v35, %v1610_v18  ;;  %v1711_v25 = vadd.f32 %v1710_v1, %v5894_v16  ;;  %v5112_v1 = vld [vmem:[#allocation5 + $0x334] sm:$0xf] }
 0x190   :  { %v1759_v7 = vpop.f32.mrf.mxu1 }
 0x191   :  { %v2090_v12 = vmax.f32 %v1659_v54, 0.0  ;;  %1807 = vmatmul.bf16.gmra.mxu2 %v5651_v58  ;;  %1905 = vmatmul.bf16.gmra.mxu0 %v5653_v59  ;;  %v5914_v49 = vadd.f32 %v1759_v7, %v1711_v25  ;;  %v4398_v54 = vld [vmem:[#allocation5 + $0x338] sm:$0xf0]  ;;  %v5128_v25 = vld [vmem:[#allocation5 + $0x3b4] sm:$0xf] }
 0x192   :  { %1856 = vmatmul.bf16.gmra.mxu3 %v5655_v60  ;;  %v4462_v7 = vld [vmem:[#allocation5 + $0x3b8] sm:$0xf0] }
 0x193   :  { %v5917_v19 = vpack.c.bf16 %v2090_v12, %v2088_v28  ;;  %1954 = vmatmul.bf16.gmra.mxu1 %v5657_v61  ;;  %v4465_v30 = vor.u32 %v5128_v25, %v4462_v7 }
 0x194   :  { %v1612_v56 = vpop.f32.mrf.mxu2 }
 0x195   :  { %v1613_v9 = vadd.f32 %v1612_v56, %v5808_v63  ;;  %v1661_v58 = vpop.f32.mrf.mxu3  ;;  %2043 = vmatpush.bf16.msra.mxu3 %v4465_v30 }
 0x196   :  { %v1712_v59 = vpop.f32.mrf.mxu0 }
 0x197   :  { %v1662_v4 = vadd.f32 %v1661_v58, %v1613_v9  ;;  %v1713_v60 = vadd.f32 %v1712_v59, %v5894_v16 }
 0x198   :  { %v1761_v44 = vpop.f32.mrf.mxu1 }
 0x199   :  { %v5922_v32 = vadd.f32 %v1761_v44, %v1713_v60  ;;  %v2092_v63 = vmax.f32 %v1662_v4, 0.0  ;;  %v6353_v44 = vld [vmem:[#allocation20_spill] sm:$0xff] }
 0x19c   :  { %v1614_v37 = vpop.f32.mrf.mxu2 }
 0x19d   :  { %v1615_v33 = vadd.f32 %v1614_v37, %v5818_v47  ;;  %v1663_v61 = vpop.f32.mrf.mxu3  ;;  %v4401_v47 = vor.u32 %v5112_v1, %v4398_v54 }
 0x19e   :  { %v1715_v62 = vpop.f32.mrf.mxu0 }
 0x19f   :  { %v1664_v34 = vadd.f32 %v1663_v61, %v1615_v33  ;;  %v1716_v17 = vadd.f32 %v1715_v62, %v5894_v16  ;;  %1994 = vmatpush.bf16.msra.mxu2 %v4401_v47  ;;  %v6354_v33 = vld [vmem:[#allocation21_spill] sm:$0xff]  ;;  %v5110_v61 = vld [vmem:[#allocation5 + $0x324] sm:$0xf] }
 0x1a0   :  { %v1764_v38 = vpop.f32.mrf.mxu1  ;;  %v4390_v62 = vld [vmem:[#allocation5 + $0x328] sm:$0xf0] }
 0x1a1   :  { %v2094_v18 = vmax.f32 %v1664_v34, 0.0  ;;  %1812 = vmatmul.bf16.gmra.mxu2 %v5663_v20  ;;  %1910 = vmatmul.bf16.gmra.mxu0 %v5665_v21  ;;  %v5928_v35 = vadd.f32 %v1764_v38, %v1716_v17  ;;  %v5126_v34 = vld [vmem:[#allocation5 + $0x3a4] sm:$0xf]  ;;  %v4393_v17 = vor.u32 %v5110_v61, %v4390_v62  ;;  %v4454_v38 = vld [vmem:[#allocation5 + $0x3a8] sm:$0xf0]  ;;  %v6359_v61 = vld [vmem:[#allocation26_spill] sm:$0xff] }
 0x1a2   :  { %1861 = vmatmul.bf16.gmra.mxu3 %v5667_v22  ;;  %v4457_v1 = vor.u32 %v5126_v34, %v4454_v38  ;;  %v4446_v34 = vld [vmem:[#allocation5 + $0x398] sm:$0xf0] }
 0x1a3   :  { %1959 = vmatmul.bf16.gmra.mxu1 %v5669_v23  ;;  %v5932_v28 = vpack.c.bf16 %v2094_v18, %v2092_v63  ;;  %1995 = vmatpush.bf16.msra.mxu2 %v4393_v17 }
 0x1a4   :  { %v1617_v12 = vpop.f32.mrf.mxu2  ;;  %2044 = vmatpush.bf16.msra.mxu3 %v4457_v1  ;;  %v5151_v1 = vld [vmem:[#allocation8 + $0x64] sm:$0xf0] }
 0x1a5   :  { %v1618_v55 = vadd.f32 %v1617_v12, %v5822_v53  ;;  %v1666_v20 = vpop.f32.mrf.mxu3 }
 0x1a6   :  { %v1717_v21 = vpop.f32.mrf.mxu0 }
 0x1a7   :  { %v1667_v40 = vadd.f32 %v1666_v20, %v1618_v55  ;;  %v1718_v22 = vadd.f32 %v1717_v21, %v5894_v16 }
 0x1a8   :  { %v1766_v57 = vpop.f32.mrf.mxu1 }
 0x1a9   :  { %v5936_v43 = vadd.f32 %v1766_v57, %v1718_v22  ;;  %v2096_v53 = vmax.f32 %v1667_v40, 0.0 }
 0x1ac   :  { %v1619_v56 = vpop.f32.mrf.mxu2 }
 0x1ad   :  { %v1620_v23 = vadd.f32 %v1619_v56, %v5832_v8  ;;  %v1668_v41 = vpop.f32.mrf.mxu3  ;;  %v6355_v8 = vld [vmem:[#allocation22_spill] sm:$0xff] }
 0x1ae   :  { %v1720_v9 = vpop.f32.mrf.mxu0 }
 0x1af   :  { %v1669_v58 = vadd.f32 %v1668_v41, %v1620_v23  ;;  %v1721_v59 = vadd.f32 %v1720_v9, %v5894_v16  ;;  %v5153_v23 = vld [vmem:[#allocation8 + $0x74] sm:$0xf0] }
 0x1b0   :  { %v1769_v4 = vpop.f32.mrf.mxu1 }
 0x1b1   :  { %v2098_v60 = vmax.f32 %v1669_v58, 0.0  ;;  %1817 = vmatmul.bf16.gmra.mxu2 %v5675_v45  ;;  %1915 = vmatmul.bf16.gmra.mxu0 %v6353_v44  ;;  %v5942_v37 = vadd.f32 %v1769_v4, %v1721_v59  ;;  %v6356_v58 = vld [vmem:[#allocation23_spill] sm:$0xff]  ;;  %v6357_v59 = vld [vmem:[#allocation24_spill] sm:$0xff] }
 0x1b2   :  { %1866 = vmatmul.bf16.gmra.mxu3 %v6354_v33  ;;  %v4382_v44 = vld [vmem:[#allocation5 + $0x318] sm:$0xf0]  ;;  %v5124_v33 = vld [vmem:[#allocation5 + $0x394] sm:$0xf] }
 0x1b3   :  { %1964 = vmatmul.bf16.gmra.mxu1 %v6355_v8  ;;  %v5946_v63 = vpack.c.bf16 %v2098_v60, %v2096_v53  ;;  %v6358_v60 = vld [vmem:[#allocation25_spill] sm:$0xff]  ;;  %v4449_v38 = vor.u32 %v5124_v33, %v4446_v34  ;;  %v6361_v33 = vld [vmem:[#allocation28_spill] sm:$0xff] }
 0x1b4   :  { %v1622_v18 = vpop.f32.mrf.mxu2  ;;  %v5106_v34 = vld [vmem:[#allocation5 + $0x304] sm:$0xf] }
 0x1b5   :  { %v1623_v54 = vadd.f32 %v1622_v18, %v5836_v0  ;;  %v1671_v45 = vpop.f32.mrf.mxu3  ;;  %v4556_v0 = vld [vmem:[#allocation8 + $0x70] sm:$0xf]  ;;  %v4548_v18 = vld [vmem:[#allocation8 + $0x60] sm:$0xf]  ;;  %2045 = vmatpush.bf16.msra.mxu3 %v4449_v38 }
 0x1b6   :  { %v1722_v25 = vpop.f32.mrf.mxu0  ;;  %v4557_v53 = vor.u32 %v5153_v23, %v4556_v0  ;;  %v5122_v38 = vld [vmem:[#allocation5 + $0x384] sm:$0xf] }
 0x1b7   :  { %v1672_v47 = vadd.f32 %v1671_v45, %v1623_v54  ;;  %v1723_v7 = vadd.f32 %v1722_v25, %v5894_v16  ;;  %v4549_v25 = vor.u32 %v5151_v1, %v4548_v18  ;;  %v6363_v18 = vld [vmem:[#allocation30_spill] sm:$0xff] }
 0x1b8   :  { %v1771_v12 = vpop.f32.mrf.mxu1  ;;  %2334 = vmatpush.bf16.msra.mxu0 %v4557_v53  ;;  %v5145_v53 = vld [vmem:[#allocation8 + $0x34] sm:$0xf0] }
 0x1b9   :  { %v5950_v30 = vadd.f32 %v1771_v12, %v1723_v7  ;;  %v2100_v41 = vmax.f32 %v1672_v47, 0.0 }
 0x1bc   :  { %v1624_v55 = vpop.f32.mrf.mxu2  ;;  %2335 = vmatpush.bf16.msra.mxu0 %v4549_v25 }
 0x1bd   :  { %v1625_v20 = vadd.f32 %v1624_v55, %v5846_v14  ;;  %v1673_v21 = vpop.f32.mrf.mxu3  ;;  %v5108_v14 = vld [vmem:[#allocation5 + $0x314] sm:$0xf] }
 0x1be   :  { %v1725_v40 = vpop.f32.mrf.mxu0  ;;  %v4385_v62 = vor.u32 %v5108_v14, %v4382_v44  ;;  %v4540_v55 = vld [vmem:[#allocation8 + $0x50] sm:$0xf]  ;;  %v6360_v44 = vld [vmem:[#allocation27_spill] sm:$0xff] }
 0x1bf   :  { %v1674_v22 = vadd.f32 %v1673_v21, %v1625_v20  ;;  %v1726_v57 = vadd.f32 %v1725_v40, %v5894_v16  ;;  %v5149_v20 = vld [vmem:[#allocation8 + $0x54] sm:$0xf0] }
 0x1c0   :  { %v1774_v56 = vpop.f32.mrf.mxu1  ;;  %1996 = vmatpush.bf16.msra.mxu2 %v4385_v62  ;;  %v4541_v21 = vor.u32 %v5149_v20, %v4540_v55  ;;  %v4516_v55 = vld [vmem:[#allocation8 + $0x20] sm:$0xf]  ;;  %v5143_v20 = vld [vmem:[#allocation8 + $0x24] sm:$0xf0] }
 0x1c1   :  { %v2102_v9 = vmax.f32 %v1674_v22, 0.0  ;;  %1822 = vmatmul.bf16.gmra.mxu2 %v6356_v58  ;;  %1920 = vmatmul.bf16.gmra.mxu0 %v6357_v59  ;;  %v5956_v4 = vadd.f32 %v1774_v56, %v1726_v57  ;;  %v4532_v22 = vld [vmem:[#allocation8 + $0x40] sm:$0xf]  ;;  %v5147_v57 = vld [vmem:[#allocation8 + $0x44] sm:$0xf0] }
 0x1c2   :  { %1871 = vmatmul.bf16.gmra.mxu3 %v6358_v60  ;;  %2336 = vmatpush.bf16.msra.mxu0 %v4541_v21  ;;  %v4533_v0 = vor.u32 %v5147_v57, %v4532_v22  ;;  %v4524_v59 = vld [vmem:[#allocation8 + $0x30] sm:$0xf]  ;;  %v4517_v22 = vor.u32 %v5143_v20, %v4516_v55 }
 0x1c3   :  { %1969 = vmatmul.bf16.gmra.mxu1 %v6359_v61  ;;  %v5960_v8 = vpack.c.bf16 %v2102_v9, %v2100_v41  ;;  %v4525_v62 = vor.u32 %v5145_v53, %v4524_v59  ;;  %v5139_v59 = vld [vmem:[#allocation8 + $0x4] sm:$0xf0] }
 0x1c4   :  { %v1627_v17 = vpop.f32.mrf.mxu2 }
 0x1c5   :  { %v1628_v54 = vadd.f32 %v1627_v17, %v5850_v42  ;;  %v1676_v45 = vpop.f32.mrf.mxu3  ;;  %v4374_v17 = vld [vmem:[#allocation5 + $0x308] sm:$0xf0] }
 0x1c6   :  { %v5963_v47 = vpop.f32.mrf.mxu0  ;;  %2337 = vmatpush.bf16.msra.mxu0 %v4533_v0  ;;  %v4377_v1 = vor.u32 %v5106_v34, %v4374_v17  ;;  %v4508_v0 = vld [vmem:[#allocation8 + $0x10] sm:$0xf]  ;;  %v6364_v17 = vld [vmem:[#allocation31_spill] sm:$0xff] }
 0x1c7   :  { %v1677_v7 = vadd.f32 %v1676_v45, %v1628_v54  ;;  %v4438_v54 = vld [vmem:[#allocation5 + $0x388] sm:$0xf0] }
 0x1c8   :  { %v5965_v12 = vpop.f32.mrf.mxu1  ;;  %1997 = vmatpush.bf16.msra.mxu2 %v4377_v1  ;;  %v6366_v1 = vld [vmem:[#allocation33_spill] sm:$0xff] }
 0x1c9   :  { %v2104_v60 = vmax.f32 %v1677_v7, 0.0  ;;  %v4441_v7 = vor.u32 %v5122_v38, %v4438_v54  ;;  %v6365_v38 = vld [vmem:[#allocation32_spill] sm:$0xff]  ;;  %v6367_v54 = vld [vmem:[#allocation34_spill] sm:$0xff] }
 0x1ca   :  { %2338 = vmatpush.bf16.msra.mxu0 %v4525_v62 }
 0x1cb   :  { %2046 = vmatpush.bf16.msra.mxu3 %v4441_v7 }
 0x1cc   :  { %v1629_v40 = vpop.f32.mrf.mxu2 }
 0x1cd   :  { %v1630_v56 = vadd.f32 %v1629_v40, %v5860_v29  ;;  %v1678_v42 = vpop.f32.mrf.mxu3  ;;  %v6362_v29 = vld [vmem:[#allocation29_spill] sm:$0xff] }
 0x1ce   :  { %v1730_v23 = vpop.f32.mrf.mxu0  ;;  %2339 = vmatpush.bf16.msra.mxu0 %v4517_v22 }
 0x1cf   :  { %v1679_v41 = vadd.f32 %v1678_v42, %v1630_v56  ;;  %v1731_v9 = vadd.f32 %v1730_v23, %v5894_v16  ;;  %v5141_v23 = vld [vmem:[#allocation8 + $0x14] sm:$0xf0] }
 0x1d0   :  { %v1779_v58 = vpop.f32.mrf.mxu1 }
 0x1d1   :  { %v2106_v14 = vmax.f32 %v1679_v41, 0.0  ;;  %1827 = vmatmul.bf16.gmra.mxu2 %v6360_v44  ;;  %1925 = vmatmul.bf16.gmra.mxu0 %v6361_v33  ;;  %v5971_v61 = vadd.f32 %v1779_v58, %v1731_v9  ;;  %v4509_v41 = vor.u32 %v5141_v23, %v4508_v0  ;;  %v4500_v58 = vld [vmem:[#allocation8] sm:$0xf] }
 0x1d2   :  { %1876 = vmatmul.bf16.gmra.mxu3 %v6362_v29 }
 0x1d3   :  { %1974 = vmatmul.bf16.gmra.mxu1 %v6363_v18  ;;  %v5975_v45 = vpack.c.bf16 %v2106_v14, %v2104_v60  ;;  %2340 = vmatpush.bf16.msra.mxu0 %v4509_v41  ;;  %v4501_v60 = vor.u32 %v5139_v59, %v4500_v58 }
 0x1d4   :  { %v1632_v25 = vpop.f32.mrf.mxu2 }
 0x1d5   :  { %v1633_v21 = vadd.f32 %v1632_v25, %v5864_v46  ;;  %v1681_v40 = vpop.f32.mrf.mxu3 }
 0x1d6   :  { %v5978_v57 = vpop.f32.mrf.mxu0 }
 0x1d7   :  { %v1682_v56 = vadd.f32 %v1681_v40, %v1633_v21  ;;  %2341 = vmatpush.bf16.msra.mxu0 %v4501_v60 }
 0x1d8   :  { %v5980_v42 = vpop.f32.mrf.mxu1 }
 0x1d9   :  { %v2108_v29 = vmax.f32 %v1682_v56, 0.0 }
 0x1dc   :  { %v1634_v9 = vpop.f32.mrf.mxu2 }
 0x1dd   :  { %v1635_v53 = vadd.f32 %v1634_v9, %v5874_v31  ;;  %v1683_v46 = vpop.f32.mrf.mxu3 }
 0x1de   :  { %v1735_v14 = vpop.f32.mrf.mxu0 }
 0x1df   :  { %v1684_v44 = vadd.f32 %v1683_v46, %v1635_v53  ;;  %v1736_v33 = vadd.f32 %v1735_v14, %v5894_v16  ;;  %v6368_v46 = vld [vmem:[#allocation35_spill] sm:$0xff]  ;;  %v6370_v14 = vld [vmem:[#allocation37_spill] sm:$0xff] }
 0x1e0   :  { %v1784_v62 = vpop.f32.mrf.mxu1 }
 0x1e1   :  { %v2110_v34 = vmax.f32 %v1684_v44, 0.0  ;;  %1832 = vmatmul.bf16.gmra.mxu2 %v6364_v17  ;;  %1930 = vmatmul.bf16.gmra.mxu0 %v6365_v38  ;;  %v5986_v18 = vadd.f32 %v1784_v62, %v1736_v33  ;;  %v6371_v44 = vld [vmem:[#allocation38_spill] sm:$0xff] }
 0x1e2   :  { %1881 = vmatmul.bf16.gmra.mxu3 %v6366_v1  ;;  %v5152_v33 = vld [vmem:[#allocation8 + $0x74] sm:$0xf] }
 0x1e3   :  { %1979 = vmatmul.bf16.gmra.mxu1 %v6367_v54  ;;  %v5990_v31 = vpack.c.bf16 %v2110_v34, %v2108_v29 }
 0x1e4   :  { %v1637_v25 = vpop.f32.mrf.mxu2 }
 0x1e5   :  { %v1638_v7 = vadd.f32 %v1637_v25, %v5878_v39  ;;  %v1686_v55 = vpop.f32.mrf.mxu3  ;;  %v6369_v39 = vld [vmem:[#allocation36_spill] sm:$0xff]  ;;  %v5168_v25 = vld [vmem:[#allocation8 + $0xf4] sm:$0xf] }
 0x1e6   :  { %v5993_v20 = vpop.f32.mrf.mxu0 }
 0x1e7   :  { %v1687_v21 = vadd.f32 %v1686_v55, %v1638_v7  ;;  %v4622_v7 = vld [vmem:[#allocation8 + $0xf8] sm:$0xf0]  ;;  %v4620_v55 = vld [vmem:[#allocation8 + $0xf0] sm:$0xf] }
 0x1e8   :  { %v5995_v40 = vpop.f32.mrf.mxu1 }
 0x1e9   :  { %v2112_v59 = vmax.f32 %v1687_v21, 0.0  ;;  %v4625_v21 = vor.u32 %v5168_v25, %v4622_v7  ;;  %v4612_v25 = vld [vmem:[#allocation8 + $0xe0] sm:$0xf] }
 0x1eb   :  { %2481 = vmatpush.bf16.msrb.mxu3 %v4625_v21 }
 0x1ec   :  { %v1639_v22 = vpop.f32.mrf.mxu2 }
 0x1ed   :  { %v1640_v56 = vadd.f32 %v1639_v22, %v5888_v50  ;;  %v1688_v0 = vpop.f32.mrf.mxu3  ;;  %v4558_v50 = vld [vmem:[#allocation8 + $0x78] sm:$0xf0]  ;;  %v5169_v22 = vld [vmem:[#allocation8 + $0xf4] sm:$0xf0] }
 0x1ee   :  { %v1740_v23 = vpop.f32.mrf.mxu0  ;;  %v4561_v34 = vor.u32 %v5152_v33, %v4558_v50 }
 0x1ef   :  { %v1689_v41 = vadd.f32 %v1688_v0, %v1640_v56  ;;  %v1741_v9 = vadd.f32 %v1740_v23, %v5894_v16  ;;  %v4621_v56 = vor.u32 %v5169_v22, %v4620_v55  ;;  %v5167_v55 = vld [vmem:[#allocation8 + $0xe4] sm:$0xf0] }
 0x1f0   :  { %v1789_v58 = vpop.f32.mrf.mxu1  ;;  %2432 = vmatpush.bf16.msrb.mxu2 %v4561_v34  ;;  %v4613_v22 = vor.u32 %v5167_v55, %v4612_v25  ;;  %v5146_v55 = vld [vmem:[#allocation8 + $0x44] sm:$0xf] }
 0x1f1   :  { %v2114_v53 = vmax.f32 %v1689_v41, 0.0  ;;  %1837 = vmatmul.bf16.gmra.mxu2 %v6368_v46  ;;  %1935 = vmatmul.bf16.gmra.mxu0 %v6369_v39  ;;  %v6001_v60 = vadd.f32 %v1789_v58, %v1741_v9  ;;  %v6373_v46 = vld [vmem:[#allocation40_spill] sm:$0xff] }
 0x1f2   :  { %1886 = vmatmul.bf16.gmra.mxu3 %v6370_v14  ;;  %2383 = vmatpush.bf16.msra.mxu1 %v4621_v56  ;;  %v5150_v39 = vld [vmem:[#allocation8 + $0x64] sm:$0xf]  ;;  %v4550_v14 = vld [vmem:[#allocation8 + $0x68] sm:$0xf0] }
 0x1f3   :  { %1984 = vmatmul.bf16.gmra.mxu1 %v6371_v44  ;;  %v6005_v62 = vpack.c.bf16 %v2114_v53, %v2112_v59  ;;  %v6372_v53 = vld [vmem:[#allocation39_spill] sm:$0xff]  ;;  %v4553_v50 = vor.u32 %v5150_v39, %v4550_v14  ;;  %v5164_v14 = vld [vmem:[#allocation8 + $0xd4] sm:$0xf] }
 0x1f4   :  { %v1642_v29 = vpop.f32.mrf.mxu2 }
 0x1f5   :  { %v1643_v17 = vadd.f32 %v1642_v29, %v5892_v5  ;;  %v1691_v38 = vpop.f32.mrf.mxu3  ;;  %2433 = vmatpush.bf16.msrb.mxu2 %v4553_v50  ;;  %v4604_v50 = vld [vmem:[#allocation8 + $0xd0] sm:$0xf] }
 0x1f6   :  { %v6008_v1 = vpop.f32.mrf.mxu0  ;;  %2384 = vmatpush.bf16.msra.mxu1 %v4613_v22  ;;  %v4534_v22 = vld [vmem:[#allocation8 + $0x48] sm:$0xf0] }
 0x1f7   :  { %v1692_v54 = vadd.f32 %v1691_v38, %v1643_v17  ;;  %v5166_v38 = vld [vmem:[#allocation8 + $0xe4] sm:$0xf] }
 0x1f9   :  { %v2116_v5 = vmax.f32 %v1692_v54, 0.0  ;;  %v4614_v54 = vld [vmem:[#allocation8 + $0xe8] sm:$0xf0] }
 0x1fa   :  { %v4617_v7 = vor.u32 %v5166_v38, %v4614_v54 }
 0x1fc   :  { %v1644_v0 = vpop.f32.mrf.mxu2  ;;  %2482 = vmatpush.bf16.msrb.mxu3 %v4617_v7 }
 0x1fd   :  { %v1645_v23 = vadd.f32 %v1644_v0, %v5903_v6  ;;  %v1693_v41 = vpop.f32.mrf.mxu3 }
 0x1fe   :  { %v1901_v9 = vpop.f32.mrf.mxu0 }
 0x1ff   :  { %v1694_v58 = vadd.f32 %v1693_v41, %v1645_v23 }
 0x201   :  { %v2118_v59 = vmax.f32 %v1694_v58, 0.0  ;;  %1998 = vmatmul.bf16.vlgmr.msra.gmra.mxu2 %v6372_v53  ;;  %2342 = vmatmul.bf16.vlgmr.msra.gmra.mxu0 %v5917_v19 }
 0x202   :  { %2047 = vmatmul.bf16.vlgmr.msra.gmra.mxu3 %v6373_v46 }
 0x203   :  { %v6014_v44 = vpack.c.bf16 %v2118_v59, %v2116_v5  ;;  %v5148_v5 = vld [vmem:[#allocation8 + $0x54] sm:$0xf] }
 0x204   :  { %v1803_v33 = vpop.f32.mrf.mxu2 }
 0x205   :  { %v1804_v29 = vadd.f32 %v1803_v33, %v5900_v3  ;;  %v1852_v6 = vpop.f32.mrf.mxu3  ;;  %v4606_v33 = vld [vmem:[#allocation8 + $0xd8] sm:$0xf0] }
 0x206   :  { %v1903_v34 = vpop.f32.mrf.mxu0 }
 0x207   :  { %v1853_v17 = vadd.f32 %v1852_v6, %v1804_v29  ;;  %v5165_v6 = vld [vmem:[#allocation8 + $0xd4] sm:$0xf0] }
 0x209   :  { %v6017_v21 = vadd.f32 %v1901_v9, %v1853_v17  ;;  %v4542_v9 = vld [vmem:[#allocation8 + $0x58] sm:$0xf0] }
 0x20a   :  { %v4545_v53 = vor.u32 %v5148_v5, %v4542_v9  ;;  %v4598_v5 = vld [vmem:[#allocation8 + $0xc8] sm:$0xf0]  ;;  %v4596_v9 = vld [vmem:[#allocation8 + $0xc0] sm:$0xf] }
 0x20c   :  { %v1805_v56 = vpop.f32.mrf.mxu2  ;;  %2434 = vmatpush.bf16.msrb.mxu2 %v4545_v53 }
 0x20d   :  { %v1806_v0 = vadd.f32 %v1805_v56, %v5908_v15  ;;  %v1854_v23 = vpop.f32.mrf.mxu3 }
 0x20e   :  { %v1906_v41 = vpop.f32.mrf.mxu0 }
 0x20f   :  { %v1855_v3 = vadd.f32 %v1854_v23, %v1806_v0  ;;  %v4537_v0 = vor.u32 %v5146_v55, %v4534_v22  ;;  %v5161_v55 = vld [vmem:[#allocation8 + $0xb4] sm:$0xf0] }
 0x211   :  { %2003 = vmatmul.bf16.gmra.mxu2 %v5797_v48  ;;  %2347 = vmatmul.bf16.gmra.mxu0 %v5932_v28  ;;  %v6022_v58 = vadd.f32 %v1903_v34, %v1855_v3  ;;  %v4609_v48 = vor.u32 %v5164_v14, %v4606_v33  ;;  %v4605_v34 = vor.u32 %v5165_v6, %v4604_v50  ;;  %v5162_v3 = vld [vmem:[#allocation8 + $0xc4] sm:$0xf]  ;;  %v5144_v50 = vld [vmem:[#allocation8 + $0x34] sm:$0xf] }
 0x212   :  { %2052 = vmatmul.bf16.gmra.mxu3 %v5799_v11  ;;  %2435 = vmatpush.bf16.msrb.mxu2 %v4537_v0 }
 0x213   :  { %2483 = vmatpush.bf16.msrb.mxu3 %v4609_v48  ;;  %2385 = vmatpush.bf16.msra.mxu1 %v4605_v34 }
 0x214   :  { %v1808_v59 = vpop.f32.mrf.mxu2 }
 0x215   :  { %v1809_v46 = vadd.f32 %v1808_v59, %v5914_v49  ;;  %v1857_v39 = vpop.f32.mrf.mxu3  ;;  %v5163_v59 = vld [vmem:[#allocation8 + $0xc4] sm:$0xf0] }
 0x216   :  { %v1908_v29 = vpop.f32.mrf.mxu0 }
 0x217   :  { %v1858_v15 = vadd.f32 %v1857_v39, %v1809_v46  ;;  %v4597_v46 = vor.u32 %v5163_v59, %v4596_v9  ;;  %v4518_v9 = vld [vmem:[#allocation8 + $0x28] sm:$0xf0] }
 0x219   :  { %v6026_v17 = vadd.f32 %v1906_v41, %v1858_v15  ;;  %2386 = vmatpush.bf16.msra.mxu1 %v4597_v46 }
 0x21c   :  { %v1810_v11 = vpop.f32.mrf.mxu2 }
 0x21d   :  { %v1811_v38 = vadd.f32 %v1810_v11, %v5922_v32  ;;  %v1859_v54 = vpop.f32.mrf.mxu3 }
 0x21e   :  { %v1911_v7 = vpop.f32.mrf.mxu0 }
 0x21f   :  { %v1860_v25 = vadd.f32 %v1859_v54, %v1811_v38  ;;  %v5160_v54 = vld [vmem:[#allocation8 + $0xb4] sm:$0xf] }
 0x221   :  { %2008 = vmatmul.bf16.gmra.mxu2 %v5811_v36  ;;  %2352 = vmatmul.bf16.gmra.mxu0 %v5946_v63  ;;  %v6031_v49 = vadd.f32 %v1908_v29, %v1860_v25  ;;  %v4601_v36 = vor.u32 %v5162_v3, %v4598_v5  ;;  %v4526_v29 = vld [vmem:[#allocation8 + $0x38] sm:$0xf0]  ;;  %v6374_v3 = vld [vmem:[#allocation41_spill] sm:$0xff]  ;;  %v5142_v5 = vld [vmem:[#allocation8 + $0x24] sm:$0xf] }
 0x222   :  { %2057 = vmatmul.bf16.gmra.mxu3 %v5813_v2  ;;  %v4529_v6 = vor.u32 %v5144_v50, %v4526_v29  ;;  %v4590_v25 = vld [vmem:[#allocation8 + $0xb8] sm:$0xf0]  ;;  %v4521_v59 = vor.u32 %v5142_v5, %v4518_v9  ;;  %v5159_v50 = vld [vmem:[#allocation8 + $0xa4] sm:$0xf0] }
 0x223   :  { %2484 = vmatpush.bf16.msrb.mxu3 %v4601_v36 }
 0x224   :  { %v1813_v56 = vpop.f32.mrf.mxu2  ;;  %2436 = vmatpush.bf16.msrb.mxu2 %v4529_v6 }
 0x225   :  { %v1814_v23 = vadd.f32 %v1813_v56, %v5928_v35  ;;  %v1862_v41 = vpop.f32.mrf.mxu3 }
 0x226   :  { %v1913_v2 = vpop.f32.mrf.mxu0 }
 0x227   :  { %v1863_v32 = vadd.f32 %v1862_v41, %v1814_v23 }
 0x228   :  { %2437 = vmatpush.bf16.msrb.mxu2 %v4521_v59 }
 0x229   :  { %v6035_v53 = vadd.f32 %v1911_v7, %v1863_v32  ;;  %v4588_v7 = vld [vmem:[#allocation8 + $0xb0] sm:$0xf] }
 0x22a   :  { %v4589_v56 = vor.u32 %v5161_v55, %v4588_v7 }
 0x22c   :  { %v1815_v39 = vpop.f32.mrf.mxu2  ;;  %2387 = vmatpush.bf16.msra.mxu1 %v4589_v56  ;;  %v5156_v56 = vld [vmem:[#allocation8 + $0x94] sm:$0xf] }
 0x22d   :  { %v1816_v15 = vadd.f32 %v1815_v39, %v5936_v43  ;;  %v1864_v14 = vpop.f32.mrf.mxu3 }
 0x22e   :  { %v1916_v38 = vpop.f32.mrf.mxu0 }
 0x22f   :  { %v1865_v33 = vadd.f32 %v1864_v14, %v1816_v15  ;;  %v4582_v15 = vld [vmem:[#allocation8 + $0xa8] sm:$0xf0]  ;;  %v4580_v14 = vld [vmem:[#allocation8 + $0xa0] sm:$0xf] }
 0x230   :  { %v4581_v29 = vor.u32 %v5159_v50, %v4580_v14  ;;  %v4566_v50 = vld [vmem:[#allocation8 + $0x88] sm:$0xf0] }
 0x231   :  { %2013 = vmatmul.bf16.gmra.mxu2 %v5825_v27  ;;  %2357 = vmatmul.bf16.gmra.mxu0 %v5960_v8  ;;  %v6040_v35 = vadd.f32 %v1913_v2, %v1865_v33  ;;  %v4593_v27 = vor.u32 %v5160_v54, %v4590_v25 }
 0x232   :  { %2062 = vmatmul.bf16.gmra.mxu3 %v5827_v51  ;;  %2388 = vmatpush.bf16.msra.mxu1 %v4581_v29  ;;  %v4564_v29 = vld [vmem:[#allocation8 + $0x80] sm:$0xf] }
 0x233   :  { %2485 = vmatpush.bf16.msrb.mxu3 %v4593_v27 }
 0x234   :  { %v1818_v48 = vpop.f32.mrf.mxu2 }
 0x235   :  { %v1819_v34 = vadd.f32 %v1818_v48, %v5942_v37  ;;  %v1867_v11 = vpop.f32.mrf.mxu3 }
 0x236   :  { %v1918_v37 = vpop.f32.mrf.mxu0 }
 0x237   :  { %v1868_v43 = vadd.f32 %v1867_v11, %v1819_v34  ;;  %v6375_v11 = vld [vmem:[#allocation42_spill] sm:$0xff] }
 0x239   :  { %v6044_v22 = vadd.f32 %v1916_v38, %v1868_v43  ;;  %v5140_v38 = vld [vmem:[#allocation8 + $0x14] sm:$0xf]  ;;  %v4510_v43 = vld [vmem:[#allocation8 + $0x18] sm:$0xf0] }
 0x23a   :  { %v4513_v25 = vor.u32 %v5140_v38, %v4510_v43 }
 0x23c   :  { %v1820_v51 = vpop.f32.mrf.mxu2  ;;  %2438 = vmatpush.bf16.msrb.mxu2 %v4513_v25  ;;  %v1743_v25 = vadd.f32 %v6008_v1, %v5894_v16  ;;  %v5200_v1 = vld [vmem:[#allocation10 + $0xf4] sm:$0xf] }
 0x23d   :  { %v1821_v0 = vadd.f32 %v1820_v51, %v5950_v30  ;;  %v1869_v23 = vpop.f32.mrf.mxu3  ;;  %v1728_v30 = vadd.f32 %v5963_v47, %v5894_v16  ;;  %v6376_v47 = vld [vmem:[#allocation43_spill] sm:$0xff] }
 0x23e   :  { %v4574_v51 = vld [vmem:[#allocation8 + $0x98] sm:$0xf0] }
 0x23f   :  { %v1870_v41 = vadd.f32 %v1869_v23, %v1821_v0  ;;  %v1777_v48 = vadd.f32 %v5965_v12, %v1728_v30  ;;  %v1733_v12 = vadd.f32 %v5978_v57, %v5894_v16  ;;  %v4572_v0 = vld [vmem:[#allocation8 + $0x90] sm:$0xf]  ;;  %v1791_v23 = vpop.f32.mrf.mxu1 }
 0x241   :  { %2018 = vmatmul.bf16.gmra.mxu2 %v5839_v13  ;;  %2362 = vmatmul.bf16.gmra.mxu0 %v5975_v45  ;;  %v6049_v32 = vadd.f32 %v1918_v37, %v1870_v41  ;;  %v5158_v13 = vld [vmem:[#allocation8 + $0xa4] sm:$0xf]  ;;  %v4577_v41 = vor.u32 %v5156_v56, %v4574_v51  ;;  %v5157_v37 = vld [vmem:[#allocation8 + $0x94] sm:$0xf0]  ;;  %v1782_v5 = vadd.f32 %v5980_v42, %v1733_v12 }
 0x242   :  { %2067 = vmatmul.bf16.gmra.mxu3 %v6374_v3  ;;  %v4585_v33 = vor.u32 %v5158_v13, %v4582_v15  ;;  %v4573_v3 = vor.u32 %v5157_v37, %v4572_v0  ;;  %v1738_v15 = vadd.f32 %v5993_v20, %v5894_v16  ;;  %v5184_v37 = vld [vmem:[#allocation10 + $0x74] sm:$0xf] }
 0x244   :  { %v1823_v36 = vpop.f32.mrf.mxu2  ;;  %2486 = vmatpush.bf16.msrb.mxu3 %v4585_v33  ;;  %2389 = vmatpush.bf16.msra.mxu1 %v4573_v3  ;;  %v5154_v33 = vld [vmem:[#allocation8 + $0x84] sm:$0xf]  ;;  %v4686_v3 = vld [vmem:[#allocation10 + $0x78] sm:$0xf0] }
 0x245   :  { %v1824_v46 = vadd.f32 %v1823_v36, %v5956_v4  ;;  %v1872_v2 = vpop.f32.mrf.mxu3  ;;  %v4502_v36 = vld [vmem:[#allocation8 + $0x8] sm:$0xf0]  ;;  %v4689_v16 = vor.u32 %v5184_v37, %v4686_v3 }
 0x247   :  { %v6055_v39 = vadd.f32 %v1872_v2, %v1824_v46  ;;  %v1950_v2 = vpop.f32.mrf.mxu1 }
 0x248   :  { %2487 = vmatpush.bf16.msrb.mxu3 %v4577_v41 }
 0x24c   :  { %v1825_v6 = vpop.f32.mrf.mxu2 }
 0x24d   :  { %v6058_v34 = vadd.f32 %v1825_v6, %v1777_v48  ;;  %v6060_v4 = vpop.f32.mrf.mxu3  ;;  %v4569_v48 = vor.u32 %v5154_v33, %v4566_v50  ;;  %v5155_v6 = vld [vmem:[#allocation8 + $0x84] sm:$0xf0] }
 0x24f   :  { %2488 = vmatpush.bf16.msrb.mxu3 %v4569_v48 }
 0x251   :  { %2023 = vmatmul.bf16.gmra.mxu2 %v6375_v11  ;;  %2367 = vmatmul.bf16.gmra.mxu0 %v5990_v31  ;;  %v4565_v11 = vor.u32 %v5155_v6, %v4564_v29 }
 0x252   :  { %2072 = vmatmul.bf16.gmra.mxu3 %v6376_v47  ;;  %v1952_v47 = vpop.f32.mrf.mxu1 }
 0x253   :  { %2390 = vmatpush.bf16.msra.mxu1 %v4565_v11 }
 0x254   :  { %v1828_v54 = vpop.f32.mrf.mxu2 }
 0x255   :  { %v1829_v7 = vadd.f32 %v1828_v54, %v5971_v61  ;;  %v1877_v27 = vpop.f32.mrf.mxu3  ;;  %v5138_v61 = vld [vmem:[#allocation8 + $0x4] sm:$0xf] }
 0x256   :  { %v4505_v57 = vor.u32 %v5138_v61, %v4502_v36  ;;  %v1953_v61 = vadd.f32 %v1952_v47, %v6022_v58 }
 0x257   :  { %v6068_v55 = vadd.f32 %v1877_v27, %v1829_v7  ;;  %v1792_v27 = vadd.f32 %v1791_v23, %v1743_v25  ;;  %v4750_v23 = vld [vmem:[#allocation10 + $0xf8] sm:$0xf0]  ;;  %v5198_v25 = vld [vmem:[#allocation10 + $0xe4] sm:$0xf] }
 0x258   :  { %2439 = vmatpush.bf16.msrb.mxu2 %v4505_v57  ;;  %v4753_v36 = vor.u32 %v5200_v1, %v4750_v23  ;;  %v5185_v57 = vld [vmem:[#allocation10 + $0x74] sm:$0xf0] }
 0x25a   :  { %2923 = vmatpush.bf16.msra.mxu3 %v4753_v36 }
 0x25c   :  { %v1830_v9 = vpop.f32.mrf.mxu2  ;;  %2874 = vmatpush.bf16.msra.mxu2 %v4689_v16 }
 0x25d   :  { %v6071_v59 = vadd.f32 %v1830_v9, %v1782_v5  ;;  %v6073_v46 = vpop.f32.mrf.mxu3  ;;  %v4684_v9 = vld [vmem:[#allocation10 + $0x70] sm:$0xf] }
 0x261   :  { %2028 = vmatmul.bf16.gmra.mxu2 %v5867_v26  ;;  %2372 = vmatmul.bf16.gmra.mxu0 %v6005_v62  ;;  %v1787_v26 = vadd.f32 %v5995_v40, %v1738_v15  ;;  %v1955_v40 = vpop.f32.mrf.mxu1 }
 0x262   :  { %2077 = vmatmul.bf16.gmra.mxu3 %v5869_v24  ;;  %v1956_v47 = vadd.f32 %v1955_v40, %v6026_v17 }
 0x264   :  { %v1833_v30 = vpop.f32.mrf.mxu2 }
 0x265   :  { %v1834_v42 = vadd.f32 %v1833_v30, %v5986_v18  ;;  %v1882_v13 = vpop.f32.mrf.mxu3  ;;  %v4748_v30 = vld [vmem:[#allocation10 + $0xf0] sm:$0xf] }
 0x267   :  { %v6081_v14 = vadd.f32 %v1882_v13, %v1834_v42  ;;  %v5201_v42 = vld [vmem:[#allocation10 + $0xf4] sm:$0xf0]  ;;  %v4685_v13 = vor.u32 %v5185_v57, %v4684_v9 }
 0x268   :  { %v4749_v15 = vor.u32 %v5201_v42, %v4748_v30 }
 0x269   :  { %2776 = vmatpush.bf16.msrb.mxu0 %v4685_v13 }
 0x26a   :  { %2825 = vmatpush.bf16.msrb.mxu1 %v4749_v15  ;;  %v5180_v15 = vld [vmem:[#allocation10 + $0x54] sm:$0xf] }
 0x26c   :  { %v1835_v38 = vpop.f32.mrf.mxu2 }
 0x26d   :  { %v6084_v24 = vadd.f32 %v1835_v38, %v1787_v26  ;;  %v6086_v18 = vpop.f32.mrf.mxu3 }
 0x271   :  { %2033 = vmatmul.bf16.gmra.mxu2 %v5881_v52  ;;  %2377 = vmatmul.bf16.gmra.mxu0 %v6014_v44  ;;  %v1957_v52 = vpop.f32.mrf.mxu1 }
 0x272   :  { %2082 = vmatmul.bf16.gmra.mxu3 %v5883_v10 }
 0x274   :  { %v1838_v20 = vpop.f32.mrf.mxu2 }
 0x275   :  { %v1839_v43 = vadd.f32 %v1838_v20, %v6001_v60  ;;  %v1887_v54 = vpop.f32.mrf.mxu3  ;;  %v1951_v60 = vadd.f32 %v1950_v2, %v6017_v21  ;;  %v5182_v20 = vld [vmem:[#allocation10 + $0x64] sm:$0xf] }
 0x277   :  { %v6094_v7 = vadd.f32 %v1887_v54, %v1839_v43  ;;  %v4678_v43 = vld [vmem:[#allocation10 + $0x68] sm:$0xf0] }
 0x278   :  { %v4681_v54 = vor.u32 %v5182_v20, %v4678_v43 }
 0x279   :  { %v6102_v5 = vpop.f32.mrf.mxu1 }
 0x27a   :  { %2875 = vmatpush.bf16.msra.mxu2 %v4681_v54  ;;  %v1961_v42 = vadd.f32 %v6102_v5, %v6035_v53 }
 0x27c   :  { %v1840_v12 = vpop.f32.mrf.mxu2 }
 0x27d   :  { %v6096_v56 = vadd.f32 %v1840_v12, %v1792_v27  ;;  %v6098_v51 = vpop.f32.mrf.mxu3  ;;  %v4742_v27 = vld [vmem:[#allocation10 + $0xe8] sm:$0xf0]  ;;  %v4676_v12 = vld [vmem:[#allocation10 + $0x60] sm:$0xf] }
 0x281   :  { %2440 = vmatmul.bf16.vlgmr.msrb.gmra.mxu2 %v5917_v19  ;;  %v1962_v6 = vpop.f32.mrf.mxu1 }
 0x284   :  { %v1999_v10 = vpop.f32.mrf.mxu2 }
 0x285   :  { %v2048_v0 = vpop.f32.mrf.mxu3  ;;  %v2000_v41 = vadd.f32 %v1999_v10, %v1951_v60  ;;  %v1958_v10 = vadd.f32 %v1957_v52, %v6031_v49  ;;  %v5183_v60 = vld [vmem:[#allocation10 + $0x64] sm:$0xf0] }
 0x286   :  { %v4677_v3 = vor.u32 %v5183_v60, %v4676_v12 }
 0x287   :  { %v2049_v21 = vadd.f32 %v2048_v0, %v2000_v41  ;;  %v4745_v0 = vor.u32 %v5198_v25, %v4742_v27  ;;  %v5199_v41 = vld [vmem:[#allocation10 + $0xe4] sm:$0xf0] }
 0x288   :  { %2777 = vmatpush.bf16.msrb.mxu0 %v4677_v3  ;;  %v4662_v3 = vld [vmem:[#allocation10 + $0x48] sm:$0xf0] }
 0x289   :  { %v2089_v29 = vmax.f32 %v2049_v21, 0.0  ;;  %2924 = vmatpush.bf16.msra.mxu3 %v4745_v0  ;;  %v1965_v40 = vpop.f32.mrf.mxu1  ;;  %v4670_v21 = vld [vmem:[#allocation10 + $0x58] sm:$0xf0] }
 0x28c   :  { %v2001_v19 = vpop.f32.mrf.mxu2 }
 0x28d   :  { %v2002_v2 = vadd.f32 %v2001_v19, %v1953_v61  ;;  %v2050_v33 = vpop.f32.mrf.mxu3  ;;  %v6108_v61 = vpop.f32.mrf.mxu0 }
 0x28f   :  { %v2051_v50 = vadd.f32 %v2050_v33, %v2002_v2  ;;  %v4673_v33 = vor.u32 %v5180_v15, %v4670_v21 }
 0x291   :  { %v2091_v48 = vmax.f32 %v2051_v50, 0.0  ;;  %2445 = vmatmul.bf16.gmra.mxu2 %v5932_v28  ;;  %v4740_v28 = vld [vmem:[#allocation10 + $0xe0] sm:$0xf]  ;;  %v1967_v19 = vpop.f32.mrf.mxu1  ;;  %v5196_v50 = vld [vmem:[#allocation10 + $0xd4] sm:$0xf] }
 0x292   :  { %v4741_v16 = vor.u32 %v5199_v41, %v4740_v28  ;;  %2876 = vmatpush.bf16.msra.mxu2 %v4673_v33  ;;  %v1966_v28 = vadd.f32 %v1965_v40, %v6044_v22 }
 0x293   :  { %v2121_v58 = vpack.c.bf16 %v2091_v48, %v2089_v29  ;;  %v4734_v29 = vld [vmem:[#allocation10 + $0xd8] sm:$0xf0]  ;;  %v4668_v48 = vld [vmem:[#allocation10 + $0x50] sm:$0xf] }
 0x294   :  { %v2004_v26 = vpop.f32.mrf.mxu2  ;;  %2826 = vmatpush.bf16.msrb.mxu1 %v4741_v16 }
 0x295   :  { %v2053_v11 = vpop.f32.mrf.mxu3  ;;  %2391 = vmatmul.bf16.vlgmr.msra.gmra.mxu1 %v2121_v58  ;;  %2489 = vmatmul.bf16.vlgmr.msrb.gmra.mxu3 %v2121_v58  ;;  %v2005_v38 = vadd.f32 %v2004_v26, %v1956_v47  ;;  %v6113_v2 = vpop.f32.mrf.mxu0  ;;  %v4737_v58 = vor.u32 %v5196_v50, %v4734_v29  ;;  %v5181_v26 = vld [vmem:[#allocation10 + $0x54] sm:$0xf0] }
 0x296   :  { %v5197_v47 = vld [vmem:[#allocation10 + $0xd4] sm:$0xf0]  ;;  %v4669_v20 = vor.u32 %v5181_v26, %v4668_v48 }
 0x297   :  { %v2054_v1 = vadd.f32 %v2053_v11, %v2005_v38  ;;  %v4732_v11 = vld [vmem:[#allocation10 + $0xd0] sm:$0xf]  ;;  %2925 = vmatpush.bf16.msra.mxu3 %v4737_v58 }
 0x298   :  { %v4733_v53 = vor.u32 %v5197_v47, %v4732_v11  ;;  %2778 = vmatpush.bf16.msrb.mxu0 %v4669_v20 }
 0x299   :  { %v2093_v36 = vmax.f32 %v2054_v1, 0.0  ;;  %v5194_v1 = vld [vmem:[#allocation10 + $0xc4] sm:$0xf] }
 0x29a   :  { %2827 = vmatpush.bf16.msrb.mxu1 %v4733_v53  ;;  %v5176_v53 = vld [vmem:[#allocation10 + $0x34] sm:$0xf] }
 0x29c   :  { %v2006_v37 = vpop.f32.mrf.mxu2 }
 0x29d   :  { %v2007_v23 = vadd.f32 %v2006_v37, %v1958_v10  ;;  %v2055_v17 = vpop.f32.mrf.mxu3  ;;  %v6117_v10 = vpop.f32.mrf.mxu0  ;;  %v5178_v37 = vld [vmem:[#allocation10 + $0x44] sm:$0xf] }
 0x29e   :  { %v4665_v16 = vor.u32 %v5178_v37, %v4662_v3 }
 0x29f   :  { %v2056_v9 = vadd.f32 %v2055_v17, %v2007_v23  ;;  %v4726_v23 = vld [vmem:[#allocation10 + $0xc8] sm:$0xf0]  ;;  %v4660_v17 = vld [vmem:[#allocation10 + $0x40] sm:$0xf] }
 0x2a0   :  { %2877 = vmatpush.bf16.msra.mxu2 %v4665_v16 }
 0x2a1   :  { %v2095_v49 = vmax.f32 %v2056_v9, 0.0  ;;  %2450 = vmatmul.bf16.gmra.mxu2 %v5946_v63  ;;  %v1963_v63 = vadd.f32 %v1962_v6, %v6040_v35  ;;  %v1970_v35 = vpop.f32.mrf.mxu1  ;;  %v1968_v9 = vadd.f32 %v1967_v19, %v6049_v32  ;;  %v1922_v32 = vadd.f32 %v6108_v61, %v6055_v39  ;;  %v4718_v39 = vld [vmem:[#allocation10 + $0xb8] sm:$0xf0]  ;;  %v4652_v61 = vld [vmem:[#allocation10 + $0x30] sm:$0xf] }
 0x2a2   :  { %v1875_v19 = vadd.f32 %v6060_v4, %v6058_v34  ;;  %v5177_v4 = vld [vmem:[#allocation10 + $0x34] sm:$0xf0] }
 0x2a3   :  { %v2123_v52 = vpack.c.bf16 %v2095_v49, %v2093_v36  ;;  %v5179_v36 = vld [vmem:[#allocation10 + $0x44] sm:$0xf0]  ;;  %v4724_v49 = vld [vmem:[#allocation10 + $0xc0] sm:$0xf]  ;;  %v1971_v11 = vadd.f32 %v1970_v35, %v1922_v32 }
 0x2a4   :  { %v2009_v57 = vpop.f32.mrf.mxu2  ;;  %v1924_v47 = vadd.f32 %v6113_v2, %v1875_v19 }
 0x2a5   :  { %v2058_v30 = vpop.f32.mrf.mxu3  ;;  %2396 = vmatmul.bf16.gmra.mxu1 %v2123_v52  ;;  %2494 = vmatmul.bf16.gmra.mxu3 %v2123_v52  ;;  %v2010_v13 = vadd.f32 %v2009_v57, %v1961_v42  ;;  %v5195_v52 = vld [vmem:[#allocation10 + $0xc4] sm:$0xf0]  ;;  %v4661_v42 = vor.u32 %v5179_v36, %v4660_v17  ;;  %v1928_v21 = vpop.f32.mrf.mxu0 }
 0x2a7   :  { %v2059_v5 = vadd.f32 %v2058_v30, %v2010_v13  ;;  %v4725_v13 = vor.u32 %v5195_v52, %v4724_v49  ;;  %2779 = vmatpush.bf16.msrb.mxu0 %v4661_v42 }
 0x2a9   :  { %v2097_v27 = vmax.f32 %v2059_v5, 0.0  ;;  %v1972_v57 = vpop.f32.mrf.mxu1  ;;  %2828 = vmatpush.bf16.msrb.mxu1 %v4725_v13 }
 0x2ac   :  { %v2011_v38 = vpop.f32.mrf.mxu2 }
 0x2ad   :  { %v2012_v43 = vadd.f32 %v2011_v38, %v1963_v63  ;;  %v2060_v54 = vpop.f32.mrf.mxu3  ;;  %v6127_v38 = vpop.f32.mrf.mxu0 }
 0x2af   :  { %v2061_v25 = vadd.f32 %v2060_v54, %v2012_v43  ;;  %v5192_v43 = vld [vmem:[#allocation10 + $0xb4] sm:$0xf]  ;;  %v1973_v54 = vadd.f32 %v1972_v57, %v1924_v47  ;;  %v5174_v57 = vld [vmem:[#allocation10 + $0x24] sm:$0xf]  ;;  %v1885_v47 = vadd.f32 %v6086_v18, %v6084_v24  ;;  %v5189_v24 = vld [vmem:[#allocation10 + $0x94] sm:$0xf0] }
 0x2b0   :  { %v4721_v34 = vor.u32 %v5192_v43, %v4718_v39  ;;  %v5172_v43 = vld [vmem:[#allocation10 + $0x14] sm:$0xf]  ;;  %v4638_v39 = vld [vmem:[#allocation10 + $0x18] sm:$0xf0] }
 0x2b1   :  { %v2099_v12 = vmax.f32 %v2061_v25, 0.0  ;;  %2455 = vmatmul.bf16.gmra.mxu2 %v5960_v8  ;;  %v4729_v8 = vor.u32 %v5194_v1, %v4726_v23  ;;  %v1975_v26 = vpop.f32.mrf.mxu1  ;;  %v4716_v25 = vld [vmem:[#allocation10 + $0xb0] sm:$0xf]  ;;  %v1927_v1 = vadd.f32 %v6117_v10, %v6068_v55  ;;  %v1880_v23 = vadd.f32 %v6073_v46, %v6071_v59  ;;  %v5175_v10 = vld [vmem:[#allocation10 + $0x24] sm:$0xf0] }
 0x2b2   :  { %v5191_v59 = vld [vmem:[#allocation10 + $0xa4] sm:$0xf0] }
 0x2b3   :  { %v2125_v6 = vpack.c.bf16 %v2099_v12, %v2097_v27  ;;  %2926 = vmatpush.bf16.msra.mxu3 %v4729_v8  ;;  %v5193_v27 = vld [vmem:[#allocation10 + $0xb4] sm:$0xf0]  ;;  %v1976_v36 = vadd.f32 %v1975_v26, %v1927_v1  ;;  %v1929_v49 = vadd.f32 %v1928_v21, %v1880_v23 }
 0x2b4   :  { %v2014_v0 = vpop.f32.mrf.mxu2  ;;  %v4717_v35 = vor.u32 %v5193_v27, %v4716_v25  ;;  %v4636_v25 = vld [vmem:[#allocation10 + $0x10] sm:$0xf] }
 0x2b5   :  { %v2063_v60 = vpop.f32.mrf.mxu3  ;;  %2401 = vmatmul.bf16.gmra.mxu1 %v2125_v6  ;;  %2499 = vmatmul.bf16.gmra.mxu3 %v2125_v6  ;;  %v2015_v41 = vadd.f32 %v2014_v0, %v1966_v28  ;;  %v4653_v6 = vor.u32 %v5177_v4, %v4652_v61  ;;  %v1933_v16 = vpop.f32.mrf.mxu0  ;;  %v5188_v61 = vld [vmem:[#allocation10 + $0x94] sm:$0xf]  ;;  %v4702_v4 = vld [vmem:[#allocation10 + $0x98] sm:$0xf0] }
 0x2b6   :  { %2829 = vmatpush.bf16.msrb.mxu1 %v4717_v35 }
 0x2b7   :  { %v2064_v15 = vadd.f32 %v2063_v60, %v2015_v41  ;;  %2927 = vmatpush.bf16.msra.mxu3 %v4721_v34  ;;  %2780 = vmatpush.bf16.msrb.mxu0 %v4653_v6  ;;  %v4641_v34 = vor.u32 %v5172_v43, %v4638_v39  ;;  %v4700_v6 = vld [vmem:[#allocation10 + $0x90] sm:$0xf] }
 0x2b8   :  { %v4701_v18 = vor.u32 %v5189_v24, %v4700_v6  ;;  %v5232_v6 = vld [vmem:[#allocation11 + $0xf4] sm:$0xf]  ;;  %v4878_v24 = vld [vmem:[#allocation11 + $0xf8] sm:$0xf0] }
 0x2b9   :  { %v2101_v50 = vmax.f32 %v2064_v15, 0.0  ;;  %v1977_v41 = vpop.f32.mrf.mxu1  ;;  %v4710_v15 = vld [vmem:[#allocation10 + $0xa8] sm:$0xf0] }
 0x2bc   :  { %v2016_v30 = vpop.f32.mrf.mxu2 }
 0x2bd   :  { %v2017_v22 = vadd.f32 %v2016_v30, %v1968_v9  ;;  %v2065_v40 = vpop.f32.mrf.mxu3  ;;  %v4646_v30 = vld [vmem:[#allocation10 + $0x28] sm:$0xf0]  ;;  %v1936_v46 = vpop.f32.mrf.mxu0 }
 0x2be   :  { %v4649_v13 = vor.u32 %v5174_v57, %v4646_v30  ;;  %v4630_v57 = vld [vmem:[#allocation10 + $0x8] sm:$0xf0]  ;;  %v5186_v30 = vld [vmem:[#allocation10 + $0x84] sm:$0xf] }
 0x2bf   :  { %v2066_v33 = vadd.f32 %v2065_v40, %v2017_v22  ;;  %v4644_v22 = vld [vmem:[#allocation10 + $0x20] sm:$0xf]  ;;  %v1978_v40 = vadd.f32 %v1977_v41, %v1929_v49 }
 0x2c1   :  { %v2103_v29 = vmax.f32 %v2066_v33, 0.0  ;;  %2460 = vmatmul.bf16.gmra.mxu2 %v5975_v45  ;;  %v4654_v45 = vld [vmem:[#allocation10 + $0x38] sm:$0xf0]  ;;  %v1980_v42 = vpop.f32.mrf.mxu1  ;;  %v4708_v33 = vld [vmem:[#allocation10 + $0xa0] sm:$0xf] }
 0x2c2   :  { %v4657_v5 = vor.u32 %v5176_v53, %v4654_v45  ;;  %v4709_v32 = vor.u32 %v5191_v59, %v4708_v33 }
 0x2c3   :  { %v2127_v48 = vpack.c.bf16 %v2103_v29, %v2101_v50  ;;  %v4645_v29 = vor.u32 %v5175_v10, %v4644_v22 }
 0x2c4   :  { %v2019_v63 = vpop.f32.mrf.mxu2  ;;  %2878 = vmatpush.bf16.msra.mxu2 %v4657_v5  ;;  %2830 = vmatpush.bf16.msrb.mxu1 %v4709_v32  ;;  %v4692_v32 = vld [vmem:[#allocation10 + $0x80] sm:$0xf] }
 0x2c5   :  { %v2068_v58 = vpop.f32.mrf.mxu3  ;;  %2406 = vmatmul.bf16.gmra.mxu1 %v2127_v48  ;;  %2504 = vmatmul.bf16.gmra.mxu3 %v2127_v48  ;;  %v2020_v20 = vadd.f32 %v2019_v63, %v1971_v11  ;;  %v1932_v11 = vadd.f32 %v6127_v38, %v6081_v14  ;;  %v4705_v14 = vor.u32 %v5188_v61, %v4702_v4  ;;  %v5216_v61 = vld [vmem:[#allocation11 + $0x74] sm:$0xf] }
 0x2c6   :  { %2781 = vmatpush.bf16.msrb.mxu0 %v4645_v29 }
 0x2c7   :  { %v2069_v0 = vadd.f32 %v2068_v58, %v2020_v20  ;;  %v1981_v27 = vadd.f32 %v1980_v42, %v1932_v11 }
 0x2c8   :  { %2879 = vmatpush.bf16.msra.mxu2 %v4649_v13  ;;  %2831 = vmatpush.bf16.msrb.mxu1 %v4701_v18  ;;  %v4694_v13 = vld [vmem:[#allocation10 + $0x88] sm:$0xf0] }
 0x2c9   :  { %v2105_v37 = vmax.f32 %v2069_v0, 0.0  ;;  %v1982_v53 = vpop.f32.mrf.mxu1  ;;  %v4697_v22 = vor.u32 %v5186_v30, %v4694_v13 }
 0x2cc   :  { %v2021_v12 = vpop.f32.mrf.mxu2  ;;  %2880 = vmatpush.bf16.msra.mxu2 %v4641_v34 }
 0x2cd   :  { %v2022_v2 = vadd.f32 %v2021_v12, %v1973_v54  ;;  %v2070_v60 = vpop.f32.mrf.mxu3  ;;  %v1938_v54 = vpop.f32.mrf.mxu0  ;;  %v1934_v12 = vadd.f32 %v1933_v16, %v1885_v47 }
 0x2cf   :  { %v2071_v28 = vadd.f32 %v2070_v60, %v2022_v2  ;;  %v1983_v0 = vadd.f32 %v1982_v53, %v1934_v12  ;;  %v2168_v53 = vld [vmem:[%s6297_s4] sm:$0x3] }
 0x2d1   :  { %v2107_v3 = vmax.f32 %v2071_v28, 0.0  ;;  %2465 = vmatmul.bf16.gmra.mxu2 %v5990_v31  ;;  %v5190_v31 = vld [vmem:[#allocation10 + $0xa4] sm:$0xf] }
 0x2d2   :  { %v4713_v55 = vor.u32 %v5190_v31, %v4710_v15 }
 0x2d3   :  { %v2129_v17 = vpack.c.bf16 %v2107_v3, %v2105_v37  ;;  %v1985_v37 = vpop.f32.mrf.mxu1 }
 0x2d4   :  { %v2024_v9 = vpop.f32.mrf.mxu2  ;;  %2928 = vmatpush.bf16.msra.mxu3 %v4713_v55 }
 0x2d5   :  { %v2073_v8 = vpop.f32.mrf.mxu3  ;;  %2411 = vmatmul.bf16.gmra.mxu1 %v2129_v17  ;;  %2509 = vmatmul.bf16.gmra.mxu3 %v2129_v17  ;;  %v2025_v52 = vadd.f32 %v2024_v9, %v1976_v36  ;;  %v2343_v1 = vpop.f32.mrf.mxu0  ;;  %v1937_v17 = vadd.f32 %v1936_v46, %v6094_v7  ;;  %v1890_v9 = vadd.f32 %v6098_v51, %v6096_v56  ;;  %v4628_v56 = vld [vmem:[#allocation10] sm:$0xf]  ;;  %v5171_v51 = vld [vmem:[#allocation10 + $0x4] sm:$0xf0] }
 0x2d6   :  { %v4629_v33 = vor.u32 %v5171_v51, %v4628_v56 }
 0x2d7   :  { %v2074_v19 = vadd.f32 %v2073_v8, %v2025_v52  ;;  %v5170_v52 = vld [vmem:[#allocation10 + $0x4] sm:$0xf]  ;;  %v1986_v31 = vadd.f32 %v1985_v37, %v1937_v17  ;;  %v1939_v15 = vadd.f32 %v1938_v54, %v1890_v9  ;;  %v4814_v54 = vld [vmem:[#allocation11 + $0x78] sm:$0xf0] }
 0x2d8   :  { %2929 = vmatpush.bf16.msra.mxu3 %v4705_v14  ;;  %v4633_v42 = vor.u32 %v5170_v52, %v4630_v57 }
 0x2d9   :  { %v2109_v58 = vmax.f32 %v2074_v19, 0.0  ;;  %v5187_v19 = vld [vmem:[#allocation10 + $0x84] sm:$0xf0] }
 0x2da   :  { %2881 = vmatpush.bf16.msra.mxu2 %v4633_v42 }
 0x2dc   :  { %v2026_v50 = vpop.f32.mrf.mxu2  ;;  %2930 = vmatpush.bf16.msra.mxu3 %v4697_v22  ;;  %v4806_v22 = vld [vmem:[#allocation11 + $0x68] sm:$0xf0] }
 0x2dd   :  { %v2027_v21 = vadd.f32 %v2026_v50, %v1978_v40  ;;  %v2075_v48 = vpop.f32.mrf.mxu3  ;;  %v1987_v40 = vpop.f32.mrf.mxu1 }
 0x2de   :  { %v2345_v7 = vpop.f32.mrf.mxu0  ;;  %v1988_v55 = vadd.f32 %v1987_v40, %v1939_v15  ;;  %v5214_v15 = vld [vmem:[#allocation11 + $0x64] sm:$0xf] }
 0x2df   :  { %v2076_v63 = vadd.f32 %v2075_v48, %v2027_v21  ;;  %v4693_v21 = vor.u32 %v5187_v19, %v4692_v32 }
 0x2e1   :  { %v2111_v26 = vmax.f32 %v2076_v63, 0.0  ;;  %2470 = vmatmul.bf16.gmra.mxu2 %v6005_v62  ;;  %v5173_v62 = vld [vmem:[#allocation10 + $0x14] sm:$0xf0]  ;;  %2832 = vmatpush.bf16.msrb.mxu1 %v4693_v21  ;;  %v4804_v21 = vld [vmem:[#allocation11 + $0x60] sm:$0xf] }
 0x2e2   :  { %v4637_v38 = vor.u32 %v5173_v62, %v4636_v25  ;;  %v4817_v25 = vor.u32 %v5216_v61, %v4814_v54 }
 0x2e3   :  { %v2131_v20 = vpack.c.bf16 %v2111_v26, %v2109_v58 }
 0x2e4   :  { %v2029_v45 = vpop.f32.mrf.mxu2  ;;  %2782 = vmatpush.bf16.msrb.mxu0 %v4637_v38  ;;  %3316 = vmatpush.bf16.msrb.mxu2 %v4817_v25 }
 0x2e5   :  { %v2078_v5 = vpop.f32.mrf.mxu3  ;;  %2416 = vmatmul.bf16.gmra.mxu1 %v2131_v20  ;;  %2514 = vmatmul.bf16.gmra.mxu3 %v2131_v20  ;;  %v2030_v35 = vadd.f32 %v2029_v45, %v1981_v27  ;;  %v6152_v27 = vperm.slane %v2168_v53, 1 }
 0x2e6   :  { %v2348_v26 = vpop.f32.mrf.mxu0 }
 0x2e7   :  { %v2079_v60 = vadd.f32 %v2078_v5, %v2030_v35  ;;  %v6146_v5 = vperm.slane %v2168_v53, 0  ;;  %v4881_v35 = vor.u32 %v5232_v6, %v4878_v24 }
 0x2e8   :  { %2783 = vmatpush.bf16.msrb.mxu0 %v4629_v33  ;;  %v4870_v33 = vld [vmem:[#allocation11 + $0xe8] sm:$0xf0] }
 0x2e9   :  { %v2113_v23 = vmax.f32 %v2079_v60, 0.0  ;;  %v2344_v39 = vadd.f32 %v2343_v1, %v6146_v5  ;;  %v2346_v62 = vadd.f32 %v2345_v7, %v6146_v5  ;;  %3365 = vmatpush.bf16.msrb.mxu3 %v4881_v35  ;;  %v5233_v1 = vld [vmem:[#allocation11 + $0xf4] sm:$0xf0] }
 0x2ec   :  { %v2031_v2 = vpop.f32.mrf.mxu2 }
 0x2ed   :  { %v2032_v28 = vadd.f32 %v2031_v2, %v1983_v0  ;;  %v2080_v41 = vpop.f32.mrf.mxu3 }
 0x2ee   :  { %v2350_v20 = vpop.f32.mrf.mxu0 }
 0x2ef   :  { %v2081_v3 = vadd.f32 %v2080_v41, %v2032_v28  ;;  %v4812_v28 = vld [vmem:[#allocation11 + $0x70] sm:$0xf]  ;;  %v5217_v41 = vld [vmem:[#allocation11 + $0x74] sm:$0xf0]  ;;  %v2351_v7 = vadd.f32 %v2350_v20, %v6146_v5 }
 0x2f0   :  { %v4813_v37 = vor.u32 %v5217_v41, %v4812_v28  ;;  %v4862_v28 = vld [vmem:[#allocation11 + $0xd8] sm:$0xf0] }
 0x2f1   :  { %v2115_v16 = vmax.f32 %v2081_v3, 0.0  ;;  %2475 = vmatmul.bf16.gmra.mxu2 %v6014_v44  ;;  %v4876_v3 = vld [vmem:[#allocation11 + $0xf0] sm:$0xf] }
 0x2f2   :  { %v4877_v9 = vor.u32 %v5233_v1, %v4876_v3  ;;  %3218 = vmatpush.bf16.msra.mxu0 %v4813_v37 }
 0x2f3   :  { %v2133_v8 = vpack.c.bf16 %v2115_v16, %v2113_v23 }
 0x2f4   :  { %v2034_v36 = vpop.f32.mrf.mxu2  ;;  %3267 = vmatpush.bf16.msra.mxu1 %v4877_v9  ;;  %v4860_v9 = vld [vmem:[#allocation11 + $0xd0] sm:$0xf] }
 0x2f5   :  { %v2083_v49 = vpop.f32.mrf.mxu3  ;;  %2421 = vmatmul.bf16.gmra.mxu1 %v2133_v8  ;;  %2519 = vmatmul.bf16.gmra.mxu3 %v2133_v8  ;;  %v2035_v44 = vadd.f32 %v2034_v36, %v1986_v31  ;;  %v2349_v31 = vadd.f32 %v2348_v26, %v6146_v5  ;;  %v5231_v26 = vld [vmem:[#allocation11 + $0xe4] sm:$0xf0] }
 0x2f6   :  { %v6149_v34 = vpop.f32.mrf.mxu0 }
 0x2f7   :  { %v2084_v59 = vadd.f32 %v2083_v49, %v2035_v44  ;;  %v4809_v44 = vor.u32 %v5214_v15, %v4806_v22 }
 0x2f9   :  { %v2117_v48 = vmax.f32 %v2084_v59, 0.0  ;;  %3317 = vmatpush.bf16.msrb.mxu2 %v4809_v44 }
 0x2fc   :  { %v2036_v10 = vpop.f32.mrf.mxu2 }
 0x2fd   :  { %v2037_v46 = vadd.f32 %v2036_v10, %v1988_v55  ;;  %v2085_v50 = vpop.f32.mrf.mxu3  ;;  %v5230_v10 = vld [vmem:[#allocation11 + $0xe4] sm:$0xf] }
 0x2fe   :  { %v2355_v49 = vpop.f32.mrf.mxu0 }
 0x2ff   :  { %v2086_v29 = vadd.f32 %v2085_v50, %v2037_v46  ;;  %v4873_v50 = vor.u32 %v5230_v10, %v4870_v33 }
 0x301   :  { %v2119_v63 = vmax.f32 %v2086_v29, 0.0  ;;  %3366 = vmatpush.bf16.msrb.mxu3 %v4873_v50 }
 0x303   :  { %v2135_v58 = vpack.c.bf16 %v2119_v63, %v2117_v48  ;;  %v5215_v48 = vld [vmem:[#allocation11 + $0x64] sm:$0xf0] }
 0x304   :  { %v2441_v11 = vpop.f32.mrf.mxu2  ;;  %v4805_v63 = vor.u32 %v5215_v48, %v4804_v21  ;;  %v4854_v21 = vld [vmem:[#allocation11 + $0xc8] sm:$0xf0] }
 0x305   :  { %2426 = vmatmul.bf16.gmra.mxu1 %v2135_v58  ;;  %2524 = vmatmul.bf16.gmra.mxu3 %v2135_v58  ;;  %v2442_v0 = vadd.f32 %v2441_v11, %v6152_v27  ;;  %v4868_v58 = vld [vmem:[#allocation11 + $0xe0] sm:$0xf] }
 0x306   :  { %v6158_v59 = vpop.f32.mrf.mxu0  ;;  %v4869_v53 = vor.u32 %v5231_v26, %v4868_v58  ;;  %3219 = vmatpush.bf16.msra.mxu0 %v4805_v63  ;;  %v4788_v26 = vld [vmem:[#allocation11 + $0x40] sm:$0xf] }
 0x308   :  { %3268 = vmatpush.bf16.msra.mxu1 %v4869_v53  ;;  %v5227_v53 = vld [vmem:[#allocation11 + $0xc4] sm:$0xf0] }
 0x30c   :  { %v2443_v47 = vpop.f32.mrf.mxu2 }
 0x30d   :  { %v2444_v23 = vadd.f32 %v2443_v47, %v6152_v27 }
 0x312   :  { %v2392_v45 = vpop.f32.mrf.mxu1 }
 0x313   :  { %v2393_v12 = vadd.f32 %v2392_v45, %v2344_v39 }
 0x314   :  { %v2446_v43 = vpop.f32.mrf.mxu2 }
 0x315   :  { %v2530_v2 = vmax.f32 %v2393_v12, 0.0  ;;  %v2447_v29 = vadd.f32 %v2446_v43, %v6152_v27  ;;  %v2354_v12 = vadd.f32 %v6149_v34, %v6146_v5 }
 0x318   :  { %v2490_v4 = vpop.f32.mrf.mxu3 }
 0x319   :  { %v2491_v16 = vadd.f32 %v2490_v4, %v2442_v0 }
 0x31a   :  { %v2394_v14 = vpop.f32.mrf.mxu1 }
 0x31b   :  { %v2395_v38 = vadd.f32 %v2394_v14, %v2346_v62  ;;  %v2531_v57 = vmax.f32 %v2491_v16, 0.0  ;;  %v2360_v62 = vpop.f32.mrf.mxu0  ;;  %v5212_v14 = vld [vmem:[#allocation11 + $0x54] sm:$0xf]  ;;  %v5213_v16 = vld [vmem:[#allocation11 + $0x54] sm:$0xf0] }
 0x31c   :  { %v2448_v18 = vpop.f32.mrf.mxu2  ;;  %v2361_v33 = vadd.f32 %v2360_v62, %v6146_v5 }
 0x31d   :  { %v2532_v60 = vmax.f32 %v2395_v38, 0.0  ;;  %v2449_v11 = vadd.f32 %v2448_v18, %v6152_v27  ;;  %v4798_v38 = vld [vmem:[#allocation11 + $0x58] sm:$0xf0]  ;;  %v2356_v18 = vadd.f32 %v2355_v49, %v6146_v5 }
 0x31e   :  { %v4801_v24 = vor.u32 %v5212_v14, %v4798_v38 }
 0x31f   :  { %v2562_v17 = vpack.c.bf16 %v2532_v60, %v2530_v2  ;;  %v5228_v60 = vld [vmem:[#allocation11 + $0xd4] sm:$0xf] }
 0x320   :  { %v2492_v8 = vpop.f32.mrf.mxu3  ;;  %3318 = vmatpush.bf16.msrb.mxu2 %v4801_v24  ;;  %v4865_v37 = vor.u32 %v5228_v60, %v4862_v28 }
 0x321   :  { %v2493_v36 = vadd.f32 %v2492_v8, %v2444_v23  ;;  %2784 = vmatmul.bf16.vlgmr.msrb.gmra.mxu0 %v2562_v17  ;;  %2882 = vmatmul.bf16.vlgmr.msra.gmra.mxu2 %v2562_v17  ;;  %v4796_v23 = vld [vmem:[#allocation11 + $0x50] sm:$0xf]  ;;  %v5229_v8 = vld [vmem:[#allocation11 + $0xd4] sm:$0xf0] }
 0x322   :  { %v2397_v52 = vpop.f32.mrf.mxu1  ;;  %3367 = vmatpush.bf16.msrb.mxu3 %v4865_v37  ;;  %v4797_v17 = vor.u32 %v5213_v16, %v4796_v23 }
 0x323   :  { %v2533_v30 = vmax.f32 %v2493_v36, 0.0  ;;  %v2398_v55 = vadd.f32 %v2397_v52, %v2349_v31 }
 0x324   :  { %v2451_v42 = vpop.f32.mrf.mxu2  ;;  %3220 = vmatpush.bf16.msra.mxu0 %v4797_v17 }
 0x325   :  { %v2563_v13 = vpack.c.bf16 %v2533_v30, %v2531_v57  ;;  %v2534_v32 = vmax.f32 %v2398_v55, 0.0  ;;  %v2452_v3 = vadd.f32 %v2451_v42, %v6152_v27  ;;  %v4861_v57 = vor.u32 %v5229_v8, %v4860_v9  ;;  %v2363_v30 = vpop.f32.mrf.mxu0  ;;  %v5210_v55 = vld [vmem:[#allocation11 + $0x44] sm:$0xf]  ;;  %v4780_v8 = vld [vmem:[#allocation11 + $0x30] sm:$0xf] }
 0x326   :  { %v2364_v24 = vadd.f32 %v2363_v30, %v6146_v5  ;;  %v5225_v30 = vld [vmem:[#allocation11 + $0xb4] sm:$0xf0] }
 0x327   :  { %2833 = vmatmul.bf16.vlgmr.msrb.gmra.mxu1 %v2563_v13  ;;  %2931 = vmatmul.bf16.vlgmr.msra.gmra.mxu3 %v2563_v13 }
 0x328   :  { %v2495_v40 = vpop.f32.mrf.mxu3  ;;  %3269 = vmatpush.bf16.msra.mxu1 %v4861_v57  ;;  %v4844_v57 = vld [vmem:[#allocation11 + $0xb0] sm:$0xf] }
 0x329   :  { %v2496_v47 = vadd.f32 %v2495_v40, %v2447_v29 }
 0x32a   :  { %v2399_v56 = vpop.f32.mrf.mxu1 }
 0x32b   :  { %v2400_v51 = vadd.f32 %v2399_v56, %v2351_v7  ;;  %v2535_v43 = vmax.f32 %v2496_v47, 0.0  ;;  %v2359_v7 = vadd.f32 %v6158_v59, %v6146_v5  ;;  %v4790_v56 = vld [vmem:[#allocation11 + $0x48] sm:$0xf0] }
 0x32c   :  { %v2453_v46 = vpop.f32.mrf.mxu2  ;;  %v4793_v10 = vor.u32 %v5210_v55, %v4790_v56 }
 0x32d   :  { %v2536_v19 = vmax.f32 %v2400_v51, 0.0  ;;  %v2454_v36 = vadd.f32 %v2453_v46, %v6152_v27  ;;  %v2365_v50 = vpop.f32.mrf.mxu0 }
 0x32e   :  { %3319 = vmatpush.bf16.msrb.mxu2 %v4793_v10  ;;  %v2366_v60 = vadd.f32 %v2365_v50, %v6146_v5 }
 0x32f   :  { %v2564_v20 = vpack.c.bf16 %v2536_v19, %v2534_v32  ;;  %v5226_v19 = vld [vmem:[#allocation11 + $0xc4] sm:$0xf] }
 0x330   :  { %v2497_v45 = vpop.f32.mrf.mxu3  ;;  %v4857_v48 = vor.u32 %v5226_v19, %v4854_v21 }
 0x331   :  { %v2498_v39 = vadd.f32 %v2497_v45, %v2449_v11  ;;  %2789 = vmatmul.bf16.gmra.mxu0 %v2564_v20  ;;  %2887 = vmatmul.bf16.gmra.mxu2 %v2564_v20  ;;  %v5211_v11 = vld [vmem:[#allocation11 + $0x44] sm:$0xf0]  ;;  %v4852_v20 = vld [vmem:[#allocation11 + $0xc0] sm:$0xf] }
 0x332   :  { %v2402_v61 = vpop.f32.mrf.mxu1  ;;  %3368 = vmatpush.bf16.msrb.mxu3 %v4857_v48  ;;  %v4789_v47 = vor.u32 %v5211_v11, %v4788_v26 }
 0x333   :  { %v2537_v54 = vmax.f32 %v2498_v39, 0.0  ;;  %v2403_v35 = vadd.f32 %v2402_v61, %v2354_v12 }
 0x334   :  { %v2456_v4 = vpop.f32.mrf.mxu2  ;;  %3221 = vmatpush.bf16.msra.mxu0 %v4789_v47 }
 0x335   :  { %v2565_v25 = vpack.c.bf16 %v2537_v54, %v2535_v43  ;;  %v2538_v1 = vmax.f32 %v2403_v35, 0.0  ;;  %v2457_v63 = vadd.f32 %v2456_v4, %v6152_v27  ;;  %v4853_v43 = vor.u32 %v5227_v53, %v4852_v20  ;;  %v2368_v38 = vpop.f32.mrf.mxu0  ;;  %v4782_v35 = vld [vmem:[#allocation11 + $0x38] sm:$0xf0]  ;;  %v4772_v53 = vld [vmem:[#allocation11 + $0x20] sm:$0xf] }
 0x336   :  { %v2369_v10 = vadd.f32 %v2368_v38, %v6146_v5 }
 0x337   :  { %2838 = vmatmul.bf16.gmra.mxu1 %v2565_v25  ;;  %2936 = vmatmul.bf16.gmra.mxu3 %v2565_v25 }
 0x338   :  { %v2500_v6 = vpop.f32.mrf.mxu3  ;;  %3270 = vmatpush.bf16.msra.mxu1 %v4853_v43  ;;  %v4836_v43 = vld [vmem:[#allocation11 + $0xa0] sm:$0xf] }
 0x339   :  { %v2501_v49 = vadd.f32 %v2500_v6, %v2452_v3 }
 0x33a   :  { %v2404_v0 = vpop.f32.mrf.mxu1 }
 0x33b   :  { %v2405_v2 = vadd.f32 %v2404_v0, %v2356_v18  ;;  %v2539_v15 = vmax.f32 %v2501_v49, 0.0  ;;  %v5208_v18 = vld [vmem:[#allocation11 + $0x34] sm:$0xf] }
 0x33c   :  { %v2458_v41 = vpop.f32.mrf.mxu2 }
 0x33d   :  { %v2540_v34 = vmax.f32 %v2405_v2, 0.0  ;;  %v2459_v45 = vadd.f32 %v2458_v41, %v6152_v27  ;;  %v4785_v2 = vor.u32 %v5208_v18, %v4782_v35  ;;  %v2370_v49 = vpop.f32.mrf.mxu0 }
 0x33e   :  { %v2371_v19 = vadd.f32 %v2370_v49, %v6146_v5  ;;  %v4828_v49 = vld [vmem:[#allocation11 + $0x90] sm:$0xf] }
 0x33f   :  { %v2566_v52 = vpack.c.bf16 %v2540_v34, %v2538_v1  ;;  %3320 = vmatpush.bf16.msrb.mxu2 %v4785_v2  ;;  %v5224_v1 = vld [vmem:[#allocation11 + $0xb4] sm:$0xf]  ;;  %v4846_v34 = vld [vmem:[#allocation11 + $0xb8] sm:$0xf0] }
 0x340   :  { %v2502_v13 = vpop.f32.mrf.mxu3  ;;  %v4849_v23 = vor.u32 %v5224_v1, %v4846_v34  ;;  %v4830_v34 = vld [vmem:[#allocation11 + $0x98] sm:$0xf0] }
 0x341   :  { %v2503_v31 = vadd.f32 %v2502_v13, %v2454_v36  ;;  %2794 = vmatmul.bf16.gmra.mxu0 %v2566_v52  ;;  %2892 = vmatmul.bf16.gmra.mxu2 %v2566_v52  ;;  %v5209_v36 = vld [vmem:[#allocation11 + $0x34] sm:$0xf0] }
 0x342   :  { %v2407_v42 = vpop.f32.mrf.mxu1  ;;  %3369 = vmatpush.bf16.msrb.mxu3 %v4849_v23  ;;  %v4781_v52 = vor.u32 %v5209_v36, %v4780_v8  ;;  %v4764_v23 = vld [vmem:[#allocation11 + $0x10] sm:$0xf] }
 0x343   :  { %v2541_v22 = vmax.f32 %v2503_v31, 0.0  ;;  %v2408_v46 = vadd.f32 %v2407_v42, %v2359_v7 }
 0x344   :  { %v2461_v44 = vpop.f32.mrf.mxu2  ;;  %3222 = vmatpush.bf16.msra.mxu0 %v4781_v52  ;;  %v5221_v52 = vld [vmem:[#allocation11 + $0x94] sm:$0xf0] }
 0x345   :  { %v2567_v40 = vpack.c.bf16 %v2541_v22, %v2539_v15  ;;  %v2542_v58 = vmax.f32 %v2408_v46, 0.0  ;;  %v2462_v16 = vadd.f32 %v2461_v44, %v6152_v27  ;;  %v4845_v15 = vor.u32 %v5225_v30, %v4844_v57  ;;  %v4774_v46 = vld [vmem:[#allocation11 + $0x28] sm:$0xf0]  ;;  %v2373_v50 = vpop.f32.mrf.mxu0 }
 0x346   :  { %v2374_v2 = vadd.f32 %v2373_v50, %v6146_v5  ;;  %v4829_v30 = vor.u32 %v5221_v52, %v4828_v49  ;;  %v5249_v52 = vld [vmem:[#allocation13 + $0x78] sm:$0xff] }
 0x347   :  { %2843 = vmatmul.bf16.gmra.mxu1 %v2567_v40  ;;  %2941 = vmatmul.bf16.gmra.mxu3 %v2567_v40 }
 0x348   :  { %v2505_v51 = vpop.f32.mrf.mxu3  ;;  %3271 = vmatpush.bf16.msra.mxu1 %v4845_v15 }
 0x349   :  { %v2506_v39 = vadd.f32 %v2505_v51, %v2457_v63 }
 0x34a   :  { %v2409_v29 = vpop.f32.mrf.mxu1 }
 0x34b   :  { %v2410_v32 = vadd.f32 %v2409_v29, %v2361_v33  ;;  %v2543_v12 = vmax.f32 %v2506_v39, 0.0  ;;  %v5206_v33 = vld [vmem:[#allocation11 + $0x24] sm:$0xf] }
 0x34c   :  { %v2463_v54 = vpop.f32.mrf.mxu2 }
 0x34d   :  { %v2544_v59 = vmax.f32 %v2410_v32, 0.0  ;;  %v2464_v13 = vadd.f32 %v2463_v54, %v6152_v27  ;;  %v4777_v32 = vor.u32 %v5206_v33, %v4774_v46  ;;  %v5223_v54 = vld [vmem:[#allocation11 + $0xa4] sm:$0xf0] }
 0x34f   :  { %v2568_v61 = vpack.c.bf16 %v2544_v59, %v2542_v58  ;;  %3321 = vmatpush.bf16.msrb.mxu2 %v4777_v32  ;;  %v5222_v58 = vld [vmem:[#allocation11 + $0xa4] sm:$0xf]  ;;  %v4838_v59 = vld [vmem:[#allocation11 + $0xa8] sm:$0xf0] }
 0x350   :  { %v2507_v25 = vpop.f32.mrf.mxu3  ;;  %v4841_v26 = vor.u32 %v5222_v58, %v4838_v59  ;;  %v4822_v59 = vld [vmem:[#allocation11 + $0x88] sm:$0xf0] }
 0x351   :  { %v2508_v62 = vadd.f32 %v2507_v25, %v2459_v45  ;;  %2799 = vmatmul.bf16.gmra.mxu0 %v2568_v61  ;;  %2897 = vmatmul.bf16.gmra.mxu2 %v2568_v61  ;;  %v5207_v45 = vld [vmem:[#allocation11 + $0x24] sm:$0xf0] }
 0x352   :  { %v2412_v4 = vpop.f32.mrf.mxu1  ;;  %3370 = vmatpush.bf16.msrb.mxu3 %v4841_v26  ;;  %v4773_v61 = vor.u32 %v5207_v45, %v4772_v53 }
 0x353   :  { %v2545_v14 = vmax.f32 %v2508_v62, 0.0  ;;  %v2413_v28 = vadd.f32 %v2412_v4, %v2364_v24 }
 0x354   :  { %v2466_v41 = vpop.f32.mrf.mxu2  ;;  %3223 = vmatpush.bf16.msra.mxu0 %v4773_v61 }
 0x355   :  { %v2569_v6 = vpack.c.bf16 %v2545_v14, %v2543_v12  ;;  %v2546_v17 = vmax.f32 %v2413_v28, 0.0  ;;  %v2467_v11 = vadd.f32 %v2466_v41, %v6152_v27  ;;  %v4837_v12 = vor.u32 %v5223_v54, %v4836_v43  ;;  %v4766_v28 = vld [vmem:[#allocation11 + $0x18] sm:$0xf0]  ;;  %v5220_v41 = vld [vmem:[#allocation11 + $0x94] sm:$0xf] }
 0x356   :  { %v4833_v8 = vor.u32 %v5220_v41, %v4830_v34  ;;  %v4756_v54 = vld [vmem:[#allocation11] sm:$0xf]  ;;  %v5241_v34 = vld [vmem:[#allocation13 + $0x38] sm:$0xff] }
 0x357   :  { %2848 = vmatmul.bf16.gmra.mxu1 %v2569_v6  ;;  %2946 = vmatmul.bf16.gmra.mxu3 %v2569_v6  ;;  %v2375_v6 = vpop.f32.mrf.mxu0 }
 0x358   :  { %v2510_v0 = vpop.f32.mrf.mxu3  ;;  %3272 = vmatpush.bf16.msra.mxu1 %v4837_v12  ;;  %3371 = vmatpush.bf16.msrb.mxu3 %v4833_v8 }
 0x359   :  { %v2511_v31 = vadd.f32 %v2510_v0, %v2462_v16  ;;  %v5205_v16 = vld [vmem:[#allocation11 + $0x14] sm:$0xf0] }
 0x35a   :  { %v2414_v37 = vpop.f32.mrf.mxu1  ;;  %v4765_v36 = vor.u32 %v5205_v16, %v4764_v23 }
 0x35b   :  { %v2415_v3 = vadd.f32 %v2414_v37, %v2366_v60  ;;  %v2547_v7 = vmax.f32 %v2511_v31, 0.0  ;;  %v5204_v60 = vld [vmem:[#allocation11 + $0x14] sm:$0xf] }
 0x35c   :  { %v2468_v56 = vpop.f32.mrf.mxu2  ;;  %v4769_v1 = vor.u32 %v5204_v60, %v4766_v28  ;;  %3224 = vmatpush.bf16.msra.mxu0 %v4765_v36  ;;  %3273 = vmatpush.bf16.msra.mxu1 %v4829_v30 }
 0x35d   :  { %v2548_v9 = vmax.f32 %v2415_v3, 0.0  ;;  %v2469_v25 = vadd.f32 %v2468_v56, %v6152_v27 }
 0x35e   :  { %3322 = vmatpush.bf16.msrb.mxu2 %v4769_v1 }
 0x35f   :  { %v2570_v42 = vpack.c.bf16 %v2548_v9, %v2546_v17  ;;  %v2376_v17 = vadd.f32 %v2375_v6, %v6146_v5  ;;  %v2378_v31 = vpop.f32.mrf.mxu0  ;;  %v4820_v6 = vld [vmem:[#allocation11 + $0x80] sm:$0xf] }
 0x360   :  { %v2512_v22 = vpop.f32.mrf.mxu3  ;;  %v2379_v32 = vadd.f32 %v2378_v31, %v6146_v5 }
 0x361   :  { %v2513_v40 = vadd.f32 %v2512_v22, %v2464_v13  ;;  %2804 = vmatmul.bf16.gmra.mxu0 %v2570_v42  ;;  %2902 = vmatmul.bf16.gmra.mxu2 %v2570_v42 }
 0x362   :  { %v2417_v44 = vpop.f32.mrf.mxu1 }
 0x363   :  { %v2549_v55 = vmax.f32 %v2513_v40, 0.0  ;;  %v2418_v21 = vadd.f32 %v2417_v44, %v2369_v10 }
 0x364   :  { %v2471_v39 = vpop.f32.mrf.mxu2 }
 0x365   :  { %v2571_v51 = vpack.c.bf16 %v2549_v55, %v2547_v7  ;;  %v2550_v47 = vmax.f32 %v2418_v21, 0.0  ;;  %v2472_v42 = vadd.f32 %v2471_v39, %v6152_v27  ;;  %v4758_v21 = vld [vmem:[#allocation11 + $0x8] sm:$0xf0] }
 0x367   :  { %2853 = vmatmul.bf16.gmra.mxu1 %v2571_v51  ;;  %2951 = vmatmul.bf16.gmra.mxu3 %v2571_v51 }
 0x368   :  { %v2515_v29 = vpop.f32.mrf.mxu3 }
 0x369   :  { %v2516_v62 = vadd.f32 %v2515_v29, %v2467_v11  ;;  %v2380_v29 = vpop.f32.mrf.mxu0 }
 0x36a   :  { %v2419_v48 = vpop.f32.mrf.mxu1  ;;  %v2381_v26 = vadd.f32 %v2380_v29, %v6146_v5 }
 0x36b   :  { %v2420_v63 = vadd.f32 %v2419_v48, %v2371_v19  ;;  %v2551_v18 = vmax.f32 %v2516_v62, 0.0  ;;  %v5202_v19 = vld [vmem:[#allocation11 + $0x4] sm:$0xf] }
 0x36c   :  { %v2473_v37 = vpop.f32.mrf.mxu2  ;;  %v5218_v48 = vld [vmem:[#allocation11 + $0x84] sm:$0xf]  ;;  %v4761_v58 = vor.u32 %v5202_v19, %v4758_v21 }
 0x36d   :  { %v2552_v20 = vmax.f32 %v2420_v63, 0.0  ;;  %v2474_v40 = vadd.f32 %v2473_v37, %v6152_v27 }
 0x36e   :  { %3323 = vmatpush.bf16.msrb.mxu2 %v4761_v58  ;;  %v5248_v58 = vld [vmem:[#allocation13 + $0x70] sm:$0xff] }
 0x36f   :  { %v2572_v4 = vpack.c.bf16 %v2552_v20, %v2550_v47  ;;  %v4825_v47 = vor.u32 %v5218_v48, %v4822_v59 }
 0x370   :  { %v2517_v14 = vpop.f32.mrf.mxu3 }
 0x371   :  { %v2518_v38 = vadd.f32 %v2517_v14, %v2469_v25  ;;  %2809 = vmatmul.bf16.gmra.mxu0 %v2572_v4  ;;  %2907 = vmatmul.bf16.gmra.mxu2 %v2572_v4  ;;  %v5203_v25 = vld [vmem:[#allocation11 + $0x4] sm:$0xf0] }
 0x372   :  { %v2422_v24 = vpop.f32.mrf.mxu1  ;;  %3372 = vmatpush.bf16.msrb.mxu3 %v4825_v47  ;;  %v4757_v62 = vor.u32 %v5203_v25, %v4756_v54 }
 0x373   :  { %v2553_v35 = vmax.f32 %v2518_v38, 0.0  ;;  %v2423_v9 = vadd.f32 %v2422_v24, %v2374_v2  ;;  %v5219_v24 = vld [vmem:[#allocation11 + $0x84] sm:$0xf0] }
 0x374   :  { %v2476_v51 = vpop.f32.mrf.mxu2  ;;  %3225 = vmatpush.bf16.msra.mxu0 %v4757_v62 }
 0x375   :  { %v2573_v0 = vpack.c.bf16 %v2553_v35, %v2551_v18  ;;  %v2554_v15 = vmax.f32 %v2423_v9, 0.0  ;;  %v2477_v39 = vadd.f32 %v2476_v51, %v6152_v27  ;;  %v4821_v18 = vor.u32 %v5219_v24, %v4820_v6 }
 0x377   :  { %2858 = vmatmul.bf16.gmra.mxu1 %v2573_v0  ;;  %2956 = vmatmul.bf16.gmra.mxu3 %v2573_v0 }
 0x378   :  { %v2520_v3 = vpop.f32.mrf.mxu3  ;;  %3274 = vmatpush.bf16.msra.mxu1 %v4821_v18  ;;  %3594 = vmatpush.bf16.msrb.mxu0 %v5241_v34 }
 0x379   :  { %v2521_v44 = vadd.f32 %v2520_v3, %v2472_v42 }
 0x37a   :  { %v2424_v57 = vpop.f32.mrf.mxu1 }
 0x37b   :  { %v2425_v13 = vadd.f32 %v2424_v57, %v2376_v17  ;;  %v2555_v33 = vmax.f32 %v2521_v44, 0.0 }
 0x37c   :  { %v2478_v45 = vpop.f32.mrf.mxu2  ;;  %3643 = vmatpush.bf16.msrb.mxu1 %v5249_v52 }
 0x37d   :  { %v2556_v22 = vmax.f32 %v2425_v13, 0.0  ;;  %v2479_v4 = vadd.f32 %v2478_v45, %v6152_v27  ;;  %v2610_v27 = vld [vmem:[%s6299_s6] sm:$0x3] }
 0x37e   :  { %v6191_v37 = vperm.slane %v2610_v27, 0  ;;  %v6194_v17 = vperm.slane %v2610_v27, 1 }
 0x37f   :  { %v2574_v7 = vpack.c.bf16 %v2556_v22, %v2554_v15 }
 0x380   :  { %v2522_v55 = vpop.f32.mrf.mxu3  ;;  %3644 = vmatpush.bf16.msrb.mxu1 %v5248_v58 }
 0x381   :  { %v2523_v56 = vadd.f32 %v2522_v55, %v2474_v40  ;;  %2814 = vmatmul.bf16.gmra.mxu0 %v2574_v7  ;;  %2912 = vmatmul.bf16.gmra.mxu2 %v2574_v7 }
 0x382   :  { %v2427_v10 = vpop.f32.mrf.mxu1 }
 0x383   :  { %v2557_v46 = vmax.f32 %v2523_v56, 0.0  ;;  %v2428_v11 = vadd.f32 %v2427_v10, %v2379_v32 }
 0x385   :  { %v2575_v50 = vpack.c.bf16 %v2557_v46, %v2555_v33  ;;  %v2558_v61 = vmax.f32 %v2428_v11, 0.0 }
 0x387   :  { %2863 = vmatmul.bf16.gmra.mxu1 %v2575_v50  ;;  %2961 = vmatmul.bf16.gmra.mxu3 %v2575_v50  ;;  %v5240_v50 = vld [vmem:[#allocation13 + $0x30] sm:$0xff] }
 0x388   :  { %v2525_v63 = vpop.f32.mrf.mxu3  ;;  %3595 = vmatpush.bf16.msrb.mxu0 %v5240_v50 }
 0x389   :  { %v2526_v12 = vadd.f32 %v2525_v63, %v2477_v39 }
 0x38a   :  { %v2429_v20 = vpop.f32.mrf.mxu1 }
 0x38b   :  { %v2430_v53 = vadd.f32 %v2429_v20, %v2381_v26  ;;  %v2559_v35 = vmax.f32 %v2526_v12, 0.0 }
 0x38d   :  { %v2560_v43 = vmax.f32 %v2430_v53, 0.0 }
 0x38f   :  { %v2576_v14 = vpack.c.bf16 %v2560_v43, %v2558_v61 }
 0x390   :  { %v2527_v38 = vpop.f32.mrf.mxu3 }
 0x391   :  { %v2528_v5 = vadd.f32 %v2527_v38, %v2479_v4  ;;  %2819 = vmatmul.bf16.gmra.mxu0 %v2576_v14  ;;  %2917 = vmatmul.bf16.gmra.mxu2 %v2576_v14  ;;  %v5239_v38 = vld [vmem:[#allocation13 + $0x28] sm:$0xff] }
 0x392   :  { %3596 = vmatpush.bf16.msrb.mxu0 %v5239_v38 }
 0x393   :  { %v2561_v0 = vmax.f32 %v2528_v5, 0.0 }
 0x395   :  { %v2577_v2 = vpack.c.bf16 %v2561_v0, %v2559_v35 }
 0x397   :  { %2868 = vmatmul.bf16.gmra.mxu1 %v2577_v2  ;;  %2966 = vmatmul.bf16.gmra.mxu3 %v2577_v2  ;;  %v5247_v2 = vld [vmem:[#allocation13 + $0x68] sm:$0xff] }
 0x398   :  { %3645 = vmatpush.bf16.msrb.mxu1 %v5247_v2 }
 0x39e   :  { %v2785_v60 = vpop.f32.mrf.mxu0 }
 0x39f   :  { %v2786_v1 = vadd.f32 %v2785_v60, %v6191_v37 }
 0x3a4   :  { %v2834_v28 = vpop.f32.mrf.mxu1  ;;  %v2883_v41 = vpop.f32.mrf.mxu2 }
 0x3a5   :  { %v2835_v16 = vadd.f32 %v2834_v28, %v2786_v1  ;;  %v2884_v13 = vadd.f32 %v2883_v41, %v6194_v17 }
 0x3a6   :  { %v2787_v3 = vpop.f32.mrf.mxu0 }
 0x3a7   :  { %v2788_v9 = vadd.f32 %v2787_v3, %v6191_v37  ;;  %v2972_v30 = vmax.f32 %v2835_v16, 0.0 }
 0x3aa   :  { %v2932_v23 = vpop.f32.mrf.mxu3 }
 0x3ab   :  { %v2933_v42 = vadd.f32 %v2932_v23, %v2884_v13  ;;  %v5238_v13 = vld [vmem:[#allocation13 + $0x20] sm:$0xff] }
 0x3ac   :  { %v2836_v8 = vpop.f32.mrf.mxu1  ;;  %v2885_v36 = vpop.f32.mrf.mxu2  ;;  %3597 = vmatpush.bf16.msrb.mxu0 %v5238_v13 }
 0x3ad   :  { %v2837_v49 = vadd.f32 %v2836_v8, %v2788_v9  ;;  %v2886_v22 = vadd.f32 %v2885_v36, %v6194_v17  ;;  %v2973_v56 = vmax.f32 %v2933_v42, 0.0 }
 0x3ae   :  { %v2790_v57 = vpop.f32.mrf.mxu0 }
 0x3af   :  { %v2974_v31 = vmax.f32 %v2837_v49, 0.0  ;;  %v2791_v46 = vadd.f32 %v2790_v57, %v6191_v37 }
 0x3b1   :  { %v3004_v15 = vpack.c.bf16 %v2974_v31, %v2972_v30 }
 0x3b2   :  { %v2934_v40 = vpop.f32.mrf.mxu3 }
 0x3b3   :  { %v2935_v44 = vadd.f32 %v2934_v40, %v2886_v22  ;;  %3226 = vmatmul.bf16.vlgmr.msra.gmra.mxu0 %v3004_v15  ;;  %3324 = vmatmul.bf16.vlgmr.msrb.gmra.mxu2 %v3004_v15 }
 0x3b4   :  { %v2839_v7 = vpop.f32.mrf.mxu1  ;;  %v2888_v55 = vpop.f32.mrf.mxu2 }
 0x3b5   :  { %v2975_v51 = vmax.f32 %v2935_v44, 0.0  ;;  %v2840_v32 = vadd.f32 %v2839_v7, %v2791_v46  ;;  %v2889_v11 = vadd.f32 %v2888_v55, %v6194_v17  ;;  %v5246_v7 = vld [vmem:[#allocation13 + $0x60] sm:$0xff] }
 0x3b6   :  { %v2792_v10 = vpop.f32.mrf.mxu0  ;;  %3646 = vmatpush.bf16.msrb.mxu1 %v5246_v7 }
 0x3b7   :  { %v3005_v33 = vpack.c.bf16 %v2975_v51, %v2973_v56  ;;  %v2793_v19 = vadd.f32 %v2792_v10, %v6191_v37  ;;  %v2976_v26 = vmax.f32 %v2840_v32, 0.0 }
 0x3b9   :  { %3275 = vmatmul.bf16.vlgmr.msra.gmra.mxu1 %v3005_v33  ;;  %3373 = vmatmul.bf16.vlgmr.msrb.gmra.mxu3 %v3005_v33 }
 0x3ba   :  { %v2937_v29 = vpop.f32.mrf.mxu3 }
 0x3bb   :  { %v2938_v20 = vadd.f32 %v2937_v29, %v2889_v11  ;;  %v5237_v11 = vld [vmem:[#allocation13 + $0x18] sm:$0xff] }
 0x3bc   :  { %v2841_v21 = vpop.f32.mrf.mxu1  ;;  %v2890_v48 = vpop.f32.mrf.mxu2  ;;  %3598 = vmatpush.bf16.msrb.mxu0 %v5237_v11 }
 0x3bd   :  { %v2842_v63 = vadd.f32 %v2841_v21, %v2793_v19  ;;  %v2891_v53 = vadd.f32 %v2890_v48, %v6194_v17  ;;  %v2977_v25 = vmax.f32 %v2938_v20, 0.0 }
 0x3be   :  { %v2795_v59 = vpop.f32.mrf.mxu0 }
 0x3bf   :  { %v2978_v47 = vmax.f32 %v2842_v63, 0.0  ;;  %v2796_v14 = vadd.f32 %v2795_v59, %v6191_v37 }
 0x3c1   :  { %v3006_v45 = vpack.c.bf16 %v2978_v47, %v2976_v26 }
 0x3c2   :  { %v2939_v39 = vpop.f32.mrf.mxu3 }
 0x3c3   :  { %v2940_v61 = vadd.f32 %v2939_v39, %v2891_v53  ;;  %3231 = vmatmul.bf16.gmra.mxu0 %v3006_v45  ;;  %3329 = vmatmul.bf16.gmra.mxu2 %v3006_v45 }
 0x3c4   :  { %v2844_v43 = vpop.f32.mrf.mxu1  ;;  %v2893_v54 = vpop.f32.mrf.mxu2 }
 0x3c5   :  { %v2979_v62 = vmax.f32 %v2940_v61, 0.0  ;;  %v2845_v6 = vadd.f32 %v2844_v43, %v2796_v14  ;;  %v2894_v28 = vadd.f32 %v2893_v54, %v6194_v17  ;;  %v5245_v43 = vld [vmem:[#allocation13 + $0x58] sm:$0xff] }
 0x3c6   :  { %v2797_v4 = vpop.f32.mrf.mxu0  ;;  %3647 = vmatpush.bf16.msrb.mxu1 %v5245_v43 }
 0x3c7   :  { %v3007_v12 = vpack.c.bf16 %v2979_v62, %v2977_v25  ;;  %v2798_v24 = vadd.f32 %v2797_v4, %v6191_v37  ;;  %v2980_v27 = vmax.f32 %v2845_v6, 0.0 }
 0x3c9   :  { %3280 = vmatmul.bf16.gmra.mxu1 %v3007_v12  ;;  %3378 = vmatmul.bf16.gmra.mxu3 %v3007_v12 }
 0x3ca   :  { %v2942_v5 = vpop.f32.mrf.mxu3 }
 0x3cb   :  { %v2943_v3 = vadd.f32 %v2942_v5, %v2894_v28  ;;  %v5236_v28 = vld [vmem:[#allocation13 + $0x10] sm:$0xff] }
 0x3cc   :  { %v2846_v18 = vpop.f32.mrf.mxu1  ;;  %v2895_v35 = vpop.f32.mrf.mxu2  ;;  %3599 = vmatpush.bf16.msrb.mxu0 %v5236_v28 }
 0x3cd   :  { %v2847_v0 = vadd.f32 %v2846_v18, %v2798_v24  ;;  %v2896_v1 = vadd.f32 %v2895_v35, %v6194_v17  ;;  %v2981_v36 = vmax.f32 %v2943_v3, 0.0 }
 0x3ce   :  { %v2800_v60 = vpop.f32.mrf.mxu0 }
 0x3cf   :  { %v2982_v41 = vmax.f32 %v2847_v0, 0.0  ;;  %v2801_v30 = vadd.f32 %v2800_v60, %v6191_v37 }
 0x3d1   :  { %v3008_v34 = vpack.c.bf16 %v2982_v41, %v2980_v27 }
 0x3d2   :  { %v2944_v23 = vpop.f32.mrf.mxu3 }
 0x3d3   :  { %v2945_v16 = vadd.f32 %v2944_v23, %v2896_v1  ;;  %3236 = vmatmul.bf16.gmra.mxu0 %v3008_v34  ;;  %3334 = vmatmul.bf16.gmra.mxu2 %v3008_v34 }
 0x3d4   :  { %v2849_v9 = vpop.f32.mrf.mxu1  ;;  %v2898_v8 = vpop.f32.mrf.mxu2 }
 0x3d5   :  { %v2983_v49 = vmax.f32 %v2945_v16, 0.0  ;;  %v2850_v42 = vadd.f32 %v2849_v9, %v2801_v30  ;;  %v2899_v51 = vadd.f32 %v2898_v8, %v6194_v17  ;;  %v5244_v9 = vld [vmem:[#allocation13 + $0x50] sm:$0xff] }
 0x3d6   :  { %v2802_v52 = vpop.f32.mrf.mxu0  ;;  %3648 = vmatpush.bf16.msrb.mxu1 %v5244_v9 }
 0x3d7   :  { %v3009_v57 = vpack.c.bf16 %v2983_v49, %v2981_v36  ;;  %v2803_v15 = vadd.f32 %v2802_v52, %v6191_v37  ;;  %v2984_v56 = vmax.f32 %v2850_v42, 0.0 }
 0x3d9   :  { %3285 = vmatmul.bf16.gmra.mxu1 %v3009_v57  ;;  %3383 = vmatmul.bf16.gmra.mxu3 %v3009_v57 }
 0x3da   :  { %v2947_v31 = vpop.f32.mrf.mxu3 }
 0x3db   :  { %v2948_v33 = vadd.f32 %v2947_v31, %v2899_v51  ;;  %v5235_v51 = vld [vmem:[#allocation13 + $0x8] sm:$0xff] }
 0x3dc   :  { %v2851_v22 = vpop.f32.mrf.mxu1  ;;  %v2900_v40 = vpop.f32.mrf.mxu2  ;;  %3600 = vmatpush.bf16.msrb.mxu0 %v5235_v51 }
 0x3dd   :  { %v2852_v44 = vadd.f32 %v2851_v22, %v2803_v15  ;;  %v2901_v46 = vadd.f32 %v2900_v40, %v6194_v17  ;;  %v2985_v48 = vmax.f32 %v2948_v33, 0.0 }
 0x3de   :  { %v2805_v55 = vpop.f32.mrf.mxu0 }
 0x3df   :  { %v2986_v10 = vmax.f32 %v2852_v44, 0.0  ;;  %v2806_v26 = vadd.f32 %v2805_v55, %v6191_v37 }
 0x3e1   :  { %v3010_v50 = vpack.c.bf16 %v2986_v10, %v2984_v56  ;;  %v5243_v10 = vld [vmem:[#allocation13 + $0x48] sm:$0xff] }
 0x3e2   :  { %v2949_v29 = vpop.f32.mrf.mxu3  ;;  %3649 = vmatpush.bf16.msrb.mxu1 %v5243_v10 }
 0x3e3   :  { %v2950_v32 = vadd.f32 %v2949_v29, %v2901_v46  ;;  %3241 = vmatmul.bf16.gmra.mxu0 %v3010_v50  ;;  %3339 = vmatmul.bf16.gmra.mxu2 %v3010_v50 }
 0x3e4   :  { %v2854_v19 = vpop.f32.mrf.mxu1  ;;  %v2903_v21 = vpop.f32.mrf.mxu2 }
 0x3e5   :  { %v2987_v63 = vmax.f32 %v2950_v32, 0.0  ;;  %v2855_v20 = vadd.f32 %v2854_v19, %v2806_v26  ;;  %v2904_v62 = vadd.f32 %v2903_v21, %v6194_v17 }
 0x3e6   :  { %v2807_v58 = vpop.f32.mrf.mxu0 }
 0x3e7   :  { %v3011_v59 = vpack.c.bf16 %v2987_v63, %v2985_v48  ;;  %v2808_v53 = vadd.f32 %v2807_v58, %v6191_v37  ;;  %v2988_v25 = vmax.f32 %v2855_v20, 0.0 }
 0x3e9   :  { %3290 = vmatmul.bf16.gmra.mxu1 %v3011_v59  ;;  %3388 = vmatmul.bf16.gmra.mxu3 %v3011_v59 }
 0x3ea   :  { %v2952_v47 = vpop.f32.mrf.mxu3 }
 0x3eb   :  { %v2953_v12 = vadd.f32 %v2952_v47, %v2904_v62  ;;  %v5234_v62 = vld [vmem:[#allocation13] sm:$0xff] }
 0x3ec   :  { %v2856_v45 = vpop.f32.mrf.mxu1  ;;  %v2905_v39 = vpop.f32.mrf.mxu2  ;;  %3601 = vmatpush.bf16.msrb.mxu0 %v5234_v62 }
 0x3ed   :  { %v2857_v61 = vadd.f32 %v2856_v45, %v2808_v53  ;;  %v2906_v14 = vadd.f32 %v2905_v39, %v6194_v17  ;;  %v2989_v35 = vmax.f32 %v2953_v12, 0.0 }
 0x3ee   :  { %v2810_v54 = vpop.f32.mrf.mxu0 }
 0x3ef   :  { %v2990_v4 = vmax.f32 %v2857_v61, 0.0  ;;  %v2811_v27 = vadd.f32 %v2810_v54, %v6191_v37 }
 0x3f1   :  { %v3012_v38 = vpack.c.bf16 %v2990_v4, %v2988_v25  ;;  %v5242_v4 = vld [vmem:[#allocation13 + $0x40] sm:$0xff] }
 0x3f2   :  { %v2954_v5 = vpop.f32.mrf.mxu3  ;;  %3650 = vmatpush.bf16.msrb.mxu1 %v5242_v4 }
 0x3f3   :  { %v2955_v6 = vadd.f32 %v2954_v5, %v2906_v14  ;;  %3246 = vmatmul.bf16.gmra.mxu0 %v3012_v38  ;;  %3344 = vmatmul.bf16.gmra.mxu2 %v3012_v38 }
 0x3f4   :  { %v2859_v24 = vpop.f32.mrf.mxu1  ;;  %v2908_v18 = vpop.f32.mrf.mxu2 }
 0x3f5   :  { %v2991_v0 = vmax.f32 %v2955_v6, 0.0  ;;  %v2860_v3 = vadd.f32 %v2859_v24, %v2811_v27  ;;  %v2909_v49 = vadd.f32 %v2908_v18, %v6194_v17 }
 0x3f6   :  { %v2812_v2 = vpop.f32.mrf.mxu0 }
 0x3f7   :  { %v3013_v60 = vpack.c.bf16 %v2991_v0, %v2989_v35  ;;  %v2813_v1 = vadd.f32 %v2812_v2, %v6191_v37  ;;  %v2992_v36 = vmax.f32 %v2860_v3, 0.0 }
 0x3f9   :  { %3295 = vmatmul.bf16.gmra.mxu1 %v3013_v60  ;;  %3393 = vmatmul.bf16.gmra.mxu3 %v3013_v60 }
 0x3fa   :  { %v2957_v41 = vpop.f32.mrf.mxu3 }
 0x3fb   :  { %v2958_v57 = vadd.f32 %v2957_v41, %v2909_v49 }
 0x3fc   :  { %v2861_v34 = vpop.f32.mrf.mxu1  ;;  %v2910_v23 = vpop.f32.mrf.mxu2 }
 0x3fd   :  { %v2862_v16 = vadd.f32 %v2861_v34, %v2813_v1  ;;  %v2911_v30 = vadd.f32 %v2910_v23, %v6194_v17  ;;  %v2993_v40 = vmax.f32 %v2958_v57, 0.0  ;;  %v3052_v23 = vld [vmem:[%s6301_s8] sm:$0x3] }
 0x3fe   :  { %v2815_v8 = vpop.f32.mrf.mxu0  ;;  %v6233_v57 = vperm.slane %v3052_v23, 1 }
 0x3ff   :  { %v2994_v52 = vmax.f32 %v2862_v16, 0.0  ;;  %v2816_v56 = vadd.f32 %v2815_v8, %v6191_v37  ;;  %v6230_v8 = vperm.slane %v3052_v23, 0 }
 0x401   :  { %v3014_v13 = vpack.c.bf16 %v2994_v52, %v2992_v36 }
 0x402   :  { %v2959_v31 = vpop.f32.mrf.mxu3 }
 0x403   :  { %v2960_v42 = vadd.f32 %v2959_v31, %v2911_v30  ;;  %3251 = vmatmul.bf16.gmra.mxu0 %v3014_v13  ;;  %3349 = vmatmul.bf16.gmra.mxu2 %v3014_v13 }
 0x404   :  { %v2864_v15 = vpop.f32.mrf.mxu1  ;;  %v2913_v22 = vpop.f32.mrf.mxu2 }
 0x405   :  { %v2995_v44 = vmax.f32 %v2960_v42, 0.0  ;;  %v2865_v46 = vadd.f32 %v2864_v15, %v2816_v56  ;;  %v2914_v63 = vadd.f32 %v2913_v22, %v6194_v17 }
 0x406   :  { %v2817_v7 = vpop.f32.mrf.mxu0 }
 0x407   :  { %v3015_v55 = vpack.c.bf16 %v2995_v44, %v2993_v40  ;;  %v2818_v50 = vadd.f32 %v2817_v7, %v6191_v37  ;;  %v2996_v48 = vmax.f32 %v2865_v46, 0.0 }
 0x409   :  { %3300 = vmatmul.bf16.gmra.mxu1 %v3015_v55  ;;  %3398 = vmatmul.bf16.gmra.mxu3 %v3015_v55 }
 0x40a   :  { %v2962_v33 = vpop.f32.mrf.mxu3 }
 0x40b   :  { %v2963_v59 = vadd.f32 %v2962_v33, %v2914_v63 }
 0x40c   :  { %v2866_v29 = vpop.f32.mrf.mxu1  ;;  %v2915_v32 = vpop.f32.mrf.mxu2 }
 0x40d   :  { %v2867_v19 = vadd.f32 %v2866_v29, %v2818_v50  ;;  %v2916_v26 = vadd.f32 %v2915_v32, %v6194_v17  ;;  %v2997_v39 = vmax.f32 %v2963_v59, 0.0 }
 0x40e   :  { %v2820_v21 = vpop.f32.mrf.mxu0 }
 0x40f   :  { %v2998_v58 = vmax.f32 %v2867_v19, 0.0  ;;  %v2821_v25 = vadd.f32 %v2820_v21, %v6191_v37 }
 0x411   :  { %v3016_v11 = vpack.c.bf16 %v2998_v58, %v2996_v48 }
 0x412   :  { %v2964_v47 = vpop.f32.mrf.mxu3 }
 0x413   :  { %v2965_v20 = vadd.f32 %v2964_v47, %v2916_v26  ;;  %3256 = vmatmul.bf16.gmra.mxu0 %v3016_v11  ;;  %3354 = vmatmul.bf16.gmra.mxu2 %v3016_v11 }
 0x414   :  { %v2869_v53 = vpop.f32.mrf.mxu1  ;;  %v2918_v45 = vpop.f32.mrf.mxu2 }
 0x415   :  { %v2999_v61 = vmax.f32 %v2965_v20, 0.0  ;;  %v2870_v14 = vadd.f32 %v2869_v53, %v2821_v25  ;;  %v2919_v35 = vadd.f32 %v2918_v45, %v6194_v17 }
 0x416   :  { %v2822_v54 = vpop.f32.mrf.mxu0 }
 0x417   :  { %v3017_v43 = vpack.c.bf16 %v2999_v61, %v2997_v39  ;;  %v2823_v38 = vadd.f32 %v2822_v54, %v6191_v37  ;;  %v3000_v18 = vmax.f32 %v2870_v14, 0.0 }
 0x419   :  { %3305 = vmatmul.bf16.gmra.mxu1 %v3017_v43  ;;  %3403 = vmatmul.bf16.gmra.mxu3 %v3017_v43 }
 0x41a   :  { %v2967_v12 = vpop.f32.mrf.mxu3 }
 0x41b   :  { %v2968_v2 = vadd.f32 %v2967_v12, %v2919_v35 }
 0x41c   :  { %v2871_v5 = vpop.f32.mrf.mxu1  ;;  %v2920_v24 = vpop.f32.mrf.mxu2 }
 0x41d   :  { %v2872_v6 = vadd.f32 %v2871_v5, %v2823_v38  ;;  %v2921_v60 = vadd.f32 %v2920_v24, %v6194_v17  ;;  %v3001_v3 = vmax.f32 %v2968_v2, 0.0 }
 0x41f   :  { %v3002_v0 = vmax.f32 %v2872_v6, 0.0 }
 0x421   :  { %v3018_v27 = vpack.c.bf16 %v3002_v0, %v3000_v18 }
 0x422   :  { %v2969_v28 = vpop.f32.mrf.mxu3 }
 0x423   :  { %v2970_v41 = vadd.f32 %v2969_v28, %v2921_v60  ;;  %3261 = vmatmul.bf16.gmra.mxu0 %v3018_v27  ;;  %3359 = vmatmul.bf16.gmra.mxu2 %v3018_v27 }
 0x425   :  { %v3003_v1 = vmax.f32 %v2970_v41, 0.0 }
 0x427   :  { %v3019_v37 = vpack.c.bf16 %v3003_v1, %v3001_v3 }
 0x429   :  { %3310 = vmatmul.bf16.gmra.mxu1 %v3019_v37  ;;  %3408 = vmatmul.bf16.gmra.mxu3 %v3019_v37 }
 0x430   :  { %v3227_v34 = vpop.f32.mrf.mxu0 }
 0x431   :  { %v3228_v36 = vadd.f32 %v3227_v34, %v6230_v8 }
 0x436   :  { %v3276_v16 = vpop.f32.mrf.mxu1  ;;  %v3325_v9 = vpop.f32.mrf.mxu2 }
 0x437   :  { %v3277_v52 = vadd.f32 %v3276_v16, %v3228_v36  ;;  %v3326_v40 = vadd.f32 %v3325_v9, %v6233_v57 }
 0x438   :  { %v3229_v17 = vpop.f32.mrf.mxu0 }
 0x439   :  { %v3230_v30 = vadd.f32 %v3229_v17, %v6230_v8  ;;  %v3414_v22 = vmax.f32 %v3277_v52, 0.0 }
 0x43c   :  { %v3374_v49 = vpop.f32.mrf.mxu3 }
 0x43d   :  { %v3375_v7 = vadd.f32 %v3374_v49, %v3326_v40 }
 0x43e   :  { %v3278_v13 = vpop.f32.mrf.mxu1  ;;  %v3327_v31 = vpop.f32.mrf.mxu2 }
 0x43f   :  { %v3279_v42 = vadd.f32 %v3278_v13, %v3230_v30  ;;  %v3328_v56 = vadd.f32 %v3327_v31, %v6233_v57  ;;  %v3415_v50 = vmax.f32 %v3375_v7, 0.0 }
 0x440   :  { %v3232_v15 = vpop.f32.mrf.mxu0 }
 0x441   :  { %v3416_v44 = vmax.f32 %v3279_v42, 0.0  ;;  %v3233_v21 = vadd.f32 %v3232_v15, %v6230_v8 }
 0x443   :  { %v3446_v55 = vpack.c.bf16 %v3416_v44, %v3414_v22 }
 0x444   :  { %v3376_v51 = vpop.f32.mrf.mxu3 }
 0x445   :  { %v3377_v10 = vadd.f32 %v3376_v51, %v3328_v56  ;;  %3602 = vmatmul.bf16.vlgmr.msrb.gmra.mxu0 %v3446_v55 }
 0x446   :  { %v3281_v33 = vpop.f32.mrf.mxu1  ;;  %v3330_v46 = vpop.f32.mrf.mxu2 }
 0x447   :  { %v3417_v29 = vmax.f32 %v3377_v10, 0.0  ;;  %v3282_v63 = vadd.f32 %v3281_v33, %v3233_v21  ;;  %v3331_v53 = vadd.f32 %v3330_v46, %v6233_v57 }
 0x448   :  { %v3234_v32 = vpop.f32.mrf.mxu0 }
 0x449   :  { %v3447_v19 = vpack.c.bf16 %v3417_v29, %v3415_v50  ;;  %v3235_v58 = vadd.f32 %v3234_v32, %v6230_v8  ;;  %v3418_v20 = vmax.f32 %v3282_v63, 0.0 }
 0x44b   :  { %3651 = vmatmul.bf16.vlgmr.msrb.gmra.mxu1 %v3447_v19 }
 0x44c   :  { %v3379_v48 = vpop.f32.mrf.mxu3 }
 0x44d   :  { %v3380_v39 = vadd.f32 %v3379_v48, %v3331_v53 }
 0x44e   :  { %v3283_v59 = vpop.f32.mrf.mxu1  ;;  %v3332_v26 = vpop.f32.mrf.mxu2 }
 0x44f   :  { %v3284_v11 = vadd.f32 %v3283_v59, %v3235_v58  ;;  %v3333_v61 = vadd.f32 %v3332_v26, %v6233_v57  ;;  %v3419_v12 = vmax.f32 %v3380_v39, 0.0 }
 0x450   :  { %v3237_v47 = vpop.f32.mrf.mxu0 }
 0x451   :  { %v3420_v45 = vmax.f32 %v3284_v11, 0.0  ;;  %v3238_v6 = vadd.f32 %v3237_v47, %v6230_v8 }
 0x453   :  { %v3448_v43 = vpack.c.bf16 %v3420_v45, %v3418_v20 }
 0x454   :  { %v3381_v54 = vpop.f32.mrf.mxu3 }
 0x455   :  { %v3382_v25 = vadd.f32 %v3381_v54, %v3333_v61  ;;  %3607 = vmatmul.bf16.gmra.mxu0 %v3448_v43 }
 0x456   :  { %v3286_v62 = vpop.f32.mrf.mxu1  ;;  %v3335_v4 = vpop.f32.mrf.mxu2 }
 0x457   :  { %v3421_v14 = vmax.f32 %v3382_v25, 0.0  ;;  %v3287_v18 = vadd.f32 %v3286_v62, %v3238_v6  ;;  %v3336_v41 = vadd.f32 %v3335_v4, %v6233_v57 }
 0x458   :  { %v3239_v38 = vpop.f32.mrf.mxu0 }
 0x459   :  { %v3449_v5 = vpack.c.bf16 %v3421_v14, %v3419_v12  ;;  %v3240_v35 = vadd.f32 %v3239_v38, %v6230_v8  ;;  %v3422_v28 = vmax.f32 %v3287_v18, 0.0 }
 0x45b   :  { %3656 = vmatmul.bf16.gmra.mxu1 %v3449_v5 }
 0x45c   :  { %v3384_v24 = vpop.f32.mrf.mxu3 }
 0x45d   :  { %v3385_v1 = vadd.f32 %v3384_v24, %v3336_v41 }
 0x45e   :  { %v3288_v0 = vpop.f32.mrf.mxu1  ;;  %v3337_v2 = vpop.f32.mrf.mxu2 }
 0x45f   :  { %v3289_v60 = vadd.f32 %v3288_v0, %v3240_v35  ;;  %v3338_v37 = vadd.f32 %v3337_v2, %v6233_v57  ;;  %v3423_v36 = vmax.f32 %v3385_v1, 0.0 }
 0x460   :  { %v3242_v27 = vpop.f32.mrf.mxu0 }
 0x461   :  { %v3424_v3 = vmax.f32 %v3289_v60, 0.0  ;;  %v3243_v13 = vadd.f32 %v3242_v27, %v6230_v8 }
 0x463   :  { %v3450_v34 = vpack.c.bf16 %v3424_v3, %v3422_v28 }
 0x464   :  { %v3386_v23 = vpop.f32.mrf.mxu3 }
 0x465   :  { %v3387_v16 = vadd.f32 %v3386_v23, %v3338_v37  ;;  %3612 = vmatmul.bf16.gmra.mxu0 %v3450_v34 }
 0x466   :  { %v3291_v9 = vpop.f32.mrf.mxu1  ;;  %v3340_v17 = vpop.f32.mrf.mxu2 }
 0x467   :  { %v3425_v49 = vmax.f32 %v3387_v16, 0.0  ;;  %v3292_v42 = vadd.f32 %v3291_v9, %v3243_v13  ;;  %v3341_v56 = vadd.f32 %v3340_v17, %v6233_v57 }
 0x468   :  { %v3244_v52 = vpop.f32.mrf.mxu0 }
 0x469   :  { %v3451_v30 = vpack.c.bf16 %v3425_v49, %v3423_v36  ;;  %v3245_v15 = vadd.f32 %v3244_v52, %v6230_v8  ;;  %v3426_v55 = vmax.f32 %v3292_v42, 0.0 }
 0x46b   :  { %3661 = vmatmul.bf16.gmra.mxu1 %v3451_v30 }
 0x46c   :  { %v3389_v31 = vpop.f32.mrf.mxu3 }
 0x46d   :  { %v3390_v10 = vadd.f32 %v3389_v31, %v3341_v56 }
 0x46e   :  { %v3293_v22 = vpop.f32.mrf.mxu1  ;;  %v3342_v40 = vpop.f32.mrf.mxu2 }
 0x46f   :  { %v3294_v44 = vadd.f32 %v3293_v22, %v3245_v15  ;;  %v3343_v33 = vadd.f32 %v3342_v40, %v6233_v57  ;;  %v3427_v21 = vmax.f32 %v3390_v10, 0.0 }
 0x470   :  { %v3247_v7 = vpop.f32.mrf.mxu0 }
 0x471   :  { %v3428_v51 = vmax.f32 %v3294_v44, 0.0  ;;  %v3248_v59 = vadd.f32 %v3247_v7, %v6230_v8 }
 0x473   :  { %v3452_v46 = vpack.c.bf16 %v3428_v51, %v3426_v55 }
 0x474   :  { %v3391_v50 = vpop.f32.mrf.mxu3 }
 0x475   :  { %v3392_v29 = vadd.f32 %v3391_v50, %v3343_v33  ;;  %3617 = vmatmul.bf16.gmra.mxu0 %v3452_v46 }
 0x476   :  { %v3296_v32 = vpop.f32.mrf.mxu1  ;;  %v3345_v19 = vpop.f32.mrf.mxu2 }
 0x477   :  { %v3429_v48 = vmax.f32 %v3392_v29, 0.0  ;;  %v3297_v11 = vadd.f32 %v3296_v32, %v3248_v59  ;;  %v3346_v43 = vadd.f32 %v3345_v19, %v6233_v57 }
 0x478   :  { %v3249_v63 = vpop.f32.mrf.mxu0 }
 0x479   :  { %v3453_v58 = vpack.c.bf16 %v3429_v48, %v3427_v21  ;;  %v3250_v47 = vadd.f32 %v3249_v63, %v6230_v8  ;;  %v3430_v61 = vmax.f32 %v3297_v11, 0.0 }
 0x47b   :  { %3666 = vmatmul.bf16.gmra.mxu1 %v3453_v58 }
 0x47c   :  { %v3394_v26 = vpop.f32.mrf.mxu3 }
 0x47d   :  { %v3395_v25 = vadd.f32 %v3394_v26, %v3346_v43 }
 0x47e   :  { %v3298_v20 = vpop.f32.mrf.mxu1  ;;  %v3347_v53 = vpop.f32.mrf.mxu2 }
 0x47f   :  { %v3299_v45 = vadd.f32 %v3298_v20, %v3250_v47  ;;  %v3348_v4 = vadd.f32 %v3347_v53, %v6233_v57  ;;  %v3431_v6 = vmax.f32 %v3395_v25, 0.0 }
 0x480   :  { %v3252_v39 = vpop.f32.mrf.mxu0 }
 0x481   :  { %v3432_v54 = vmax.f32 %v3299_v45, 0.0  ;;  %v3253_v0 = vadd.f32 %v3252_v39, %v6230_v8 }
 0x483   :  { %v3454_v62 = vpack.c.bf16 %v3432_v54, %v3430_v61 }
 0x484   :  { %v3396_v12 = vpop.f32.mrf.mxu3 }
 0x485   :  { %v3397_v14 = vadd.f32 %v3396_v12, %v3348_v4  ;;  %3622 = vmatmul.bf16.gmra.mxu0 %v3454_v62 }
 0x486   :  { %v3301_v38 = vpop.f32.mrf.mxu1  ;;  %v3350_v5 = vpop.f32.mrf.mxu2 }
 0x487   :  { %v3433_v24 = vmax.f32 %v3397_v14, 0.0  ;;  %v3302_v60 = vadd.f32 %v3301_v38, %v3253_v0  ;;  %v3351_v34 = vadd.f32 %v3350_v5, %v6233_v57 }
 0x488   :  { %v3254_v18 = vpop.f32.mrf.mxu0 }
 0x489   :  { %v3455_v35 = vpack.c.bf16 %v3433_v24, %v3431_v6  ;;  %v3255_v27 = vadd.f32 %v3254_v18, %v6230_v8  ;;  %v3434_v37 = vmax.f32 %v3302_v60, 0.0 }
 0x48b   :  { %3671 = vmatmul.bf16.gmra.mxu1 %v3455_v35 }
 0x48c   :  { %v3399_v2 = vpop.f32.mrf.mxu3 }
 0x48d   :  { %v3400_v16 = vadd.f32 %v3399_v2, %v3351_v34 }
 0x48e   :  { %v3303_v28 = vpop.f32.mrf.mxu1  ;;  %v3352_v41 = vpop.f32.mrf.mxu2 }
 0x48f   :  { %v3304_v3 = vadd.f32 %v3303_v28, %v3255_v27  ;;  %v3353_v17 = vadd.f32 %v3352_v41, %v6233_v57  ;;  %v3435_v13 = vmax.f32 %v3400_v16, 0.0 }
 0x490   :  { %v3257_v1 = vpop.f32.mrf.mxu0 }
 0x491   :  { %v3436_v23 = vmax.f32 %v3304_v3, 0.0  ;;  %v3258_v22 = vadd.f32 %v3257_v1, %v6230_v8 }
 0x493   :  { %v3456_v9 = vpack.c.bf16 %v3436_v23, %v3434_v37 }
 0x494   :  { %v3401_v36 = vpop.f32.mrf.mxu3 }
 0x495   :  { %v3402_v49 = vadd.f32 %v3401_v36, %v3353_v17  ;;  %3627 = vmatmul.bf16.gmra.mxu0 %v3456_v9 }
 0x496   :  { %v3306_v52 = vpop.f32.mrf.mxu1  ;;  %v3355_v30 = vpop.f32.mrf.mxu2 }
 0x497   :  { %v3437_v31 = vmax.f32 %v3402_v49, 0.0  ;;  %v3307_v44 = vadd.f32 %v3306_v52, %v3258_v22  ;;  %v3356_v46 = vadd.f32 %v3355_v30, %v6233_v57 }
 0x498   :  { %v3259_v42 = vpop.f32.mrf.mxu0 }
 0x499   :  { %v3457_v15 = vpack.c.bf16 %v3437_v31, %v3435_v13  ;;  %v3260_v7 = vadd.f32 %v3259_v42, %v6230_v8  ;;  %v3438_v33 = vmax.f32 %v3307_v44, 0.0 }
 0x49b   :  { %3676 = vmatmul.bf16.gmra.mxu1 %v3457_v15 }
 0x49c   :  { %v3404_v40 = vpop.f32.mrf.mxu3 }
 0x49d   :  { %v3405_v29 = vadd.f32 %v3404_v40, %v3356_v46 }
 0x49e   :  { %v3308_v55 = vpop.f32.mrf.mxu1  ;;  %v3357_v56 = vpop.f32.mrf.mxu2 }
 0x49f   :  { %v3309_v51 = vadd.f32 %v3308_v55, %v3260_v7  ;;  %v3358_v19 = vadd.f32 %v3357_v56, %v6233_v57  ;;  %v3439_v59 = vmax.f32 %v3405_v29, 0.0 }
 0x4a0   :  { %v3262_v10 = vpop.f32.mrf.mxu0 }
 0x4a1   :  { %v3440_v50 = vmax.f32 %v3309_v51, 0.0  ;;  %v3263_v20 = vadd.f32 %v3262_v10, %v6230_v8 }
 0x4a3   :  { %v3458_v32 = vpack.c.bf16 %v3440_v50, %v3438_v33 }
 0x4a4   :  { %v3406_v21 = vpop.f32.mrf.mxu3 }
 0x4a5   :  { %v3407_v48 = vadd.f32 %v3406_v21, %v3358_v19  ;;  %3632 = vmatmul.bf16.gmra.mxu0 %v3458_v32 }
 0x4a6   :  { %v3311_v63 = vpop.f32.mrf.mxu1  ;;  %v3360_v58 = vpop.f32.mrf.mxu2 }
 0x4a7   :  { %v3441_v26 = vmax.f32 %v3407_v48, 0.0  ;;  %v3312_v45 = vadd.f32 %v3311_v63, %v3263_v20  ;;  %v3361_v62 = vadd.f32 %v3360_v58, %v6233_v57 }
 0x4a8   :  { %v3264_v47 = vpop.f32.mrf.mxu0 }
 0x4a9   :  { %v3459_v11 = vpack.c.bf16 %v3441_v26, %v3439_v59  ;;  %v3265_v39 = vadd.f32 %v3264_v47, %v6230_v8  ;;  %v3442_v25 = vmax.f32 %v3312_v45, 0.0  ;;  %v6269_v8 = vld [vmem:[%s6303_s10] ss:$0 sm:$0xff]  ;;  %s5497_s10 = smov [#allocation14]  }
 0x4aa   :  { %s3712_s17 = sshll.u32 %s5497_s10, 4  ;;  %s3713_s17 = int_to_ptr.vmem [resolvable:$true] %s3712_s17 }
 0x4ab   :  { %3681 = vmatmul.bf16.gmra.mxu1 %v3459_v11 }
 0x4ac   :  { %v3409_v53 = vpop.f32.mrf.mxu3 }
 0x4ad   :  { %v3410_v12 = vadd.f32 %v3409_v53, %v3361_v62 }
 0x4ae   :  { %v3313_v61 = vpop.f32.mrf.mxu1  ;;  %v3362_v54 = vpop.f32.mrf.mxu2 }
 0x4af   :  { %v3314_v43 = vadd.f32 %v3313_v61, %v3265_v39  ;;  %v3363_v38 = vadd.f32 %v3362_v54, %v6233_v57  ;;  %v3443_v24 = vmax.f32 %v3410_v12, 0.0 }
 0x4b1   :  { %v3444_v4 = vmax.f32 %v3314_v43, 0.0 }
 0x4b3   :  { %v3460_v14 = vpack.c.bf16 %v3444_v4, %v3442_v25 }
 0x4b4   :  { %v3411_v5 = vpop.f32.mrf.mxu3 }
 0x4b5   :  { %v3412_v6 = vadd.f32 %v3411_v5, %v3363_v38  ;;  %3637 = vmatmul.bf16.gmra.mxu0 %v3460_v14 }
 0x4b7   :  { %v3445_v18 = vmax.f32 %v3412_v6, 0.0 }
 0x4b9   :  { %v3461_v35 = vpack.c.bf16 %v3445_v18, %v3443_v24 }
 0x4bb   :  { %3686 = vmatmul.bf16.gmra.mxu1 %v3461_v35 }
 0x4c2   :  { %v3603_v0 = vpop.f32.mrf.mxu0 }
 0x4c3   :  { %v3604_v2 = vadd.f32 %v6269_v8, %v3603_v0 }
 0x4c8   :  { %v3652_v60 = vpop.f32.mrf.mxu1 }
 0x4c9   :  { %v3653_v27 = vadd.f32 %v3652_v60, %v3604_v2 }
 0x4ca   :  { %v3605_v28 = vpop.f32.mrf.mxu0 }
 0x4cb   :  { %3692 = vst [vmem:[#allocation14] sm:$0xff] %v3653_v27  ;;  %v3606_v57 = vadd.f32 %v6269_v8, %v3605_v28 }
 0x4d0   :  { %v3654_v41 = vpop.f32.mrf.mxu1 }
 0x4d1   :  { %v3655_v3 = vadd.f32 %v3654_v41, %v3606_v57 }
 0x4d2   :  { %v3608_v1 = vpop.f32.mrf.mxu0 }
 0x4d3   :  { %3693 = vst [vmem:[#allocation14 + $0x8] sm:$0xff] %v3655_v3  ;;  %v3609_v37 = vadd.f32 %v6269_v8, %v3608_v1 }
 0x4d8   :  { %v3657_v34 = vpop.f32.mrf.mxu1 }
 0x4d9   :  { %v3658_v23 = vadd.f32 %v3657_v34, %v3609_v37 }
 0x4da   :  { %v3610_v16 = vpop.f32.mrf.mxu0 }
 0x4db   :  { %3694 = vst [vmem:[#allocation14 + $0x10] sm:$0xff] %v3658_v23  ;;  %v3611_v9 = vadd.f32 %v6269_v8, %v3610_v16 }
 0x4e0   :  { %v3659_v17 = vpop.f32.mrf.mxu1 }
 0x4e1   :  { %v3660_v36 = vadd.f32 %v3659_v17, %v3611_v9 }
 0x4e2   :  { %v3613_v49 = vpop.f32.mrf.mxu0 }
 0x4e3   :  { %3695 = vst [vmem:[#allocation14 + $0x18] sm:$0xff] %v3660_v36  ;;  %v3614_v52 = vadd.f32 %v6269_v8, %v3613_v49 }
 0x4e8   :  { %v3662_v30 = vpop.f32.mrf.mxu1 }
 0x4e9   :  { %v3663_v13 = vadd.f32 %v3662_v30, %v3614_v52 }
 0x4ea   :  { %v3615_v31 = vpop.f32.mrf.mxu0 }
 0x4eb   :  { %3696 = vst [vmem:[#allocation14 + $0x20] sm:$0xff] %v3663_v13  ;;  %v3616_v42 = vadd.f32 %v6269_v8, %v3615_v31 }
 0x4f0   :  { %v3664_v15 = vpop.f32.mrf.mxu1 }
 0x4f1   :  { %v3665_v22 = vadd.f32 %v3664_v15, %v3616_v42 }
 0x4f2   :  { %v3618_v40 = vpop.f32.mrf.mxu0 }
 0x4f3   :  { %3697 = vst [vmem:[#allocation14 + $0x28] sm:$0xff] %v3665_v22  ;;  %v3619_v44 = vadd.f32 %v6269_v8, %v3618_v40 }
 0x4f8   :  { %v3667_v7 = vpop.f32.mrf.mxu1 }
 0x4f9   :  { %v3668_v55 = vadd.f32 %v3667_v7, %v3619_v44 }
 0x4fa   :  { %v3620_v56 = vpop.f32.mrf.mxu0 }
 0x4fb   :  { %3698 = vst [vmem:[#allocation14 + $0x30] sm:$0xff] %v3668_v55  ;;  %v3621_v51 = vadd.f32 %v6269_v8, %v3620_v56 }
 0x500   :  { %v3669_v10 = vpop.f32.mrf.mxu1 }
 0x501   :  { %v3670_v33 = vadd.f32 %v3669_v10, %v3621_v51 }
 0x502   :  { %v3623_v46 = vpop.f32.mrf.mxu0 }
 0x503   :  { %3699 = vst [vmem:[#allocation14 + $0x38] sm:$0xff] %v3670_v33  ;;  %v3624_v50 = vadd.f32 %v6269_v8, %v3623_v46 }
 0x508   :  { %v3672_v29 = vpop.f32.mrf.mxu1 }
 0x509   :  { %v3673_v32 = vadd.f32 %v3672_v29, %v3624_v50 }
 0x50a   :  { %v3625_v19 = vpop.f32.mrf.mxu0 }
 0x50b   :  { %3700 = vst [vmem:[#allocation14 + $0x40] sm:$0xff] %v3673_v32  ;;  %v3626_v21 = vadd.f32 %v6269_v8, %v3625_v19 }
 0x510   :  { %v3674_v48 = vpop.f32.mrf.mxu1 }
 0x511   :  { %v3675_v63 = vadd.f32 %v3674_v48, %v3626_v21 }
 0x512   :  { %v3628_v58 = vpop.f32.mrf.mxu0 }
 0x513   :  { %3701 = vst [vmem:[#allocation14 + $0x48] sm:$0xff] %v3675_v63  ;;  %v3629_v59 = vadd.f32 %v6269_v8, %v3628_v58 }
 0x518   :  { %v3677_v26 = vpop.f32.mrf.mxu1 }
 0x519   :  { %v3678_v11 = vadd.f32 %v3677_v26, %v3629_v59 }
 0x51a   :  { %v3630_v47 = vpop.f32.mrf.mxu0 }
 0x51b   :  { %3702 = vst [vmem:[#allocation14 + $0x50] sm:$0xff] %v3678_v11  ;;  %v3631_v20 = vadd.f32 %v6269_v8, %v3630_v47 }
 0x520   :  { %v3679_v53 = vpop.f32.mrf.mxu1 }
 0x521   :  { %v3680_v45 = vadd.f32 %v3679_v53, %v3631_v20 }
 0x522   :  { %v3633_v39 = vpop.f32.mrf.mxu0 }
 0x523   :  { %3703 = vst [vmem:[#allocation14 + $0x58] sm:$0xff] %v3680_v45  ;;  %v3634_v61 = vadd.f32 %v6269_v8, %v3633_v39 }
 0x528   :  { %v3682_v43 = vpop.f32.mrf.mxu1 }
 0x529   :  { %v3683_v54 = vadd.f32 %v3682_v43, %v3634_v61 }
 0x52a   :  { %v3635_v25 = vpop.f32.mrf.mxu0 }
 0x52b   :  { %3704 = vst [vmem:[#allocation14 + $0x60] sm:$0xff] %v3683_v54  ;;  %v3636_v62 = vadd.f32 %v6269_v8, %v3635_v25 }
 0x530   :  { %v3684_v4 = vpop.f32.mrf.mxu1 }
 0x531   :  { %v3685_v12 = vadd.f32 %v3684_v4, %v3636_v62 }
 0x532   :  { %v3638_v14 = vpop.f32.mrf.mxu0 }
 0x533   :  { %3705 = vst [vmem:[#allocation14 + $0x68] sm:$0xff] %v3685_v12  ;;  %v3639_v38 = vadd.f32 %v6269_v8, %v3638_v14 }
 0x538   :  { %v3687_v5 = vpop.f32.mrf.mxu1 }
 0x539   :  { %v3688_v6 = vadd.f32 %v3687_v5, %v3639_v38 }
 0x53a   :  { %v3640_v24 = vpop.f32.mrf.mxu0 }
 0x53b   :  { %3706 = vst [vmem:[#allocation14 + $0x70] sm:$0xff] %v3688_v6  ;;  %v3641_v18 = vadd.f32 %v6269_v8, %v3640_v24 }
 0x540   :  { %v3689_v35 = vpop.f32.mrf.mxu1 }
 0x541   :  { %v3690_v0 = vadd.f32 %v3689_v35, %v3641_v18 }
 0x543   :  { %3707 = vst [vmem:[#allocation14 + $0x78] sm:$0xff] %v3690_v0 }
 0x544   :  { %3720 = dma.vmem_to_hbm [thread:$0]  %s3713_s17, 2048, %s3715_s20, [#allocation4], %s5485_s25, %s5485_s25, %s5486_s26  }
 0x545   :  { %5482 = dma.done.wait [#allocation4], 2048  }
 0x546   :  { %5483 = vsyncadd [#allocation4], 4294965248 }
 0x547   :  { %3725 = vsyncpa [#allocation3], 1 }
 0x548   :  { %3726 = vsyncpa [#allocation6], 1 }
 0x549   :  { %3727 = vsyncpa [#allocation9], 1 }
 0x54a   :  { %3728 = vsyncpa [#allocation12], 1 }
 0x54b   :  { %3729 = vsyncpa [#allocation4], 1 }

</bundles_post_ra>
